<compile_context>
chip_gen: v7x
topology: tpu7x:2x2x1
jax: 0.10.0
libtpu: 0.0.40
codegen_flags: <defaults>
</compile_context>

<pallas_src>
import math

import numpy as np
import jax
import jax.numpy as jnp
from jax.experimental import pallas as pl
from jax.experimental.pallas import tpu as pltpu

# ----------------------------- model hyper-params -----------------------------
HIDDEN = 32          # transformer.d_model
HEADS = 4
HEAD_DIM = HIDDEN // HEADS
LATENT = 32          # self.latent_dim
ACTION_DIM = 10
POSE_DIM = 9
NUM_QUERIES = 8
SEQ = NUM_QUERIES    # action sequence length
VIS_TOKENS = 4
FFN = 64
ENC_LEN = 2 + SEQ            # [CLS, qpos, actions...]
MEM_LEN = 1 + VIS_TOKENS     # [latent, vision tokens...]


# --------------------------- parameter slab layouts ----------------------------
def _build_layout(entries):
    """Row layout for a packed parameter slab; every entry starts 8-row aligned."""
    layout, off = {}, 0
    for name, rows in entries:
        layout[name] = (off, rows)
        off += ((rows + 7) // 8) * 8
    return layout, off


_P32_ENTRIES = [
    ("wact", ACTION_DIM), ("bact", 1), ("wjoint", POSE_DIM), ("bjoint", 1),
    ("cls", 1), ("pos", ENC_LEN),
    ("e_wo", HIDDEN), ("e_bo", 1), ("e_g1", 1), ("e_b1", 1),
    ("e_wf2", FFN), ("e_bf2", 1), ("e_g2", 1), ("e_b2", 1),
    ("wlout", LATENT), ("blout", 1),
    ("qemb", NUM_QUERIES), ("apos", 2), ("vpos", VIS_TOKENS),
    ("d_wo", HIDDEN), ("d_bo", 1), ("d_g1", 1), ("d_b1", 1),
    ("d_wf2", FFN), ("d_bf2", 1), ("d_g2", 1), ("d_b2", 1),
    ("whead", HIDDEN), ("bhead", 1),
]
_P64_ENTRIES = [
    ("e_wf1", HIDDEN), ("e_bf1", 1),
    ("wlat", HIDDEN), ("blat", 1),
    ("d_wf1", HIDDEN), ("d_bf1", 1),
]
_P96_ENTRIES = [
    ("e_wqkv", HIDDEN), ("e_bqkv", 1),
    ("d_wqkv", HIDDEN), ("d_bqkv", 1),
]

P32_LAYOUT, P32_ROWS = _build_layout(_P32_ENTRIES)
P64_LAYOUT, P64_ROWS = _build_layout(_P64_ENTRIES)
P96_LAYOUT, P96_ROWS = _build_layout(_P96_ENTRIES)


def _pack_slab(tensors, layout, total_rows, width):
    slab = jnp.zeros((total_rows, width), jnp.float32)
    for name, (off, rows) in layout.items():
        t = jnp.asarray(tensors[name], jnp.float32)
        slab = slab.at[off:off + rows, :t.shape[1]].set(t)
    return slab


def _slab_get(ref, layout, name):
    off, rows = layout[name]
    return ref[off:off + rows, :]


# ------------------------------ fused Pallas kernel ----------------------------
def _detrvae_kernel(qpos_ref, act_ref, pad_ref, vis_ref, eps_ref,
                    p32_ref, p64_ref, p96_ref,
                    mulv_ref, mem_ref, head_ref):
    bs = qpos_ref.shape[0]
    D = HIDDEN
    dh = HEAD_DIM
    S = ENC_LEN
    seq = SEQ
    nq = NUM_QUERIES
    ML = MEM_LEN
    scale = 1.0 / math.sqrt(dh)

    def dot(a, b):
        return jnp.dot(a, b, preferred_element_type=jnp.float32)

    def p32(name):
        return _slab_get(p32_ref, P32_LAYOUT, name)

    def p64(name):
        return _slab_get(p64_ref, P64_LAYOUT, name)

    def p96(name):
        return _slab_get(p96_ref, P96_LAYOUT, name)

    def layer_norm(x, g, b):
        m = jnp.mean(x, axis=-1, keepdims=True)
        xc = x - m
        var = jnp.mean(xc * xc, axis=-1, keepdims=True)
        return xc * jax.lax.rsqrt(var + 1e-5) * g + b

    def softmax(s):
        m = jnp.max(s, axis=-1, keepdims=True)
        p = jnp.exp(s - m)
        return p * pl.reciprocal(jnp.sum(p, axis=-1, keepdims=True), approx=True)

    def mha(q_flat, k_flat, v_flat, nb, lq, lk, wo, bo, bias_rows=None):
        """Multi-head attention on fused-projected (per-head-concatenated) inputs.
        q_flat:(nb*lq,D) k_flat/v_flat:(nb*lk,D).  bias_rows: optional (nb, lk) additive
        key mask.  Only the tiny per-(batch,head) score loop is unrolled; Q/K/V/O
        projections are done outside as wide matmuls."""
        ctx_rows = []
        for b in range(nb):
            qb = q_flat[b * lq:(b + 1) * lq, :]
            kb = k_flat[b * lk:(b + 1) * lk, :]
            vb = v_flat[b * lk:(b + 1) * lk, :]
            heads = []
            for h in range(HEADS):
                qh = qb[:, h * dh:(h + 1) * dh]
                kh = kb[:, h * dh:(h + 1) * dh]
                vh = vb[:, h * dh:(h + 1) * dh]
                s = jax.lax.dot_general(qh, kh, (((1,), (1,)), ((), ())),
                                        preferred_element_type=jnp.float32) * scale
                if bias_rows is not None:
                    s = s + bias_rows[b:b + 1, :]
                heads.append(dot(softmax(s), vh))
            ctx_rows.append(jnp.concatenate(heads, axis=-1))          # (lq, D)
        ctx = jnp.concatenate(ctx_rows, axis=0)                        # (nb*lq, D)
        return dot(ctx, wo) + bo

    # ------------- CVAE style-encoder (1 DETR encoder layer, batch-folded) -------------
    act_emb = dot(act_ref[...], p32("wact")) + p32("bact")            # (bs*seq, D)
    qpos_emb = dot(qpos_ref[...], p32("wjoint")) + p32("bjoint")      # (bs, D)
    cls_row = p32("cls")                                              # (1, D)
    rows = []
    for b in range(bs):
        rows.append(cls_row)
        rows.append(qpos_emb[b:b + 1, :])
        rows.append(act_emb[b * seq:(b + 1) * seq, :])
    src = jnp.concatenate(rows, axis=0)                                # (bs*S, D)

    pos = p32("pos")                                                   # (S, D)
    pos_t = jnp.concatenate([pos] * bs, axis=0)                        # (bs*S, D)

    e_wqkv = p96("e_wqkv")
    e_bqkv = p96("e_bqkv")
    # DETR encoder: pos added to q,k only; value = src
    qk = dot(src + pos_t, e_wqkv[:, :2 * D]) + e_bqkv[:, :2 * D]       # (bs*S, 2D)
    v = dot(src, e_wqkv[:, 2 * D:]) + e_bqkv[:, 2 * D:]                # (bs*S, D)

    # additive key-padding mask built in-kernel from raw is_pad flags
    pad = pad_ref[...]                                                 # (bs, S)
    bias = jnp.where(pad > 0.5, jnp.float32(-1e9), jnp.float32(0.0))

    attn = mha(qk[:, :D], qk[:, D:], v, bs, S, S,
               p32("e_wo"), p32("e_bo"), bias_rows=bias)
    src2 = layer_norm(src + attn, p32("e_g1"), p32("e_b1"))
    ff = dot(jnp.maximum(dot(src2, p64("e_wf1")) + p64("e_bf1"), 0.0),
             p32("e_wf2")) + p32("e_bf2")
    src3 = layer_norm(src2 + ff, p32("e_g2"), p32("e_b2"))

    # ---------------------------------- latent path ------------------------------------
    cls_out = jnp.concatenate([src3[b * S:b * S + 1, :] for b in range(bs)], axis=0)
    mulv = dot(cls_out, p64("wlat")) + p64("blat")                     # (bs, 2*latent)
    mulv_ref[...] = mulv
    mu = mulv[:, :LATENT]
    logvar = mulv[:, LATENT:]
    z = mu + jnp.exp(0.5 * logvar) * eps_ref[...]                      # reparametrize
    lat_in = dot(z, p32("wlout")) + p32("blout")                       # (bs, D)

    # ------------------------- memory (obs encoder out) --------------------------------
    vis = vis_ref[...]                                                 # (bs*Tv, D)
    mem_rows = []
    for b in range(bs):
        mem_rows.append(lat_in[b:b + 1, :])
        mem_rows.append(vis[b * VIS_TOKENS:(b + 1) * VIS_TOKENS, :])
    mem = jnp.concatenate(mem_rows, axis=0)                            # (bs*ML, D)
    mem_ref[...] = mem

    # ------------------ DETR-style cross-attention decoder (1 layer) -------------------
    mpos = jnp.concatenate([p32("apos")[0:1, :], p32("vpos")], axis=0)  # (ML, D)
    mpos_t = jnp.concatenate([mpos] * bs, axis=0)                       # (bs*ML, D)

    d_wqkv = p96("d_wqkv")
    d_bqkv = p96("d_bqkv")
    # tgt starts at zero -> query input = query_embed (shared across the batch)
    q = dot(p32("qemb"), d_wqkv[:, :D]) + d_bqkv[:, :D]                 # (nq, D)
    q_t = jnp.concatenate([q] * bs, axis=0)                             # (bs*nq, D)
    k = dot(mem + mpos_t, d_wqkv[:, D:2 * D]) + d_bqkv[:, D:2 * D]      # (bs*ML, D)
    vd = dot(mem, d_wqkv[:, 2 * D:]) + d_bqkv[:, 2 * D:]                # (bs*ML, D)

    attn_d = mha(q_t, k, vd, bs, nq, ML, p32("d_wo"), p32("d_bo"))      # (bs*nq, D)
    tgt = layer_norm(attn_d, p32("d_g1"), p32("d_b1"))                  # residual tgt = 0
    ff_d = dot(jnp.maximum(dot(tgt, p64("d_wf1")) + p64("d_bf1"), 0.0),
               p32("d_wf2")) + p32("d_bf2")
    hs = layer_norm(tgt + ff_d, p32("d_g2"), p32("d_b2"))               # (bs*nq, D)

    # fused, lane-padded [action_head | is_pad_head] projection (cols 11.. are zero)
    head_ref[...] = dot(hs, p32("whead")) + p32("bhead")


# ------------------------------ parameter setup -------------------------------
def get_sinusoid_encoding_table(n_position, d_hid):
    pos = np.arange(n_position)[:, None].astype(np.float64)
    hid = np.arange(d_hid)[None, :]
    angle = pos / np.power(10000, 2 * (hid // 2) / d_hid)
    table = np.zeros((n_position, d_hid))
    table[:, 0::2] = np.sin(angle[:, 0::2])
    table[:, 1::2] = np.cos(angle[:, 1::2])
    return jnp.asarray(table, dtype=jnp.float32)              # (n_position, d_hid)


def init_params(key):
    keys = iter(jax.random.split(key, 64))

    def dense(fan_in, fan_out):
        limit = math.sqrt(6.0 / (fan_in + fan_out))            # xavier_uniform
        w = jax.random.uniform(next(keys), (fan_in, fan_out), jnp.float32, -limit, limit)
        return w, jnp.zeros((1, fan_out), jnp.float32)

    def emb(n, d):
        return jax.random.normal(next(keys), (n, d), jnp.float32) * 0.02

    def layer(prefix):
        wqkv, bqkv = dense(HIDDEN, 3 * HIDDEN)        # fused Q|K|V projection
        wo, bo = dense(HIDDEN, HIDDEN)
        wf1, bf1 = dense(HIDDEN, FFN)
        wf2, bf2 = dense(FFN, HIDDEN)
        ones = jnp.ones((1, HIDDEN), jnp.float32)
        zeros = jnp.zeros((1, HIDDEN), jnp.float32)
        t32 = {f"{prefix}_wo": wo, f"{prefix}_bo": bo,
               f"{prefix}_g1": ones, f"{prefix}_b1": zeros,
               f"{prefix}_wf2": wf2, f"{prefix}_bf2": bf2,
               f"{prefix}_g2": ones, f"{prefix}_b2": zeros}
        t64 = {f"{prefix}_wf1": wf1, f"{prefix}_bf1": bf1}
        t96 = {f"{prefix}_wqkv": wqkv, f"{prefix}_bqkv": bqkv}
        return t32, t64, t96

    wact, bact = dense(ACTION_DIM, HIDDEN)
    wjoint, bjoint = dense(POSE_DIM, HIDDEN)
    wlat, blat = dense(HIDDEN, 2 * LATENT)            # fused [mu | logvar] projection
    wlout, blout = dense(LATENT, HIDDEN)
    w_ah, b_ah = dense(HIDDEN, ACTION_DIM)
    w_ph, b_ph = dense(HIDDEN, 1)

    e32, e64, e96 = layer("e")
    d32, d64, d96 = layer("d")

    t32 = {"wact": wact, "bact": bact, "wjoint": wjoint, "bjoint": bjoint,
           "cls": emb(1, HIDDEN), "pos": get_sinusoid_encoding_table(ENC_LEN, HIDDEN),
           **e32,
           "wlout": wlout, "blout": blout,
           "qemb": emb(NUM_QUERIES, HIDDEN), "apos": emb(2, HIDDEN),
           "vpos": emb(VIS_TOKENS, HIDDEN),
           **d32,
           # action_head and is_pad_head fused along the output dim (lane-padded at pack)
           "whead": jnp.concatenate([w_ah, w_ph], axis=1),
           "bhead": jnp.concatenate([b_ah, b_ph], axis=1)}
    t64 = {**e64, "wlat": wlat, "blat": blat, **d64}
    t96 = {**e96, **d96}

    return {"p32": _pack_slab(t32, P32_LAYOUT, P32_ROWS, HIDDEN),
            "p64": _pack_slab(t64, P64_LAYOUT, P64_ROWS, 2 * LATENT),
            "p96": _pack_slab(t96, P96_LAYOUT, P96_ROWS, 3 * HIDDEN)}


# --------------------------------- forward ------------------------------------
@jax.jit
def detrvae_forward(params, qpos, multi_mod_input, actions, is_pad, eps_key):
    """Training-mode forward (actions is not None); single fused gridless pallas_call."""
    bs = qpos.shape[0]
    vision = multi_mod_input['vision']['v_fix'].astype(jnp.float32)
    vision_flat = vision.reshape(bs * VIS_TOKENS, HIDDEN)
    actions2 = actions.reshape(bs * SEQ, ACTION_DIM).astype(jnp.float32)
    pad_full = jnp.concatenate(
        [jnp.zeros((bs, 2), jnp.float32), is_pad.astype(jnp.float32)], axis=1)  # (bs, 2+seq)
    eps = jax.random.normal(eps_key, (bs, LATENT), jnp.float32)

    args = [qpos.astype(jnp.float32), actions2, pad_full, vision_flat, eps,
            params["p32"], params["p64"], params["p96"]]

    vmem = pl.BlockSpec(memory_space=pltpu.MemorySpace.VMEM)
    mulv, memory, head = pl.pallas_call(
        _detrvae_kernel,
        out_shape=(
            jax.ShapeDtypeStruct((bs, 2 * LATENT), jnp.float32),            # [mu | logvar]
            jax.ShapeDtypeStruct((bs * MEM_LEN, HIDDEN), jnp.float32),      # obs encoder out
            jax.ShapeDtypeStruct((bs * NUM_QUERIES, HIDDEN), jnp.float32),  # padded heads
        ),
        in_specs=[vmem] * len(args),
        out_specs=(vmem, vmem, vmem),
    )(*args)

    mu = mulv[:, :LATENT]
    logvar = mulv[:, LATENT:]
    memory = memory.reshape(bs, MEM_LEN, HIDDEN)
    head = head[:, :ACTION_DIM + 1].reshape(bs, NUM_QUERIES, ACTION_DIM + 1)
    a_hat = head[..., :ACTION_DIM]
    is_pad_hat = head[..., ACTION_DIM:]
    return {'vae_output': [a_hat, is_pad_hat, [mu, logvar]],
            'obs_encoder_out': memory}


# ----------------------------------- main --------------------------------------
if __name__ == "__main__":
    key = jax.random.PRNGKey(0)
    pkey, qkey, akey, vkey, ekey = jax.random.split(key, 5)
    params = init_params(pkey)

    bs = 2
    qpos = jax.random.normal(qkey, (bs, POSE_DIM), jnp.float32)
    actions = jax.random.normal(akey, (bs, SEQ, ACTION_DIM), jnp.float32)
    is_pad = jnp.zeros((bs, SEQ), dtype=bool)
    multi_mod_input = {
        'vision': {'v_fix': jax.random.normal(vkey, (bs, VIS_TOKENS, HIDDEN), jnp.float32)}
    }

    out = detrvae_forward(params, qpos, multi_mod_input, actions, is_pad, ekey)
    a_hat, is_pad_hat, (mu, logvar) = out['vae_output']
    jax.block_until_ready((a_hat, is_pad_hat, mu, logvar, out['obs_encoder_out']))

    assert a_hat.shape == (bs, NUM_QUERIES, ACTION_DIM)
    assert is_pad_hat.shape == (bs, NUM_QUERIES, 1)
    assert mu.shape == (bs, LATENT) and logvar.shape == (bs, LATENT)
    assert out['obs_encoder_out'].shape == (bs, MEM_LEN, HIDDEN)
    assert bool(jnp.all(jnp.isfinite(a_hat)))
    assert bool(jnp.all(jnp.isfinite(mu))) and bool(jnp.all(jnp.isfinite(logvar)))
    print("KERNEL_OK")
</pallas_src>

<mosaic_0001>
module attributes {stable_mosaic.version = 11 : i64} {
  func.func @_detrvae_kernel(%arg0: memref<2x9xf32, #tpu.memory_space<vmem>>, %arg1: memref<16x10xf32, #tpu.memory_space<vmem>>, %arg2: memref<2x10xf32, #tpu.memory_space<vmem>>, %arg3: memref<8x32xf32, #tpu.memory_space<vmem>>, %arg4: memref<2x32xf32, #tpu.memory_space<vmem>>, %arg5: memref<464x32xf32, #tpu.memory_space<vmem>>, %arg6: memref<120x64xf32, #tpu.memory_space<vmem>>, %arg7: memref<80x96xf32, #tpu.memory_space<vmem>>, %arg8: memref<2x64xf32, #tpu.memory_space<vmem>>, %arg9: memref<10x32xf32, #tpu.memory_space<vmem>>, %arg10: memref<16x32xf32, #tpu.memory_space<vmem>>) attributes {dimension_semantics = [], scalar_prefetch = 0 : i64, scratch_operands = 0 : i64, tpu.core_type = #tpu.core_type<tc>} {
    %c0 = arith.constant 0 : index
    %c0_0 = arith.constant 0 : index
    %0 = vector.load %arg1[%c0, %c0_0] : memref<16x10xf32, #tpu.memory_space<vmem>>, vector<16x10xf32>
    %c0_1 = arith.constant 0 : index
    %c0_2 = arith.constant 0 : index
    %1 = vector.load %arg5[%c0_1, %c0_2] : memref<464x32xf32, #tpu.memory_space<vmem>>, vector<10x32xf32>
    %cst = arith.constant dense<0.000000e+00> : vector<16x32xf32>
    %2 = tpu.matmul %0, %1, %cst {dimension_numbers = #tpu.dot_dimension_numbers<[1], [0], [0], [1], [0, 0, 1, 1], [], []>} : vector<16x10xf32>, vector<10x32xf32>, vector<16x32xf32> -> vector<16x32xf32>
    %c16 = arith.constant 16 : index
    %c0_3 = arith.constant 0 : index
    %3 = vector.load %arg5[%c16, %c0_3] : memref<464x32xf32, #tpu.memory_space<vmem>>, vector<1x32xf32>
    %4 = vector.broadcast %3 : vector<1x32xf32> to vector<16x32xf32>
    %5 = arith.addf %2, %4 : vector<16x32xf32>
    %c0_4 = arith.constant 0 : index
    %c0_5 = arith.constant 0 : index
    %6 = vector.load %arg0[%c0_4, %c0_5] : memref<2x9xf32, #tpu.memory_space<vmem>>, vector<2x9xf32>
    %c24 = arith.constant 24 : index
    %c0_6 = arith.constant 0 : index
    %7 = vector.load %arg5[%c24, %c0_6] : memref<464x32xf32, #tpu.memory_space<vmem>>, vector<9x32xf32>
    %cst_7 = arith.constant dense<0.000000e+00> : vector<2x32xf32>
    %8 = tpu.matmul %6, %7, %cst_7 {dimension_numbers = #tpu.dot_dimension_numbers<[1], [0], [0], [1], [0, 0, 1, 1], [], []>} : vector<2x9xf32>, vector<9x32xf32>, vector<2x32xf32> -> vector<2x32xf32>
    %c40 = arith.constant 40 : index
    %c0_8 = arith.constant 0 : index
    %9 = vector.load %arg5[%c40, %c0_8] : memref<464x32xf32, #tpu.memory_space<vmem>>, vector<1x32xf32>
    %10 = vector.broadcast %9 : vector<1x32xf32> to vector<2x32xf32>
    %11 = arith.addf %8, %10 : vector<2x32xf32>
    %c48 = arith.constant 48 : index
    %c0_9 = arith.constant 0 : index
    %12 = vector.load %arg5[%c48, %c0_9] : memref<464x32xf32, #tpu.memory_space<vmem>>, vector<1x32xf32>
    %13 = vector.extract_strided_slice %11 {offsets = [0, 0], sizes = [1, 32], strides = [1, 1]} : vector<2x32xf32> to vector<1x32xf32>
    %14 = vector.extract_strided_slice %5 {offsets = [0, 0], sizes = [8, 32], strides = [1, 1]} : vector<16x32xf32> to vector<8x32xf32>
    %15 = vector.extract_strided_slice %11 {offsets = [1, 0], sizes = [1, 32], strides = [1, 1]} : vector<2x32xf32> to vector<1x32xf32>
    %16 = vector.extract_strided_slice %5 {offsets = [8, 0], sizes = [8, 32], strides = [1, 1]} : vector<16x32xf32> to vector<8x32xf32>
    %17 = tpu.concatenate %12, %13, %14, %12, %15, %16 in 0 : vector<1x32xf32>, vector<1x32xf32>, vector<8x32xf32>, vector<1x32xf32>, vector<1x32xf32>, vector<8x32xf32> -> vector<20x32xf32>
    %c56 = arith.constant 56 : index
    %c0_10 = arith.constant 0 : index
    %18 = vector.load %arg5[%c56, %c0_10] : memref<464x32xf32, #tpu.memory_space<vmem>>, vector<10x32xf32>
    %19 = tpu.concatenate %18, %18 in 0 : vector<10x32xf32>, vector<10x32xf32> -> vector<20x32xf32>
    %c0_11 = arith.constant 0 : index
    %c0_12 = arith.constant 0 : index
    %20 = vector.load %arg7[%c0_11, %c0_12] : memref<80x96xf32, #tpu.memory_space<vmem>>, vector<32x96xf32>
    %c32 = arith.constant 32 : index
    %c0_13 = arith.constant 0 : index
    %21 = vector.load %arg7[%c32, %c0_13] : memref<80x96xf32, #tpu.memory_space<vmem>>, vector<1x96xf32>
    %22 = arith.addf %17, %19 : vector<20x32xf32>
    %23 = vector.extract_strided_slice %20 {offsets = [0, 0], sizes = [32, 64], strides = [1, 1]} : vector<32x96xf32> to vector<32x64xf32>
    %cst_14 = arith.constant dense<0.000000e+00> : vector<20x64xf32>
    %24 = tpu.matmul %22, %23, %cst_14 {dimension_numbers = #tpu.dot_dimension_numbers<[1], [0], [0], [1], [0, 0, 1, 1], [], []>} : vector<20x32xf32>, vector<32x64xf32>, vector<20x64xf32> -> vector<20x64xf32>
    %25 = vector.extract_strided_slice %21 {offsets = [0, 0], sizes = [1, 64], strides = [1, 1]} : vector<1x96xf32> to vector<1x64xf32>
    %26 = vector.broadcast %25 : vector<1x64xf32> to vector<20x64xf32>
    %27 = arith.addf %24, %26 : vector<20x64xf32>
    %28 = vector.extract_strided_slice %20 {offsets = [0, 64], sizes = [32, 32], strides = [1, 1]} : vector<32x96xf32> to vector<32x32xf32>
    %cst_15 = arith.constant dense<0.000000e+00> : vector<20x32xf32>
    %29 = tpu.matmul %17, %28, %cst_15 {dimension_numbers = #tpu.dot_dimension_numbers<[1], [0], [0], [1], [0, 0, 1, 1], [], []>} : vector<20x32xf32>, vector<32x32xf32>, vector<20x32xf32> -> vector<20x32xf32>
    %30 = vector.extract_strided_slice %21 {offsets = [0, 64], sizes = [1, 32], strides = [1, 1]} : vector<1x96xf32> to vector<1x32xf32>
    %31 = vector.broadcast %30 : vector<1x32xf32> to vector<20x32xf32>
    %32 = arith.addf %29, %31 : vector<20x32xf32>
    %c0_16 = arith.constant 0 : index
    %c0_17 = arith.constant 0 : index
    %33 = vector.load %arg2[%c0_16, %c0_17] : memref<2x10xf32, #tpu.memory_space<vmem>>, vector<2x10xf32>
    %cst_18 = arith.constant 5.000000e-01 : f32
    %34 = vector.broadcast %cst_18 : f32 to vector<2x10xf32>
    %35 = arith.cmpf ogt, %33, %34 : vector<2x10xf32>
    %cst_19 = arith.constant -1.000000e+09 : f32
    %cst_20 = arith.constant 0.000000e+00 : f32
    %36 = vector.broadcast %cst_19 : f32 to vector<2x10xf32>
    %37 = vector.broadcast %cst_20 : f32 to vector<2x10xf32>
    %38 = arith.select %35, %36, %37 : vector<2x10xi1>, vector<2x10xf32>
    %39 = vector.extract_strided_slice %27 {offsets = [0, 0], sizes = [20, 32], strides = [1, 1]} : vector<20x64xf32> to vector<20x32xf32>
    %40 = vector.extract_strided_slice %27 {offsets = [0, 32], sizes = [20, 32], strides = [1, 1]} : vector<20x64xf32> to vector<20x32xf32>
    %c72 = arith.constant 72 : index
    %c0_21 = arith.constant 0 : index
    %41 = vector.load %arg5[%c72, %c0_21] : memref<464x32xf32, #tpu.memory_space<vmem>>, vector<32x32xf32>
    %c104 = arith.constant 104 : index
    %c0_22 = arith.constant 0 : index
    %42 = vector.load %arg5[%c104, %c0_22] : memref<464x32xf32, #tpu.memory_space<vmem>>, vector<1x32xf32>
    %43 = vector.extract_strided_slice %39 {offsets = [0, 0], sizes = [10, 32], strides = [1, 1]} : vector<20x32xf32> to vector<10x32xf32>
    %44 = vector.extract_strided_slice %40 {offsets = [0, 0], sizes = [10, 32], strides = [1, 1]} : vector<20x32xf32> to vector<10x32xf32>
    %45 = vector.extract_strided_slice %32 {offsets = [0, 0], sizes = [10, 32], strides = [1, 1]} : vector<20x32xf32> to vector<10x32xf32>
    %46 = vector.extract_strided_slice %43 {offsets = [0, 0], sizes = [10, 8], strides = [1, 1]} : vector<10x32xf32> to vector<10x8xf32>
    %47 = vector.extract_strided_slice %44 {offsets = [0, 0], sizes = [10, 8], strides = [1, 1]} : vector<10x32xf32> to vector<10x8xf32>
    %48 = vector.extract_strided_slice %45 {offsets = [0, 0], sizes = [10, 8], strides = [1, 1]} : vector<10x32xf32> to vector<10x8xf32>
    %cst_23 = arith.constant dense<0.000000e+00> : vector<10x10xf32>
    %49 = tpu.matmul %46, %47, %cst_23 {dimension_numbers = #tpu.dot_dimension_numbers<[1], [1], [0], [0], [0, 0, 1, 0], [], []>} : vector<10x8xf32>, vector<10x8xf32>, vector<10x10xf32> -> vector<10x10xf32>
    %cst_24 = arith.constant 0.353553385 : f32
    %50 = vector.broadcast %cst_24 : f32 to vector<10x10xf32>
    %51 = arith.mulf %49, %50 : vector<10x10xf32>
    %52 = vector.extract_strided_slice %38 {offsets = [0, 0], sizes = [1, 10], strides = [1, 1]} : vector<2x10xf32> to vector<1x10xf32>
    %53 = vector.broadcast %52 : vector<1x10xf32> to vector<10x10xf32>
    %54 = arith.addf %51, %53 : vector<10x10xf32>
    %cst_25 = arith.constant dense<0xFF800000> : vector<10xf32>
    %55 = vector.multi_reduction <maximumf>, %54, %cst_25 [1] : vector<10x10xf32> to vector<10xf32>
    %56 = vector.shape_cast %55 : vector<10xf32> to vector<10x1xf32>
    %57 = vector.broadcast %56 : vector<10x1xf32> to vector<10x10xf32>
    %58 = arith.subf %54, %57 : vector<10x10xf32>
    %59 = math.exp %58 : vector<10x10xf32>
    %cst_26 = arith.constant dense<0.000000e+00> : vector<10xf32>
    %60 = vector.multi_reduction <add>, %59, %cst_26 [1] : vector<10x10xf32> to vector<10xf32>
    %61 = vector.shape_cast %60 : vector<10xf32> to vector<10x1xf32>
    %62 = tpu.reciprocal %61 {approx = true} : vector<10x1xf32> -> vector<10x1xf32>
    %63 = vector.broadcast %62 : vector<10x1xf32> to vector<10x10xf32>
    %64 = arith.mulf %59, %63 : vector<10x10xf32>
    %cst_27 = arith.constant dense<0.000000e+00> : vector<10x8xf32>
    %65 = tpu.matmul %64, %48, %cst_27 {dimension_numbers = #tpu.dot_dimension_numbers<[1], [0], [0], [1], [0, 0, 1, 1], [], []>} : vector<10x10xf32>, vector<10x8xf32>, vector<10x8xf32> -> vector<10x8xf32>
    %66 = vector.extract_strided_slice %43 {offsets = [0, 8], sizes = [10, 8], strides = [1, 1]} : vector<10x32xf32> to vector<10x8xf32>
    %67 = vector.extract_strided_slice %44 {offsets = [0, 8], sizes = [10, 8], strides = [1, 1]} : vector<10x32xf32> to vector<10x8xf32>
    %68 = vector.extract_strided_slice %45 {offsets = [0, 8], sizes = [10, 8], strides = [1, 1]} : vector<10x32xf32> to vector<10x8xf32>
    %cst_28 = arith.constant dense<0.000000e+00> : vector<10x10xf32>
    %69 = tpu.matmul %66, %67, %cst_28 {dimension_numbers = #tpu.dot_dimension_numbers<[1], [1], [0], [0], [0, 0, 1, 0], [], []>} : vector<10x8xf32>, vector<10x8xf32>, vector<10x10xf32> -> vector<10x10xf32>
    %cst_29 = arith.constant 0.353553385 : f32
    %70 = vector.broadcast %cst_29 : f32 to vector<10x10xf32>
    %71 = arith.mulf %69, %70 : vector<10x10xf32>
    %72 = vector.extract_strided_slice %38 {offsets = [0, 0], sizes = [1, 10], strides = [1, 1]} : vector<2x10xf32> to vector<1x10xf32>
    %73 = vector.broadcast %72 : vector<1x10xf32> to vector<10x10xf32>
    %74 = arith.addf %71, %73 : vector<10x10xf32>
    %cst_30 = arith.constant dense<0xFF800000> : vector<10xf32>
    %75 = vector.multi_reduction <maximumf>, %74, %cst_30 [1] : vector<10x10xf32> to vector<10xf32>
    %76 = vector.shape_cast %75 : vector<10xf32> to vector<10x1xf32>
    %77 = vector.broadcast %76 : vector<10x1xf32> to vector<10x10xf32>
    %78 = arith.subf %74, %77 : vector<10x10xf32>
    %79 = math.exp %78 : vector<10x10xf32>
    %cst_31 = arith.constant dense<0.000000e+00> : vector<10xf32>
    %80 = vector.multi_reduction <add>, %79, %cst_31 [1] : vector<10x10xf32> to vector<10xf32>
    %81 = vector.shape_cast %80 : vector<10xf32> to vector<10x1xf32>
    %82 = tpu.reciprocal %81 {approx = true} : vector<10x1xf32> -> vector<10x1xf32>
    %83 = vector.broadcast %82 : vector<10x1xf32> to vector<10x10xf32>
    %84 = arith.mulf %79, %83 : vector<10x10xf32>
    %cst_32 = arith.constant dense<0.000000e+00> : vector<10x8xf32>
    %85 = tpu.matmul %84, %68, %cst_32 {dimension_numbers = #tpu.dot_dimension_numbers<[1], [0], [0], [1], [0, 0, 1, 1], [], []>} : vector<10x10xf32>, vector<10x8xf32>, vector<10x8xf32> -> vector<10x8xf32>
    %86 = vector.extract_strided_slice %43 {offsets = [0, 16], sizes = [10, 8], strides = [1, 1]} : vector<10x32xf32> to vector<10x8xf32>
    %87 = vector.extract_strided_slice %44 {offsets = [0, 16], sizes = [10, 8], strides = [1, 1]} : vector<10x32xf32> to vector<10x8xf32>
    %88 = vector.extract_strided_slice %45 {offsets = [0, 16], sizes = [10, 8], strides = [1, 1]} : vector<10x32xf32> to vector<10x8xf32>
    %cst_33 = arith.constant dense<0.000000e+00> : vector<10x10xf32>
    %89 = tpu.matmul %86, %87, %cst_33 {dimension_numbers = #tpu.dot_dimension_numbers<[1], [1], [0], [0], [0, 0, 1, 0], [], []>} : vector<10x8xf32>, vector<10x8xf32>, vector<10x10xf32> -> vector<10x10xf32>
    %cst_34 = arith.constant 0.353553385 : f32
    %90 = vector.broadcast %cst_34 : f32 to vector<10x10xf32>
    %91 = arith.mulf %89, %90 : vector<10x10xf32>
    %92 = vector.extract_strided_slice %38 {offsets = [0, 0], sizes = [1, 10], strides = [1, 1]} : vector<2x10xf32> to vector<1x10xf32>
    %93 = vector.broadcast %92 : vector<1x10xf32> to vector<10x10xf32>
    %94 = arith.addf %91, %93 : vector<10x10xf32>
    %cst_35 = arith.constant dense<0xFF800000> : vector<10xf32>
    %95 = vector.multi_reduction <maximumf>, %94, %cst_35 [1] : vector<10x10xf32> to vector<10xf32>
    %96 = vector.shape_cast %95 : vector<10xf32> to vector<10x1xf32>
    %97 = vector.broadcast %96 : vector<10x1xf32> to vector<10x10xf32>
    %98 = arith.subf %94, %97 : vector<10x10xf32>
    %99 = math.exp %98 : vector<10x10xf32>
    %cst_36 = arith.constant dense<0.000000e+00> : vector<10xf32>
    %100 = vector.multi_reduction <add>, %99, %cst_36 [1] : vector<10x10xf32> to vector<10xf32>
    %101 = vector.shape_cast %100 : vector<10xf32> to vector<10x1xf32>
    %102 = tpu.reciprocal %101 {approx = true} : vector<10x1xf32> -> vector<10x1xf32>
    %103 = vector.broadcast %102 : vector<10x1xf32> to vector<10x10xf32>
    %104 = arith.mulf %99, %103 : vector<10x10xf32>
    %cst_37 = arith.constant dense<0.000000e+00> : vector<10x8xf32>
    %105 = tpu.matmul %104, %88, %cst_37 {dimension_numbers = #tpu.dot_dimension_numbers<[1], [0], [0], [1], [0, 0, 1, 1], [], []>} : vector<10x10xf32>, vector<10x8xf32>, vector<10x8xf32> -> vector<10x8xf32>
    %106 = vector.extract_strided_slice %43 {offsets = [0, 24], sizes = [10, 8], strides = [1, 1]} : vector<10x32xf32> to vector<10x8xf32>
    %107 = vector.extract_strided_slice %44 {offsets = [0, 24], sizes = [10, 8], strides = [1, 1]} : vector<10x32xf32> to vector<10x8xf32>
    %108 = vector.extract_strided_slice %45 {offsets = [0, 24], sizes = [10, 8], strides = [1, 1]} : vector<10x32xf32> to vector<10x8xf32>
    %cst_38 = arith.constant dense<0.000000e+00> : vector<10x10xf32>
    %109 = tpu.matmul %106, %107, %cst_38 {dimension_numbers = #tpu.dot_dimension_numbers<[1], [1], [0], [0], [0, 0, 1, 0], [], []>} : vector<10x8xf32>, vector<10x8xf32>, vector<10x10xf32> -> vector<10x10xf32>
    %cst_39 = arith.constant 0.353553385 : f32
    %110 = vector.broadcast %cst_39 : f32 to vector<10x10xf32>
    %111 = arith.mulf %109, %110 : vector<10x10xf32>
    %112 = vector.extract_strided_slice %38 {offsets = [0, 0], sizes = [1, 10], strides = [1, 1]} : vector<2x10xf32> to vector<1x10xf32>
    %113 = vector.broadcast %112 : vector<1x10xf32> to vector<10x10xf32>
    %114 = arith.addf %111, %113 : vector<10x10xf32>
    %cst_40 = arith.constant dense<0xFF800000> : vector<10xf32>
    %115 = vector.multi_reduction <maximumf>, %114, %cst_40 [1] : vector<10x10xf32> to vector<10xf32>
    %116 = vector.shape_cast %115 : vector<10xf32> to vector<10x1xf32>
    %117 = vector.broadcast %116 : vector<10x1xf32> to vector<10x10xf32>
    %118 = arith.subf %114, %117 : vector<10x10xf32>
    %119 = math.exp %118 : vector<10x10xf32>
    %cst_41 = arith.constant dense<0.000000e+00> : vector<10xf32>
    %120 = vector.multi_reduction <add>, %119, %cst_41 [1] : vector<10x10xf32> to vector<10xf32>
    %121 = vector.shape_cast %120 : vector<10xf32> to vector<10x1xf32>
    %122 = tpu.reciprocal %121 {approx = true} : vector<10x1xf32> -> vector<10x1xf32>
    %123 = vector.broadcast %122 : vector<10x1xf32> to vector<10x10xf32>
    %124 = arith.mulf %119, %123 : vector<10x10xf32>
    %cst_42 = arith.constant dense<0.000000e+00> : vector<10x8xf32>
    %125 = tpu.matmul %124, %108, %cst_42 {dimension_numbers = #tpu.dot_dimension_numbers<[1], [0], [0], [1], [0, 0, 1, 1], [], []>} : vector<10x10xf32>, vector<10x8xf32>, vector<10x8xf32> -> vector<10x8xf32>
    %126 = tpu.concatenate %65, %85, %105, %125 in 1 : vector<10x8xf32>, vector<10x8xf32>, vector<10x8xf32>, vector<10x8xf32> -> vector<10x32xf32>
    %127 = vector.extract_strided_slice %39 {offsets = [10, 0], sizes = [10, 32], strides = [1, 1]} : vector<20x32xf32> to vector<10x32xf32>
    %128 = vector.extract_strided_slice %40 {offsets = [10, 0], sizes = [10, 32], strides = [1, 1]} : vector<20x32xf32> to vector<10x32xf32>
    %129 = vector.extract_strided_slice %32 {offsets = [10, 0], sizes = [10, 32], strides = [1, 1]} : vector<20x32xf32> to vector<10x32xf32>
    %130 = vector.extract_strided_slice %127 {offsets = [0, 0], sizes = [10, 8], strides = [1, 1]} : vector<10x32xf32> to vector<10x8xf32>
    %131 = vector.extract_strided_slice %128 {offsets = [0, 0], sizes = [10, 8], strides = [1, 1]} : vector<10x32xf32> to vector<10x8xf32>
    %132 = vector.extract_strided_slice %129 {offsets = [0, 0], sizes = [10, 8], strides = [1, 1]} : vector<10x32xf32> to vector<10x8xf32>
    %cst_43 = arith.constant dense<0.000000e+00> : vector<10x10xf32>
    %133 = tpu.matmul %130, %131, %cst_43 {dimension_numbers = #tpu.dot_dimension_numbers<[1], [1], [0], [0], [0, 0, 1, 0], [], []>} : vector<10x8xf32>, vector<10x8xf32>, vector<10x10xf32> -> vector<10x10xf32>
    %cst_44 = arith.constant 0.353553385 : f32
    %134 = vector.broadcast %cst_44 : f32 to vector<10x10xf32>
    %135 = arith.mulf %133, %134 : vector<10x10xf32>
    %136 = vector.extract_strided_slice %38 {offsets = [1, 0], sizes = [1, 10], strides = [1, 1]} : vector<2x10xf32> to vector<1x10xf32>
    %137 = vector.broadcast %136 : vector<1x10xf32> to vector<10x10xf32>
    %138 = arith.addf %135, %137 : vector<10x10xf32>
    %cst_45 = arith.constant dense<0xFF800000> : vector<10xf32>
    %139 = vector.multi_reduction <maximumf>, %138, %cst_45 [1] : vector<10x10xf32> to vector<10xf32>
    %140 = vector.shape_cast %139 : vector<10xf32> to vector<10x1xf32>
    %141 = vector.broadcast %140 : vector<10x1xf32> to vector<10x10xf32>
    %142 = arith.subf %138, %141 : vector<10x10xf32>
    %143 = math.exp %142 : vector<10x10xf32>
    %cst_46 = arith.constant dense<0.000000e+00> : vector<10xf32>
    %144 = vector.multi_reduction <add>, %143, %cst_46 [1] : vector<10x10xf32> to vector<10xf32>
    %145 = vector.shape_cast %144 : vector<10xf32> to vector<10x1xf32>
    %146 = tpu.reciprocal %145 {approx = true} : vector<10x1xf32> -> vector<10x1xf32>
    %147 = vector.broadcast %146 : vector<10x1xf32> to vector<10x10xf32>
    %148 = arith.mulf %143, %147 : vector<10x10xf32>
    %cst_47 = arith.constant dense<0.000000e+00> : vector<10x8xf32>
    %149 = tpu.matmul %148, %132, %cst_47 {dimension_numbers = #tpu.dot_dimension_numbers<[1], [0], [0], [1], [0, 0, 1, 1], [], []>} : vector<10x10xf32>, vector<10x8xf32>, vector<10x8xf32> -> vector<10x8xf32>
    %150 = vector.extract_strided_slice %127 {offsets = [0, 8], sizes = [10, 8], strides = [1, 1]} : vector<10x32xf32> to vector<10x8xf32>
    %151 = vector.extract_strided_slice %128 {offsets = [0, 8], sizes = [10, 8], strides = [1, 1]} : vector<10x32xf32> to vector<10x8xf32>
    %152 = vector.extract_strided_slice %129 {offsets = [0, 8], sizes = [10, 8], strides = [1, 1]} : vector<10x32xf32> to vector<10x8xf32>
    %cst_48 = arith.constant dense<0.000000e+00> : vector<10x10xf32>
    %153 = tpu.matmul %150, %151, %cst_48 {dimension_numbers = #tpu.dot_dimension_numbers<[1], [1], [0], [0], [0, 0, 1, 0], [], []>} : vector<10x8xf32>, vector<10x8xf32>, vector<10x10xf32> -> vector<10x10xf32>
    %cst_49 = arith.constant 0.353553385 : f32
    %154 = vector.broadcast %cst_49 : f32 to vector<10x10xf32>
    %155 = arith.mulf %153, %154 : vector<10x10xf32>
    %156 = vector.extract_strided_slice %38 {offsets = [1, 0], sizes = [1, 10], strides = [1, 1]} : vector<2x10xf32> to vector<1x10xf32>
    %157 = vector.broadcast %156 : vector<1x10xf32> to vector<10x10xf32>
    %158 = arith.addf %155, %157 : vector<10x10xf32>
    %cst_50 = arith.constant dense<0xFF800000> : vector<10xf32>
    %159 = vector.multi_reduction <maximumf>, %158, %cst_50 [1] : vector<10x10xf32> to vector<10xf32>
    %160 = vector.shape_cast %159 : vector<10xf32> to vector<10x1xf32>
    %161 = vector.broadcast %160 : vector<10x1xf32> to vector<10x10xf32>
    %162 = arith.subf %158, %161 : vector<10x10xf32>
    %163 = math.exp %162 : vector<10x10xf32>
    %cst_51 = arith.constant dense<0.000000e+00> : vector<10xf32>
    %164 = vector.multi_reduction <add>, %163, %cst_51 [1] : vector<10x10xf32> to vector<10xf32>
    %165 = vector.shape_cast %164 : vector<10xf32> to vector<10x1xf32>
    %166 = tpu.reciprocal %165 {approx = true} : vector<10x1xf32> -> vector<10x1xf32>
    %167 = vector.broadcast %166 : vector<10x1xf32> to vector<10x10xf32>
    %168 = arith.mulf %163, %167 : vector<10x10xf32>
    %cst_52 = arith.constant dense<0.000000e+00> : vector<10x8xf32>
    %169 = tpu.matmul %168, %152, %cst_52 {dimension_numbers = #tpu.dot_dimension_numbers<[1], [0], [0], [1], [0, 0, 1, 1], [], []>} : vector<10x10xf32>, vector<10x8xf32>, vector<10x8xf32> -> vector<10x8xf32>
    %170 = vector.extract_strided_slice %127 {offsets = [0, 16], sizes = [10, 8], strides = [1, 1]} : vector<10x32xf32> to vector<10x8xf32>
    %171 = vector.extract_strided_slice %128 {offsets = [0, 16], sizes = [10, 8], strides = [1, 1]} : vector<10x32xf32> to vector<10x8xf32>
    %172 = vector.extract_strided_slice %129 {offsets = [0, 16], sizes = [10, 8], strides = [1, 1]} : vector<10x32xf32> to vector<10x8xf32>
    %cst_53 = arith.constant dense<0.000000e+00> : vector<10x10xf32>
    %173 = tpu.matmul %170, %171, %cst_53 {dimension_numbers = #tpu.dot_dimension_numbers<[1], [1], [0], [0], [0, 0, 1, 0], [], []>} : vector<10x8xf32>, vector<10x8xf32>, vector<10x10xf32> -> vector<10x10xf32>
    %cst_54 = arith.constant 0.353553385 : f32
    %174 = vector.broadcast %cst_54 : f32 to vector<10x10xf32>
    %175 = arith.mulf %173, %174 : vector<10x10xf32>
    %176 = vector.extract_strided_slice %38 {offsets = [1, 0], sizes = [1, 10], strides = [1, 1]} : vector<2x10xf32> to vector<1x10xf32>
    %177 = vector.broadcast %176 : vector<1x10xf32> to vector<10x10xf32>
    %178 = arith.addf %175, %177 : vector<10x10xf32>
    %cst_55 = arith.constant dense<0xFF800000> : vector<10xf32>
    %179 = vector.multi_reduction <maximumf>, %178, %cst_55 [1] : vector<10x10xf32> to vector<10xf32>
    %180 = vector.shape_cast %179 : vector<10xf32> to vector<10x1xf32>
    %181 = vector.broadcast %180 : vector<10x1xf32> to vector<10x10xf32>
    %182 = arith.subf %178, %181 : vector<10x10xf32>
    %183 = math.exp %182 : vector<10x10xf32>
    %cst_56 = arith.constant dense<0.000000e+00> : vector<10xf32>
    %184 = vector.multi_reduction <add>, %183, %cst_56 [1] : vector<10x10xf32> to vector<10xf32>
    %185 = vector.shape_cast %184 : vector<10xf32> to vector<10x1xf32>
    %186 = tpu.reciprocal %185 {approx = true} : vector<10x1xf32> -> vector<10x1xf32>
    %187 = vector.broadcast %186 : vector<10x1xf32> to vector<10x10xf32>
    %188 = arith.mulf %183, %187 : vector<10x10xf32>
    %cst_57 = arith.constant dense<0.000000e+00> : vector<10x8xf32>
    %189 = tpu.matmul %188, %172, %cst_57 {dimension_numbers = #tpu.dot_dimension_numbers<[1], [0], [0], [1], [0, 0, 1, 1], [], []>} : vector<10x10xf32>, vector<10x8xf32>, vector<10x8xf32> -> vector<10x8xf32>
    %190 = vector.extract_strided_slice %127 {offsets = [0, 24], sizes = [10, 8], strides = [1, 1]} : vector<10x32xf32> to vector<10x8xf32>
    %191 = vector.extract_strided_slice %128 {offsets = [0, 24], sizes = [10, 8], strides = [1, 1]} : vector<10x32xf32> to vector<10x8xf32>
    %192 = vector.extract_strided_slice %129 {offsets = [0, 24], sizes = [10, 8], strides = [1, 1]} : vector<10x32xf32> to vector<10x8xf32>
    %cst_58 = arith.constant dense<0.000000e+00> : vector<10x10xf32>
    %193 = tpu.matmul %190, %191, %cst_58 {dimension_numbers = #tpu.dot_dimension_numbers<[1], [1], [0], [0], [0, 0, 1, 0], [], []>} : vector<10x8xf32>, vector<10x8xf32>, vector<10x10xf32> -> vector<10x10xf32>
    %cst_59 = arith.constant 0.353553385 : f32
    %194 = vector.broadcast %cst_59 : f32 to vector<10x10xf32>
    %195 = arith.mulf %193, %194 : vector<10x10xf32>
    %196 = vector.extract_strided_slice %38 {offsets = [1, 0], sizes = [1, 10], strides = [1, 1]} : vector<2x10xf32> to vector<1x10xf32>
    %197 = vector.broadcast %196 : vector<1x10xf32> to vector<10x10xf32>
    %198 = arith.addf %195, %197 : vector<10x10xf32>
    %cst_60 = arith.constant dense<0xFF800000> : vector<10xf32>
    %199 = vector.multi_reduction <maximumf>, %198, %cst_60 [1] : vector<10x10xf32> to vector<10xf32>
    %200 = vector.shape_cast %199 : vector<10xf32> to vector<10x1xf32>
    %201 = vector.broadcast %200 : vector<10x1xf32> to vector<10x10xf32>
    %202 = arith.subf %198, %201 : vector<10x10xf32>
    %203 = math.exp %202 : vector<10x10xf32>
    %cst_61 = arith.constant dense<0.000000e+00> : vector<10xf32>
    %204 = vector.multi_reduction <add>, %203, %cst_61 [1] : vector<10x10xf32> to vector<10xf32>
    %205 = vector.shape_cast %204 : vector<10xf32> to vector<10x1xf32>
    %206 = tpu.reciprocal %205 {approx = true} : vector<10x1xf32> -> vector<10x1xf32>
    %207 = vector.broadcast %206 : vector<10x1xf32> to vector<10x10xf32>
    %208 = arith.mulf %203, %207 : vector<10x10xf32>
    %cst_62 = arith.constant dense<0.000000e+00> : vector<10x8xf32>
    %209 = tpu.matmul %208, %192, %cst_62 {dimension_numbers = #tpu.dot_dimension_numbers<[1], [0], [0], [1], [0, 0, 1, 1], [], []>} : vector<10x10xf32>, vector<10x8xf32>, vector<10x8xf32> -> vector<10x8xf32>
    %210 = tpu.concatenate %149, %169, %189, %209 in 1 : vector<10x8xf32>, vector<10x8xf32>, vector<10x8xf32>, vector<10x8xf32> -> vector<10x32xf32>
    %211 = tpu.concatenate %126, %210 in 0 : vector<10x32xf32>, vector<10x32xf32> -> vector<20x32xf32>
    %cst_63 = arith.constant dense<0.000000e+00> : vector<20x32xf32>
    %212 = tpu.matmul %211, %41, %cst_63 {dimension_numbers = #tpu.dot_dimension_numbers<[1], [0], [0], [1], [0, 0, 1, 1], [], []>} : vector<20x32xf32>, vector<32x32xf32>, vector<20x32xf32> -> vector<20x32xf32>
    %213 = vector.broadcast %42 : vector<1x32xf32> to vector<20x32xf32>
    %214 = arith.addf %212, %213 : vector<20x32xf32>
    %215 = arith.addf %17, %214 : vector<20x32xf32>
    %c112 = arith.constant 112 : index
    %c0_64 = arith.constant 0 : index
    %216 = vector.load %arg5[%c112, %c0_64] : memref<464x32xf32, #tpu.memory_space<vmem>>, vector<1x32xf32>
    %c120 = arith.constant 120 : index
    %c0_65 = arith.constant 0 : index
    %217 = vector.load %arg5[%c120, %c0_65] : memref<464x32xf32, #tpu.memory_space<vmem>>, vector<1x32xf32>
    %cst_66 = arith.constant dense<0.000000e+00> : vector<20xf32>
    %218 = vector.multi_reduction <add>, %215, %cst_66 [1] : vector<20x32xf32> to vector<20xf32>
    %219 = vector.shape_cast %218 : vector<20xf32> to vector<20x1xf32>
    %cst_67 = arith.constant 3.200000e+01 : f32
    %220 = vector.broadcast %cst_67 : f32 to vector<20x1xf32>
    %221 = arith.divf %219, %220 : vector<20x1xf32>
    %222 = vector.broadcast %221 : vector<20x1xf32> to vector<20x32xf32>
    %223 = arith.subf %215, %222 : vector<20x32xf32>
    %224 = arith.mulf %223, %223 : vector<20x32xf32>
    %cst_68 = arith.constant dense<0.000000e+00> : vector<20xf32>
    %225 = vector.multi_reduction <add>, %224, %cst_68 [1] : vector<20x32xf32> to vector<20xf32>
    %226 = vector.shape_cast %225 : vector<20xf32> to vector<20x1xf32>
    %cst_69 = arith.constant 3.200000e+01 : f32
    %227 = vector.broadcast %cst_69 : f32 to vector<20x1xf32>
    %228 = arith.divf %226, %227 : vector<20x1xf32>
    %cst_70 = arith.constant 9.99999974E-6 : f32
    %229 = vector.broadcast %cst_70 : f32 to vector<20x1xf32>
    %230 = arith.addf %228, %229 : vector<20x1xf32>
    %231 = math.rsqrt %230 : vector<20x1xf32>
    %232 = vector.broadcast %231 : vector<20x1xf32> to vector<20x32xf32>
    %233 = arith.mulf %223, %232 : vector<20x32xf32>
    %234 = vector.broadcast %216 : vector<1x32xf32> to vector<20x32xf32>
    %235 = arith.mulf %233, %234 : vector<20x32xf32>
    %236 = vector.broadcast %217 : vector<1x32xf32> to vector<20x32xf32>
    %237 = arith.addf %235, %236 : vector<20x32xf32>
    %c0_71 = arith.constant 0 : index
    %c0_72 = arith.constant 0 : index
    %238 = vector.load %arg6[%c0_71, %c0_72] : memref<120x64xf32, #tpu.memory_space<vmem>>, vector<32x64xf32>
    %cst_73 = arith.constant dense<0.000000e+00> : vector<20x64xf32>
    %239 = tpu.matmul %237, %238, %cst_73 {dimension_numbers = #tpu.dot_dimension_numbers<[1], [0], [0], [1], [0, 0, 1, 1], [], []>} : vector<20x32xf32>, vector<32x64xf32>, vector<20x64xf32> -> vector<20x64xf32>
    %c32_74 = arith.constant 32 : index
    %c0_75 = arith.constant 0 : index
    %240 = vector.load %arg6[%c32_74, %c0_75] : memref<120x64xf32, #tpu.memory_space<vmem>>, vector<1x64xf32>
    %241 = vector.broadcast %240 : vector<1x64xf32> to vector<20x64xf32>
    %242 = arith.addf %239, %241 : vector<20x64xf32>
    %cst_76 = arith.constant 0.000000e+00 : f32
    %243 = vector.broadcast %cst_76 : f32 to vector<20x64xf32>
    %244 = arith.maximumf %242, %243 : vector<20x64xf32>
    %c128 = arith.constant 128 : index
    %c0_77 = arith.constant 0 : index
    %245 = vector.load %arg5[%c128, %c0_77] : memref<464x32xf32, #tpu.memory_space<vmem>>, vector<64x32xf32>
    %cst_78 = arith.constant dense<0.000000e+00> : vector<20x32xf32>
    %246 = tpu.matmul %244, %245, %cst_78 {dimension_numbers = #tpu.dot_dimension_numbers<[1], [0], [0], [1], [0, 0, 1, 1], [], []>} : vector<20x64xf32>, vector<64x32xf32>, vector<20x32xf32> -> vector<20x32xf32>
    %c192 = arith.constant 192 : index
    %c0_79 = arith.constant 0 : index
    %247 = vector.load %arg5[%c192, %c0_79] : memref<464x32xf32, #tpu.memory_space<vmem>>, vector<1x32xf32>
    %248 = vector.broadcast %247 : vector<1x32xf32> to vector<20x32xf32>
    %249 = arith.addf %246, %248 : vector<20x32xf32>
    %250 = arith.addf %237, %249 : vector<20x32xf32>
    %c200 = arith.constant 200 : index
    %c0_80 = arith.constant 0 : index
    %251 = vector.load %arg5[%c200, %c0_80] : memref<464x32xf32, #tpu.memory_space<vmem>>, vector<1x32xf32>
    %c208 = arith.constant 208 : index
    %c0_81 = arith.constant 0 : index
    %252 = vector.load %arg5[%c208, %c0_81] : memref<464x32xf32, #tpu.memory_space<vmem>>, vector<1x32xf32>
    %cst_82 = arith.constant dense<0.000000e+00> : vector<20xf32>
    %253 = vector.multi_reduction <add>, %250, %cst_82 [1] : vector<20x32xf32> to vector<20xf32>
    %254 = vector.shape_cast %253 : vector<20xf32> to vector<20x1xf32>
    %cst_83 = arith.constant 3.200000e+01 : f32
    %255 = vector.broadcast %cst_83 : f32 to vector<20x1xf32>
    %256 = arith.divf %254, %255 : vector<20x1xf32>
    %257 = vector.broadcast %256 : vector<20x1xf32> to vector<20x32xf32>
    %258 = arith.subf %250, %257 : vector<20x32xf32>
    %259 = arith.mulf %258, %258 : vector<20x32xf32>
    %cst_84 = arith.constant dense<0.000000e+00> : vector<20xf32>
    %260 = vector.multi_reduction <add>, %259, %cst_84 [1] : vector<20x32xf32> to vector<20xf32>
    %261 = vector.shape_cast %260 : vector<20xf32> to vector<20x1xf32>
    %cst_85 = arith.constant 3.200000e+01 : f32
    %262 = vector.broadcast %cst_85 : f32 to vector<20x1xf32>
    %263 = arith.divf %261, %262 : vector<20x1xf32>
    %cst_86 = arith.constant 9.99999974E-6 : f32
    %264 = vector.broadcast %cst_86 : f32 to vector<20x1xf32>
    %265 = arith.addf %263, %264 : vector<20x1xf32>
    %266 = math.rsqrt %265 : vector<20x1xf32>
    %267 = vector.broadcast %266 : vector<20x1xf32> to vector<20x32xf32>
    %268 = arith.mulf %258, %267 : vector<20x32xf32>
    %269 = vector.broadcast %251 : vector<1x32xf32> to vector<20x32xf32>
    %270 = arith.mulf %268, %269 : vector<20x32xf32>
    %271 = vector.broadcast %252 : vector<1x32xf32> to vector<20x32xf32>
    %272 = arith.addf %270, %271 : vector<20x32xf32>
    %273 = vector.extract_strided_slice %272 {offsets = [0, 0], sizes = [1, 32], strides = [1, 1]} : vector<20x32xf32> to vector<1x32xf32>
    %274 = vector.extract_strided_slice %272 {offsets = [10, 0], sizes = [1, 32], strides = [1, 1]} : vector<20x32xf32> to vector<1x32xf32>
    %275 = tpu.concatenate %273, %274 in 0 : vector<1x32xf32>, vector<1x32xf32> -> vector<2x32xf32>
    %c40_87 = arith.constant 40 : index
    %c0_88 = arith.constant 0 : index
    %276 = vector.load %arg6[%c40_87, %c0_88] : memref<120x64xf32, #tpu.memory_space<vmem>>, vector<32x64xf32>
    %cst_89 = arith.constant dense<0.000000e+00> : vector<2x64xf32>
    %277 = tpu.matmul %275, %276, %cst_89 {dimension_numbers = #tpu.dot_dimension_numbers<[1], [0], [0], [1], [0, 0, 1, 1], [], []>} : vector<2x32xf32>, vector<32x64xf32>, vector<2x64xf32> -> vector<2x64xf32>
    %c72_90 = arith.constant 72 : index
    %c0_91 = arith.constant 0 : index
    %278 = vector.load %arg6[%c72_90, %c0_91] : memref<120x64xf32, #tpu.memory_space<vmem>>, vector<1x64xf32>
    %279 = vector.broadcast %278 : vector<1x64xf32> to vector<2x64xf32>
    %280 = arith.addf %277, %279 : vector<2x64xf32>
    %c0_92 = arith.constant 0 : index
    %c0_93 = arith.constant 0 : index
    %281 = vector.load %arg8[%c0_92, %c0_93] : memref<2x64xf32, #tpu.memory_space<vmem>>, vector<2x64xf32>
    tpu.vector_store %arg8[%c0_92, %c0_93], %280 {strides = array<i32>} : memref<2x64xf32, #tpu.memory_space<vmem>>, vector<2x64xf32>,
    %282 = vector.extract_strided_slice %280 {offsets = [0, 0], sizes = [2, 32], strides = [1, 1]} : vector<2x64xf32> to vector<2x32xf32>
    %283 = vector.extract_strided_slice %280 {offsets = [0, 32], sizes = [2, 32], strides = [1, 1]} : vector<2x64xf32> to vector<2x32xf32>
    %cst_94 = arith.constant 5.000000e-01 : f32
    %284 = vector.broadcast %cst_94 : f32 to vector<2x32xf32>
    %285 = arith.mulf %284, %283 : vector<2x32xf32>
    %286 = math.exp %285 : vector<2x32xf32>
    %c0_95 = arith.constant 0 : index
    %c0_96 = arith.constant 0 : index
    %287 = vector.load %arg4[%c0_95, %c0_96] : memref<2x32xf32, #tpu.memory_space<vmem>>, vector<2x32xf32>
    %288 = arith.mulf %286, %287 : vector<2x32xf32>
    %289 = arith.addf %282, %288 : vector<2x32xf32>
    %c216 = arith.constant 216 : index
    %c0_97 = arith.constant 0 : index
    %290 = vector.load %arg5[%c216, %c0_97] : memref<464x32xf32, #tpu.memory_space<vmem>>, vector<32x32xf32>
    %cst_98 = arith.constant dense<0.000000e+00> : vector<2x32xf32>
    %291 = tpu.matmul %289, %290, %cst_98 {dimension_numbers = #tpu.dot_dimension_numbers<[1], [0], [0], [1], [0, 0, 1, 1], [], []>} : vector<2x32xf32>, vector<32x32xf32>, vector<2x32xf32> -> vector<2x32xf32>
    %c248 = arith.constant 248 : index
    %c0_99 = arith.constant 0 : index
    %292 = vector.load %arg5[%c248, %c0_99] : memref<464x32xf32, #tpu.memory_space<vmem>>, vector<1x32xf32>
    %293 = vector.broadcast %292 : vector<1x32xf32> to vector<2x32xf32>
    %294 = arith.addf %291, %293 : vector<2x32xf32>
    %c0_100 = arith.constant 0 : index
    %c0_101 = arith.constant 0 : index
    %295 = vector.load %arg3[%c0_100, %c0_101] : memref<8x32xf32, #tpu.memory_space<vmem>>, vector<8x32xf32>
    %296 = vector.extract_strided_slice %294 {offsets = [0, 0], sizes = [1, 32], strides = [1, 1]} : vector<2x32xf32> to vector<1x32xf32>
    %297 = vector.extract_strided_slice %295 {offsets = [0, 0], sizes = [4, 32], strides = [1, 1]} : vector<8x32xf32> to vector<4x32xf32>
    %298 = vector.extract_strided_slice %294 {offsets = [1, 0], sizes = [1, 32], strides = [1, 1]} : vector<2x32xf32> to vector<1x32xf32>
    %299 = vector.extract_strided_slice %295 {offsets = [4, 0], sizes = [4, 32], strides = [1, 1]} : vector<8x32xf32> to vector<4x32xf32>
    %300 = tpu.concatenate %296, %297, %298, %299 in 0 : vector<1x32xf32>, vector<4x32xf32>, vector<1x32xf32>, vector<4x32xf32> -> vector<10x32xf32>
    %c0_102 = arith.constant 0 : index
    %c0_103 = arith.constant 0 : index
    %301 = vector.load %arg9[%c0_102, %c0_103] : memref<10x32xf32, #tpu.memory_space<vmem>>, vector<10x32xf32>
    tpu.vector_store %arg9[%c0_102, %c0_103], %300 {strides = array<i32>} : memref<10x32xf32, #tpu.memory_space<vmem>>, vector<10x32xf32>,
    %c264 = arith.constant 264 : index
    %c0_104 = arith.constant 0 : index
    %302 = vector.load %arg5[%c264, %c0_104] : memref<464x32xf32, #tpu.memory_space<vmem>>, vector<2x32xf32>
    %303 = vector.extract_strided_slice %302 {offsets = [0, 0], sizes = [1, 32], strides = [1, 1]} : vector<2x32xf32> to vector<1x32xf32>
    %c272 = arith.constant 272 : index
    %c0_105 = arith.constant 0 : index
    %304 = vector.load %arg5[%c272, %c0_105] : memref<464x32xf32, #tpu.memory_space<vmem>>, vector<4x32xf32>
    %305 = tpu.concatenate %303, %304 in 0 : vector<1x32xf32>, vector<4x32xf32> -> vector<5x32xf32>
    %306 = tpu.concatenate %305, %305 in 0 : vector<5x32xf32>, vector<5x32xf32> -> vector<10x32xf32>
    %c40_106 = arith.constant 40 : index
    %c0_107 = arith.constant 0 : index
    %307 = vector.load %arg7[%c40_106, %c0_107] : memref<80x96xf32, #tpu.memory_space<vmem>>, vector<32x96xf32>
    %c72_108 = arith.constant 72 : index
    %c0_109 = arith.constant 0 : index
    %308 = vector.load %arg7[%c72_108, %c0_109] : memref<80x96xf32, #tpu.memory_space<vmem>>, vector<1x96xf32>
    %c256 = arith.constant 256 : index
    %c0_110 = arith.constant 0 : index
    %309 = vector.load %arg5[%c256, %c0_110] : memref<464x32xf32, #tpu.memory_space<vmem>>, vector<8x32xf32>
    %310 = vector.extract_strided_slice %307 {offsets = [0, 0], sizes = [32, 32], strides = [1, 1]} : vector<32x96xf32> to vector<32x32xf32>
    %cst_111 = arith.constant dense<0.000000e+00> : vector<8x32xf32>
    %311 = tpu.matmul %309, %310, %cst_111 {dimension_numbers = #tpu.dot_dimension_numbers<[1], [0], [0], [1], [0, 0, 1, 1], [], []>} : vector<8x32xf32>, vector<32x32xf32>, vector<8x32xf32> -> vector<8x32xf32>
    %312 = vector.extract_strided_slice %308 {offsets = [0, 0], sizes = [1, 32], strides = [1, 1]} : vector<1x96xf32> to vector<1x32xf32>
    %313 = vector.broadcast %312 : vector<1x32xf32> to vector<8x32xf32>
    %314 = arith.addf %311, %313 : vector<8x32xf32>
    %315 = tpu.concatenate %314, %314 in 0 : vector<8x32xf32>, vector<8x32xf32> -> vector<16x32xf32>
    %316 = arith.addf %300, %306 : vector<10x32xf32>
    %317 = vector.extract_strided_slice %307 {offsets = [0, 32], sizes = [32, 32], strides = [1, 1]} : vector<32x96xf32> to vector<32x32xf32>
    %cst_112 = arith.constant dense<0.000000e+00> : vector<10x32xf32>
    %318 = tpu.matmul %316, %317, %cst_112 {dimension_numbers = #tpu.dot_dimension_numbers<[1], [0], [0], [1], [0, 0, 1, 1], [], []>} : vector<10x32xf32>, vector<32x32xf32>, vector<10x32xf32> -> vector<10x32xf32>
    %319 = vector.extract_strided_slice %308 {offsets = [0, 32], sizes = [1, 32], strides = [1, 1]} : vector<1x96xf32> to vector<1x32xf32>
    %320 = vector.broadcast %319 : vector<1x32xf32> to vector<10x32xf32>
    %321 = arith.addf %318, %320 : vector<10x32xf32>
    %322 = vector.extract_strided_slice %307 {offsets = [0, 64], sizes = [32, 32], strides = [1, 1]} : vector<32x96xf32> to vector<32x32xf32>
    %cst_113 = arith.constant dense<0.000000e+00> : vector<10x32xf32>
    %323 = tpu.matmul %300, %322, %cst_113 {dimension_numbers = #tpu.dot_dimension_numbers<[1], [0], [0], [1], [0, 0, 1, 1], [], []>} : vector<10x32xf32>, vector<32x32xf32>, vector<10x32xf32> -> vector<10x32xf32>
    %324 = vector.extract_strided_slice %308 {offsets = [0, 64], sizes = [1, 32], strides = [1, 1]} : vector<1x96xf32> to vector<1x32xf32>
    %325 = vector.broadcast %324 : vector<1x32xf32> to vector<10x32xf32>
    %326 = arith.addf %323, %325 : vector<10x32xf32>
    %c280 = arith.constant 280 : index
    %c0_114 = arith.constant 0 : index
    %327 = vector.load %arg5[%c280, %c0_114] : memref<464x32xf32, #tpu.memory_space<vmem>>, vector<32x32xf32>
    %c312 = arith.constant 312 : index
    %c0_115 = arith.constant 0 : index
    %328 = vector.load %arg5[%c312, %c0_115] : memref<464x32xf32, #tpu.memory_space<vmem>>, vector<1x32xf32>
    %329 = vector.extract_strided_slice %315 {offsets = [0, 0], sizes = [8, 32], strides = [1, 1]} : vector<16x32xf32> to vector<8x32xf32>
    %330 = vector.extract_strided_slice %321 {offsets = [0, 0], sizes = [5, 32], strides = [1, 1]} : vector<10x32xf32> to vector<5x32xf32>
    %331 = vector.extract_strided_slice %326 {offsets = [0, 0], sizes = [5, 32], strides = [1, 1]} : vector<10x32xf32> to vector<5x32xf32>
    %332 = vector.extract_strided_slice %329 {offsets = [0, 0], sizes = [8, 8], strides = [1, 1]} : vector<8x32xf32> to vector<8x8xf32>
    %333 = vector.extract_strided_slice %330 {offsets = [0, 0], sizes = [5, 8], strides = [1, 1]} : vector<5x32xf32> to vector<5x8xf32>
    %334 = vector.extract_strided_slice %331 {offsets = [0, 0], sizes = [5, 8], strides = [1, 1]} : vector<5x32xf32> to vector<5x8xf32>
    %cst_116 = arith.constant dense<0.000000e+00> : vector<8x5xf32>
    %335 = tpu.matmul %332, %333, %cst_116 {dimension_numbers = #tpu.dot_dimension_numbers<[1], [1], [0], [0], [0, 0, 1, 0], [], []>} : vector<8x8xf32>, vector<5x8xf32>, vector<8x5xf32> -> vector<8x5xf32>
    %cst_117 = arith.constant 0.353553385 : f32
    %336 = vector.broadcast %cst_117 : f32 to vector<8x5xf32>
    %337 = arith.mulf %335, %336 : vector<8x5xf32>
    %cst_118 = arith.constant dense<0xFF800000> : vector<8xf32>
    %338 = vector.multi_reduction <maximumf>, %337, %cst_118 [1] : vector<8x5xf32> to vector<8xf32>
    %339 = vector.shape_cast %338 : vector<8xf32> to vector<8x1xf32>
    %340 = vector.broadcast %339 : vector<8x1xf32> to vector<8x5xf32>
    %341 = arith.subf %337, %340 : vector<8x5xf32>
    %342 = math.exp %341 : vector<8x5xf32>
    %cst_119 = arith.constant dense<0.000000e+00> : vector<8xf32>
    %343 = vector.multi_reduction <add>, %342, %cst_119 [1] : vector<8x5xf32> to vector<8xf32>
    %344 = vector.shape_cast %343 : vector<8xf32> to vector<8x1xf32>
    %345 = tpu.reciprocal %344 {approx = true} : vector<8x1xf32> -> vector<8x1xf32>
    %346 = vector.broadcast %345 : vector<8x1xf32> to vector<8x5xf32>
    %347 = arith.mulf %342, %346 : vector<8x5xf32>
    %cst_120 = arith.constant dense<0.000000e+00> : vector<8x8xf32>
    %348 = tpu.matmul %347, %334, %cst_120 {dimension_numbers = #tpu.dot_dimension_numbers<[1], [0], [0], [1], [0, 0, 1, 1], [], []>} : vector<8x5xf32>, vector<5x8xf32>, vector<8x8xf32> -> vector<8x8xf32>
    %349 = vector.extract_strided_slice %329 {offsets = [0, 8], sizes = [8, 8], strides = [1, 1]} : vector<8x32xf32> to vector<8x8xf32>
    %350 = vector.extract_strided_slice %330 {offsets = [0, 8], sizes = [5, 8], strides = [1, 1]} : vector<5x32xf32> to vector<5x8xf32>
    %351 = vector.extract_strided_slice %331 {offsets = [0, 8], sizes = [5, 8], strides = [1, 1]} : vector<5x32xf32> to vector<5x8xf32>
    %cst_121 = arith.constant dense<0.000000e+00> : vector<8x5xf32>
    %352 = tpu.matmul %349, %350, %cst_121 {dimension_numbers = #tpu.dot_dimension_numbers<[1], [1], [0], [0], [0, 0, 1, 0], [], []>} : vector<8x8xf32>, vector<5x8xf32>, vector<8x5xf32> -> vector<8x5xf32>
    %cst_122 = arith.constant 0.353553385 : f32
    %353 = vector.broadcast %cst_122 : f32 to vector<8x5xf32>
    %354 = arith.mulf %352, %353 : vector<8x5xf32>
    %cst_123 = arith.constant dense<0xFF800000> : vector<8xf32>
    %355 = vector.multi_reduction <maximumf>, %354, %cst_123 [1] : vector<8x5xf32> to vector<8xf32>
    %356 = vector.shape_cast %355 : vector<8xf32> to vector<8x1xf32>
    %357 = vector.broadcast %356 : vector<8x1xf32> to vector<8x5xf32>
    %358 = arith.subf %354, %357 : vector<8x5xf32>
    %359 = math.exp %358 : vector<8x5xf32>
    %cst_124 = arith.constant dense<0.000000e+00> : vector<8xf32>
    %360 = vector.multi_reduction <add>, %359, %cst_124 [1] : vector<8x5xf32> to vector<8xf32>
    %361 = vector.shape_cast %360 : vector<8xf32> to vector<8x1xf32>
    %362 = tpu.reciprocal %361 {approx = true} : vector<8x1xf32> -> vector<8x1xf32>
    %363 = vector.broadcast %362 : vector<8x1xf32> to vector<8x5xf32>
    %364 = arith.mulf %359, %363 : vector<8x5xf32>
    %cst_125 = arith.constant dense<0.000000e+00> : vector<8x8xf32>
    %365 = tpu.matmul %364, %351, %cst_125 {dimension_numbers = #tpu.dot_dimension_numbers<[1], [0], [0], [1], [0, 0, 1, 1], [], []>} : vector<8x5xf32>, vector<5x8xf32>, vector<8x8xf32> -> vector<8x8xf32>
    %366 = vector.extract_strided_slice %329 {offsets = [0, 16], sizes = [8, 8], strides = [1, 1]} : vector<8x32xf32> to vector<8x8xf32>
    %367 = vector.extract_strided_slice %330 {offsets = [0, 16], sizes = [5, 8], strides = [1, 1]} : vector<5x32xf32> to vector<5x8xf32>
    %368 = vector.extract_strided_slice %331 {offsets = [0, 16], sizes = [5, 8], strides = [1, 1]} : vector<5x32xf32> to vector<5x8xf32>
    %cst_126 = arith.constant dense<0.000000e+00> : vector<8x5xf32>
    %369 = tpu.matmul %366, %367, %cst_126 {dimension_numbers = #tpu.dot_dimension_numbers<[1], [1], [0], [0], [0, 0, 1, 0], [], []>} : vector<8x8xf32>, vector<5x8xf32>, vector<8x5xf32> -> vector<8x5xf32>
    %cst_127 = arith.constant 0.353553385 : f32
    %370 = vector.broadcast %cst_127 : f32 to vector<8x5xf32>
    %371 = arith.mulf %369, %370 : vector<8x5xf32>
    %cst_128 = arith.constant dense<0xFF800000> : vector<8xf32>
    %372 = vector.multi_reduction <maximumf>, %371, %cst_128 [1] : vector<8x5xf32> to vector<8xf32>
    %373 = vector.shape_cast %372 : vector<8xf32> to vector<8x1xf32>
    %374 = vector.broadcast %373 : vector<8x1xf32> to vector<8x5xf32>
    %375 = arith.subf %371, %374 : vector<8x5xf32>
    %376 = math.exp %375 : vector<8x5xf32>
    %cst_129 = arith.constant dense<0.000000e+00> : vector<8xf32>
    %377 = vector.multi_reduction <add>, %376, %cst_129 [1] : vector<8x5xf32> to vector<8xf32>
    %378 = vector.shape_cast %377 : vector<8xf32> to vector<8x1xf32>
    %379 = tpu.reciprocal %378 {approx = true} : vector<8x1xf32> -> vector<8x1xf32>
    %380 = vector.broadcast %379 : vector<8x1xf32> to vector<8x5xf32>
    %381 = arith.mulf %376, %380 : vector<8x5xf32>
    %cst_130 = arith.constant dense<0.000000e+00> : vector<8x8xf32>
    %382 = tpu.matmul %381, %368, %cst_130 {dimension_numbers = #tpu.dot_dimension_numbers<[1], [0], [0], [1], [0, 0, 1, 1], [], []>} : vector<8x5xf32>, vector<5x8xf32>, vector<8x8xf32> -> vector<8x8xf32>
    %383 = vector.extract_strided_slice %329 {offsets = [0, 24], sizes = [8, 8], strides = [1, 1]} : vector<8x32xf32> to vector<8x8xf32>
    %384 = vector.extract_strided_slice %330 {offsets = [0, 24], sizes = [5, 8], strides = [1, 1]} : vector<5x32xf32> to vector<5x8xf32>
    %385 = vector.extract_strided_slice %331 {offsets = [0, 24], sizes = [5, 8], strides = [1, 1]} : vector<5x32xf32> to vector<5x8xf32>
    %cst_131 = arith.constant dense<0.000000e+00> : vector<8x5xf32>
    %386 = tpu.matmul %383, %384, %cst_131 {dimension_numbers = #tpu.dot_dimension_numbers<[1], [1], [0], [0], [0, 0, 1, 0], [], []>} : vector<8x8xf32>, vector<5x8xf32>, vector<8x5xf32> -> vector<8x5xf32>
    %cst_132 = arith.constant 0.353553385 : f32
    %387 = vector.broadcast %cst_132 : f32 to vector<8x5xf32>
    %388 = arith.mulf %386, %387 : vector<8x5xf32>
    %cst_133 = arith.constant dense<0xFF800000> : vector<8xf32>
    %389 = vector.multi_reduction <maximumf>, %388, %cst_133 [1] : vector<8x5xf32> to vector<8xf32>
    %390 = vector.shape_cast %389 : vector<8xf32> to vector<8x1xf32>
    %391 = vector.broadcast %390 : vector<8x1xf32> to vector<8x5xf32>
    %392 = arith.subf %388, %391 : vector<8x5xf32>
    %393 = math.exp %392 : vector<8x5xf32>
    %cst_134 = arith.constant dense<0.000000e+00> : vector<8xf32>
    %394 = vector.multi_reduction <add>, %393, %cst_134 [1] : vector<8x5xf32> to vector<8xf32>
    %395 = vector.shape_cast %394 : vector<8xf32> to vector<8x1xf32>
    %396 = tpu.reciprocal %395 {approx = true} : vector<8x1xf32> -> vector<8x1xf32>
    %397 = vector.broadcast %396 : vector<8x1xf32> to vector<8x5xf32>
    %398 = arith.mulf %393, %397 : vector<8x5xf32>
    %cst_135 = arith.constant dense<0.000000e+00> : vector<8x8xf32>
    %399 = tpu.matmul %398, %385, %cst_135 {dimension_numbers = #tpu.dot_dimension_numbers<[1], [0], [0], [1], [0, 0, 1, 1], [], []>} : vector<8x5xf32>, vector<5x8xf32>, vector<8x8xf32> -> vector<8x8xf32>
    %400 = tpu.concatenate %348, %365, %382, %399 in 1 : vector<8x8xf32>, vector<8x8xf32>, vector<8x8xf32>, vector<8x8xf32> -> vector<8x32xf32>
    %401 = vector.extract_strided_slice %315 {offsets = [8, 0], sizes = [8, 32], strides = [1, 1]} : vector<16x32xf32> to vector<8x32xf32>
    %402 = vector.extract_strided_slice %321 {offsets = [5, 0], sizes = [5, 32], strides = [1, 1]} : vector<10x32xf32> to vector<5x32xf32>
    %403 = vector.extract_strided_slice %326 {offsets = [5, 0], sizes = [5, 32], strides = [1, 1]} : vector<10x32xf32> to vector<5x32xf32>
    %404 = vector.extract_strided_slice %401 {offsets = [0, 0], sizes = [8, 8], strides = [1, 1]} : vector<8x32xf32> to vector<8x8xf32>
    %405 = vector.extract_strided_slice %402 {offsets = [0, 0], sizes = [5, 8], strides = [1, 1]} : vector<5x32xf32> to vector<5x8xf32>
    %406 = vector.extract_strided_slice %403 {offsets = [0, 0], sizes = [5, 8], strides = [1, 1]} : vector<5x32xf32> to vector<5x8xf32>
    %cst_136 = arith.constant dense<0.000000e+00> : vector<8x5xf32>
    %407 = tpu.matmul %404, %405, %cst_136 {dimension_numbers = #tpu.dot_dimension_numbers<[1], [1], [0], [0], [0, 0, 1, 0], [], []>} : vector<8x8xf32>, vector<5x8xf32>, vector<8x5xf32> -> vector<8x5xf32>
    %cst_137 = arith.constant 0.353553385 : f32
    %408 = vector.broadcast %cst_137 : f32 to vector<8x5xf32>
    %409 = arith.mulf %407, %408 : vector<8x5xf32>
    %cst_138 = arith.constant dense<0xFF800000> : vector<8xf32>
    %410 = vector.multi_reduction <maximumf>, %409, %cst_138 [1] : vector<8x5xf32> to vector<8xf32>
    %411 = vector.shape_cast %410 : vector<8xf32> to vector<8x1xf32>
    %412 = vector.broadcast %411 : vector<8x1xf32> to vector<8x5xf32>
    %413 = arith.subf %409, %412 : vector<8x5xf32>
    %414 = math.exp %413 : vector<8x5xf32>
    %cst_139 = arith.constant dense<0.000000e+00> : vector<8xf32>
    %415 = vector.multi_reduction <add>, %414, %cst_139 [1] : vector<8x5xf32> to vector<8xf32>
    %416 = vector.shape_cast %415 : vector<8xf32> to vector<8x1xf32>
    %417 = tpu.reciprocal %416 {approx = true} : vector<8x1xf32> -> vector<8x1xf32>
    %418 = vector.broadcast %417 : vector<8x1xf32> to vector<8x5xf32>
    %419 = arith.mulf %414, %418 : vector<8x5xf32>
    %cst_140 = arith.constant dense<0.000000e+00> : vector<8x8xf32>
    %420 = tpu.matmul %419, %406, %cst_140 {dimension_numbers = #tpu.dot_dimension_numbers<[1], [0], [0], [1], [0, 0, 1, 1], [], []>} : vector<8x5xf32>, vector<5x8xf32>, vector<8x8xf32> -> vector<8x8xf32>
    %421 = vector.extract_strided_slice %401 {offsets = [0, 8], sizes = [8, 8], strides = [1, 1]} : vector<8x32xf32> to vector<8x8xf32>
    %422 = vector.extract_strided_slice %402 {offsets = [0, 8], sizes = [5, 8], strides = [1, 1]} : vector<5x32xf32> to vector<5x8xf32>
    %423 = vector.extract_strided_slice %403 {offsets = [0, 8], sizes = [5, 8], strides = [1, 1]} : vector<5x32xf32> to vector<5x8xf32>
    %cst_141 = arith.constant dense<0.000000e+00> : vector<8x5xf32>
    %424 = tpu.matmul %421, %422, %cst_141 {dimension_numbers = #tpu.dot_dimension_numbers<[1], [1], [0], [0], [0, 0, 1, 0], [], []>} : vector<8x8xf32>, vector<5x8xf32>, vector<8x5xf32> -> vector<8x5xf32>
    %cst_142 = arith.constant 0.353553385 : f32
    %425 = vector.broadcast %cst_142 : f32 to vector<8x5xf32>
    %426 = arith.mulf %424, %425 : vector<8x5xf32>
    %cst_143 = arith.constant dense<0xFF800000> : vector<8xf32>
    %427 = vector.multi_reduction <maximumf>, %426, %cst_143 [1] : vector<8x5xf32> to vector<8xf32>
    %428 = vector.shape_cast %427 : vector<8xf32> to vector<8x1xf32>
    %429 = vector.broadcast %428 : vector<8x1xf32> to vector<8x5xf32>
    %430 = arith.subf %426, %429 : vector<8x5xf32>
    %431 = math.exp %430 : vector<8x5xf32>
    %cst_144 = arith.constant dense<0.000000e+00> : vector<8xf32>
    %432 = vector.multi_reduction <add>, %431, %cst_144 [1] : vector<8x5xf32> to vector<8xf32>
    %433 = vector.shape_cast %432 : vector<8xf32> to vector<8x1xf32>
    %434 = tpu.reciprocal %433 {approx = true} : vector<8x1xf32> -> vector<8x1xf32>
    %435 = vector.broadcast %434 : vector<8x1xf32> to vector<8x5xf32>
    %436 = arith.mulf %431, %435 : vector<8x5xf32>
    %cst_145 = arith.constant dense<0.000000e+00> : vector<8x8xf32>
    %437 = tpu.matmul %436, %423, %cst_145 {dimension_numbers = #tpu.dot_dimension_numbers<[1], [0], [0], [1], [0, 0, 1, 1], [], []>} : vector<8x5xf32>, vector<5x8xf32>, vector<8x8xf32> -> vector<8x8xf32>
    %438 = vector.extract_strided_slice %401 {offsets = [0, 16], sizes = [8, 8], strides = [1, 1]} : vector<8x32xf32> to vector<8x8xf32>
    %439 = vector.extract_strided_slice %402 {offsets = [0, 16], sizes = [5, 8], strides = [1, 1]} : vector<5x32xf32> to vector<5x8xf32>
    %440 = vector.extract_strided_slice %403 {offsets = [0, 16], sizes = [5, 8], strides = [1, 1]} : vector<5x32xf32> to vector<5x8xf32>
    %cst_146 = arith.constant dense<0.000000e+00> : vector<8x5xf32>
    %441 = tpu.matmul %438, %439, %cst_146 {dimension_numbers = #tpu.dot_dimension_numbers<[1], [1], [0], [0], [0, 0, 1, 0], [], []>} : vector<8x8xf32>, vector<5x8xf32>, vector<8x5xf32> -> vector<8x5xf32>
    %cst_147 = arith.constant 0.353553385 : f32
    %442 = vector.broadcast %cst_147 : f32 to vector<8x5xf32>
    %443 = arith.mulf %441, %442 : vector<8x5xf32>
    %cst_148 = arith.constant dense<0xFF800000> : vector<8xf32>
    %444 = vector.multi_reduction <maximumf>, %443, %cst_148 [1] : vector<8x5xf32> to vector<8xf32>
    %445 = vector.shape_cast %444 : vector<8xf32> to vector<8x1xf32>
    %446 = vector.broadcast %445 : vector<8x1xf32> to vector<8x5xf32>
    %447 = arith.subf %443, %446 : vector<8x5xf32>
    %448 = math.exp %447 : vector<8x5xf32>
    %cst_149 = arith.constant dense<0.000000e+00> : vector<8xf32>
    %449 = vector.multi_reduction <add>, %448, %cst_149 [1] : vector<8x5xf32> to vector<8xf32>
    %450 = vector.shape_cast %449 : vector<8xf32> to vector<8x1xf32>
    %451 = tpu.reciprocal %450 {approx = true} : vector<8x1xf32> -> vector<8x1xf32>
    %452 = vector.broadcast %451 : vector<8x1xf32> to vector<8x5xf32>
    %453 = arith.mulf %448, %452 : vector<8x5xf32>
    %cst_150 = arith.constant dense<0.000000e+00> : vector<8x8xf32>
    %454 = tpu.matmul %453, %440, %cst_150 {dimension_numbers = #tpu.dot_dimension_numbers<[1], [0], [0], [1], [0, 0, 1, 1], [], []>} : vector<8x5xf32>, vector<5x8xf32>, vector<8x8xf32> -> vector<8x8xf32>
    %455 = vector.extract_strided_slice %401 {offsets = [0, 24], sizes = [8, 8], strides = [1, 1]} : vector<8x32xf32> to vector<8x8xf32>
    %456 = vector.extract_strided_slice %402 {offsets = [0, 24], sizes = [5, 8], strides = [1, 1]} : vector<5x32xf32> to vector<5x8xf32>
    %457 = vector.extract_strided_slice %403 {offsets = [0, 24], sizes = [5, 8], strides = [1, 1]} : vector<5x32xf32> to vector<5x8xf32>
    %cst_151 = arith.constant dense<0.000000e+00> : vector<8x5xf32>
    %458 = tpu.matmul %455, %456, %cst_151 {dimension_numbers = #tpu.dot_dimension_numbers<[1], [1], [0], [0], [0, 0, 1, 0], [], []>} : vector<8x8xf32>, vector<5x8xf32>, vector<8x5xf32> -> vector<8x5xf32>
    %cst_152 = arith.constant 0.353553385 : f32
    %459 = vector.broadcast %cst_152 : f32 to vector<8x5xf32>
    %460 = arith.mulf %458, %459 : vector<8x5xf32>
    %cst_153 = arith.constant dense<0xFF800000> : vector<8xf32>
    %461 = vector.multi_reduction <maximumf>, %460, %cst_153 [1] : vector<8x5xf32> to vector<8xf32>
    %462 = vector.shape_cast %461 : vector<8xf32> to vector<8x1xf32>
    %463 = vector.broadcast %462 : vector<8x1xf32> to vector<8x5xf32>
    %464 = arith.subf %460, %463 : vector<8x5xf32>
    %465 = math.exp %464 : vector<8x5xf32>
    %cst_154 = arith.constant dense<0.000000e+00> : vector<8xf32>
    %466 = vector.multi_reduction <add>, %465, %cst_154 [1] : vector<8x5xf32> to vector<8xf32>
    %467 = vector.shape_cast %466 : vector<8xf32> to vector<8x1xf32>
    %468 = tpu.reciprocal %467 {approx = true} : vector<8x1xf32> -> vector<8x1xf32>
    %469 = vector.broadcast %468 : vector<8x1xf32> to vector<8x5xf32>
    %470 = arith.mulf %465, %469 : vector<8x5xf32>
    %cst_155 = arith.constant dense<0.000000e+00> : vector<8x8xf32>
    %471 = tpu.matmul %470, %457, %cst_155 {dimension_numbers = #tpu.dot_dimension_numbers<[1], [0], [0], [1], [0, 0, 1, 1], [], []>} : vector<8x5xf32>, vector<5x8xf32>, vector<8x8xf32> -> vector<8x8xf32>
    %472 = tpu.concatenate %420, %437, %454, %471 in 1 : vector<8x8xf32>, vector<8x8xf32>, vector<8x8xf32>, vector<8x8xf32> -> vector<8x32xf32>
    %473 = tpu.concatenate %400, %472 in 0 : vector<8x32xf32>, vector<8x32xf32> -> vector<16x32xf32>
    %cst_156 = arith.constant dense<0.000000e+00> : vector<16x32xf32>
    %474 = tpu.matmul %473, %327, %cst_156 {dimension_numbers = #tpu.dot_dimension_numbers<[1], [0], [0], [1], [0, 0, 1, 1], [], []>} : vector<16x32xf32>, vector<32x32xf32>, vector<16x32xf32> -> vector<16x32xf32>
    %475 = vector.broadcast %328 : vector<1x32xf32> to vector<16x32xf32>
    %476 = arith.addf %474, %475 : vector<16x32xf32>
    %c320 = arith.constant 320 : index
    %c0_157 = arith.constant 0 : index
    %477 = vector.load %arg5[%c320, %c0_157] : memref<464x32xf32, #tpu.memory_space<vmem>>, vector<1x32xf32>
    %c328 = arith.constant 328 : index
    %c0_158 = arith.constant 0 : index
    %478 = vector.load %arg5[%c328, %c0_158] : memref<464x32xf32, #tpu.memory_space<vmem>>, vector<1x32xf32>
    %cst_159 = arith.constant dense<0.000000e+00> : vector<16xf32>
    %479 = vector.multi_reduction <add>, %476, %cst_159 [1] : vector<16x32xf32> to vector<16xf32>
    %480 = vector.shape_cast %479 : vector<16xf32> to vector<16x1xf32>
    %cst_160 = arith.constant 3.200000e+01 : f32
    %481 = vector.broadcast %cst_160 : f32 to vector<16x1xf32>
    %482 = arith.divf %480, %481 : vector<16x1xf32>
    %483 = vector.broadcast %482 : vector<16x1xf32> to vector<16x32xf32>
    %484 = arith.subf %476, %483 : vector<16x32xf32>
    %485 = arith.mulf %484, %484 : vector<16x32xf32>
    %cst_161 = arith.constant dense<0.000000e+00> : vector<16xf32>
    %486 = vector.multi_reduction <add>, %485, %cst_161 [1] : vector<16x32xf32> to vector<16xf32>
    %487 = vector.shape_cast %486 : vector<16xf32> to vector<16x1xf32>
    %cst_162 = arith.constant 3.200000e+01 : f32
    %488 = vector.broadcast %cst_162 : f32 to vector<16x1xf32>
    %489 = arith.divf %487, %488 : vector<16x1xf32>
    %cst_163 = arith.constant 9.99999974E-6 : f32
    %490 = vector.broadcast %cst_163 : f32 to vector<16x1xf32>
    %491 = arith.addf %489, %490 : vector<16x1xf32>
    %492 = math.rsqrt %491 : vector<16x1xf32>
    %493 = vector.broadcast %492 : vector<16x1xf32> to vector<16x32xf32>
    %494 = arith.mulf %484, %493 : vector<16x32xf32>
    %495 = vector.broadcast %477 : vector<1x32xf32> to vector<16x32xf32>
    %496 = arith.mulf %494, %495 : vector<16x32xf32>
    %497 = vector.broadcast %478 : vector<1x32xf32> to vector<16x32xf32>
    %498 = arith.addf %496, %497 : vector<16x32xf32>
    %c80 = arith.constant 80 : index
    %c0_164 = arith.constant 0 : index
    %499 = vector.load %arg6[%c80, %c0_164] : memref<120x64xf32, #tpu.memory_space<vmem>>, vector<32x64xf32>
    %cst_165 = arith.constant dense<0.000000e+00> : vector<16x64xf32>
    %500 = tpu.matmul %498, %499, %cst_165 {dimension_numbers = #tpu.dot_dimension_numbers<[1], [0], [0], [1], [0, 0, 1, 1], [], []>} : vector<16x32xf32>, vector<32x64xf32>, vector<16x64xf32> -> vector<16x64xf32>
    %c112_166 = arith.constant 112 : index
    %c0_167 = arith.constant 0 : index
    %501 = vector.load %arg6[%c112_166, %c0_167] : memref<120x64xf32, #tpu.memory_space<vmem>>, vector<1x64xf32>
    %502 = vector.broadcast %501 : vector<1x64xf32> to vector<16x64xf32>
    %503 = arith.addf %500, %502 : vector<16x64xf32>
    %cst_168 = arith.constant 0.000000e+00 : f32
    %504 = vector.broadcast %cst_168 : f32 to vector<16x64xf32>
    %505 = arith.maximumf %503, %504 : vector<16x64xf32>
    %c336 = arith.constant 336 : index
    %c0_169 = arith.constant 0 : index
    %506 = vector.load %arg5[%c336, %c0_169] : memref<464x32xf32, #tpu.memory_space<vmem>>, vector<64x32xf32>
    %cst_170 = arith.constant dense<0.000000e+00> : vector<16x32xf32>
    %507 = tpu.matmul %505, %506, %cst_170 {dimension_numbers = #tpu.dot_dimension_numbers<[1], [0], [0], [1], [0, 0, 1, 1], [], []>} : vector<16x64xf32>, vector<64x32xf32>, vector<16x32xf32> -> vector<16x32xf32>
    %c400 = arith.constant 400 : index
    %c0_171 = arith.constant 0 : index
    %508 = vector.load %arg5[%c400, %c0_171] : memref<464x32xf32, #tpu.memory_space<vmem>>, vector<1x32xf32>
    %509 = vector.broadcast %508 : vector<1x32xf32> to vector<16x32xf32>
    %510 = arith.addf %507, %509 : vector<16x32xf32>
    %511 = arith.addf %498, %510 : vector<16x32xf32>
    %c408 = arith.constant 408 : index
    %c0_172 = arith.constant 0 : index
    %512 = vector.load %arg5[%c408, %c0_172] : memref<464x32xf32, #tpu.memory_space<vmem>>, vector<1x32xf32>
    %c416 = arith.constant 416 : index
    %c0_173 = arith.constant 0 : index
    %513 = vector.load %arg5[%c416, %c0_173] : memref<464x32xf32, #tpu.memory_space<vmem>>, vector<1x32xf32>
    %cst_174 = arith.constant dense<0.000000e+00> : vector<16xf32>
    %514 = vector.multi_reduction <add>, %511, %cst_174 [1] : vector<16x32xf32> to vector<16xf32>
    %515 = vector.shape_cast %514 : vector<16xf32> to vector<16x1xf32>
    %cst_175 = arith.constant 3.200000e+01 : f32
    %516 = vector.broadcast %cst_175 : f32 to vector<16x1xf32>
    %517 = arith.divf %515, %516 : vector<16x1xf32>
    %518 = vector.broadcast %517 : vector<16x1xf32> to vector<16x32xf32>
    %519 = arith.subf %511, %518 : vector<16x32xf32>
    %520 = arith.mulf %519, %519 : vector<16x32xf32>
    %cst_176 = arith.constant dense<0.000000e+00> : vector<16xf32>
    %521 = vector.multi_reduction <add>, %520, %cst_176 [1] : vector<16x32xf32> to vector<16xf32>
    %522 = vector.shape_cast %521 : vector<16xf32> to vector<16x1xf32>
    %cst_177 = arith.constant 3.200000e+01 : f32
    %523 = vector.broadcast %cst_177 : f32 to vector<16x1xf32>
    %524 = arith.divf %522, %523 : vector<16x1xf32>
    %cst_178 = arith.constant 9.99999974E-6 : f32
    %525 = vector.broadcast %cst_178 : f32 to vector<16x1xf32>
    %526 = arith.addf %524, %525 : vector<16x1xf32>
    %527 = math.rsqrt %526 : vector<16x1xf32>
    %528 = vector.broadcast %527 : vector<16x1xf32> to vector<16x32xf32>
    %529 = arith.mulf %519, %528 : vector<16x32xf32>
    %530 = vector.broadcast %512 : vector<1x32xf32> to vector<16x32xf32>
    %531 = arith.mulf %529, %530 : vector<16x32xf32>
    %532 = vector.broadcast %513 : vector<1x32xf32> to vector<16x32xf32>
    %533 = arith.addf %531, %532 : vector<16x32xf32>
    %c424 = arith.constant 424 : index
    %c0_179 = arith.constant 0 : index
    %534 = vector.load %arg5[%c424, %c0_179] : memref<464x32xf32, #tpu.memory_space<vmem>>, vector<32x32xf32>
    %cst_180 = arith.constant dense<0.000000e+00> : vector<16x32xf32>
    %535 = tpu.matmul %533, %534, %cst_180 {dimension_numbers = #tpu.dot_dimension_numbers<[1], [0], [0], [1], [0, 0, 1, 1], [], []>} : vector<16x32xf32>, vector<32x32xf32>, vector<16x32xf32> -> vector<16x32xf32>
    %c456 = arith.constant 456 : index
    %c0_181 = arith.constant 0 : index
    %536 = vector.load %arg5[%c456, %c0_181] : memref<464x32xf32, #tpu.memory_space<vmem>>, vector<1x32xf32>
    %537 = vector.broadcast %536 : vector<1x32xf32> to vector<16x32xf32>
    %538 = arith.addf %535, %537 : vector<16x32xf32>
    %c0_182 = arith.constant 0 : index
    %c0_183 = arith.constant 0 : index
    %539 = vector.load %arg10[%c0_182, %c0_183] : memref<16x32xf32, #tpu.memory_space<vmem>>, vector<16x32xf32>
    tpu.vector_store %arg10[%c0_182, %c0_183], %538 {strides = array<i32>} : memref<16x32xf32, #tpu.memory_space<vmem>>, vector<16x32xf32>,
    return
  }
}

</mosaic_0001>

<bundles_post_ra>
// kernel: detrvae_forward.1
= control target key start
LH: loop header
LB: loop body
LE: loop exit
PB: predicated region body
PF: predicated region fallthrough
CT: control target
= control target key end

     0   :  { %vm48_vm0 = vcmask 1041408   ;;  %vm139_vm1 = vcmask 1040384   ;;  %v6075_v0 = vmov 0.0|0.0   ;;  %vm6076_vm2 = vmmov 1   ;;  %s6079_s25 = smov 120   ;;  %s6080_s26 = smov 96   ;;  %s7100_s5 = inlined_call_operand.vmem [shape: f32[464,32], index: 5, kind: input, shape index: {}]   ;;  %s7101_s1 = inlined_call_operand.vmem [shape: f32[16,10], index: 1, kind: input, shape index: {}]   ;;  %s7102_s0 = inlined_call_operand.vmem [shape: f32[2,9], index: 0, kind: input, shape index: {}]   ;;  %s7103_s7 = inlined_call_operand.vmem [shape: f32[80,96], index: 7, kind: input, shape index: {}]   ;;  %s7104_s2 = inlined_call_operand.vmem [shape: f32[2,10], index: 2, kind: input, shape index: {}]   ;;  %s7105_s6 = inlined_call_operand.vmem [shape: f32[120,64], index: 6, kind: input, shape index: {}]   ;;  %s7106_s4 = inlined_call_operand.vmem [shape: f32[2,32], index: 4, kind: input, shape index: {}]   ;;  %s7107_s8 = inlined_call_operand.vmem [shape: f32[2,64], index: 8, kind: output, shape index: {0}]   ;;  %s7108_s3 = inlined_call_operand.vmem [shape: f32[8,32], index: 3, kind: input, shape index: {}]   ;;  %s7109_s9 = inlined_call_operand.vmem [shape: f32[10,32], index: 9, kind: output, shape index: {1}]   ;;  %s7110_s10 = inlined_call_operand.vmem [shape: f32[16,32], index: 10, kind: output, shape index: {2}]  }
   0x1   :  { %5633 = vmatprep.subr.bf16.mxu1 %v6075_v0  ;;  %v34_v1 = vld [vmem:[%s7100_s5] sm:$0xff]  ;;  %v35_v2 = vld [vmem:[%s7100_s5 + $0x8] sm:$0x3]  ;;  %vm6154_vm3 = vmpackc.low %vm48_vm0, %vm6076_vm2  ;;  %vm41_vm4 = vcmask 80896   ;;  %vm6077_vm6 = vmmov 0   ;;  %v6078_v7 = vmov 0.0  }
   0x2   :  { %v5627_v4 = vpack.c.bf16 %v35_v2, %v34_v1  ;;  %v128_v5 = vld [vmem:[%s7100_s5 + $0x18] sm:$0xff]  ;;  %v129_v6 = vld [vmem:[%s7100_s5 + $0x20] sm:$0x1]  ;;  %vm5635_vm5 = vmpackc.low %vm139_vm1, %vm6076_vm2  ;;  %5232 = vmatprep.mubr.msk.f32.mxu1 %vm6077_vm6, %v6078_v7  ;;  %vm135_vm7 = vcmask 72704   ;;  %vm231_vm8 = vcmask 1042432   ;;  %vm233_vm9 = vcmask 1043456  }
   0x3   :  { %v5634_v8 = vpack.c.bf16 %v129_v6, %v128_v5  ;;  %v32_v9 = vld [vmem:[%s7101_s1] sm:$0xff]  ;;  %v33_v10 = vld [vmem:[%s7101_s1 + $0x8] sm:$0xff]  ;;  %v247_v15 = vld [vmem:[%s7103_s7 + $0x10] sm:$0xff]  ;;  %vm257_vm10 = vcmask 261120   ;;  %vm469_vm11 = vcmask 64512   ;;  %s6081_s27 = smov 64  }
   0x4   :  { %5629 = vmatprep.subr.msk.bf16.mxu0 %vm6154_vm3, %v5627_v4  ;;  %5225 = vmatprep.mubr.msk.f32.mxu0 %vm41_vm4, %v32_v9  ;;  %v127_v11 = vld [vmem:[%s7102_s0] sm:$0x3]  ;;  %v6196_v13 = vld [vmem:[%s7103_s7 + $0x8] sm:$0xff]  ;;  %v248_v16 = vld [vmem:[%s7103_s7 + $0x18] sm:$0xff]  ;;  %s6082_s1 = smov 88   ;;  %vm564_vm14 = vcmask 74752  }
   0x5   :  { %5636 = vmatpush3.bf16.msk.msra.mxu1 %vm5635_vm5, %v5634_v8  ;;  %5632 = vmatpush3.bf16.msk.msra.mxu0 %vm6154_vm3, %v5627_v4  ;;  %v6191_v12 = vld [vmem:[%s7103_s7] sm:$0xff]  ;;  %v5641_v17 = vpack.c.bf16 %v248_v16, %v247_v15  ;;  %v4884_v18 = vld [vmem:[%s7100_s5 + $0x28] ss:$0 sm:$0xff]  ;;  %v213_v19 = vld [vmem:[%s7100_s5 + $0x30] sm:$0x1]  ;;  %v5874_v55 = vpack.i.bf16 %v248_v16, %v247_v15  ;;  %vm1317_vm15 = vcmask 1045504  }
   0x6   :  { %5637 = vmatprep.subr.bf16.mxu0 %v6075_v0  ;;  %5643 = vmatprep.subr.bf16.mxu1 %v6075_v0  ;;  %v5638_v14 = vpack.c.bf16 %v6196_v13, %v6191_v12  ;;  %v4880_v20 = vld [vmem:[%s7100_s5 + $0x10] ss:$0 sm:$0xff]  ;;  %v221_v28 = vrot.slane %v213_v19, 6  ;;  %v235_v29 = vld [vmem:[%s7100_s5 + $0x38] sm:$0xff]  ;;  %v236_v35 = vld [vmem:[%s7100_s5 + $0x40] sm:$0x3]  ;;  %v5869_v58 = vpack.i.bf16 %v6196_v13, %v6191_v12 }
   0x7   :  { %v239_v34 = vrot.slane %v235_v29, 6  ;;  %v240_v42 = vrot.slane %v236_v35, 6  ;;  %v6248_v47 = vld [vmem:[%s7103_s7 + $0x20] ss:$0 sm:$0xff]  ;;  %vm6278_vm12 = vmpackc.low %vm469_vm11, %vm469_vm11  ;;  %s6084_s29 = smov 80   ;;  %s6085_s30 = smov 72  }
   0x8   :  { %5233 = vmatmul.mubr.msk.f32.vlgmr.msra.gmra.mrb[0].mxu1 %vm135_vm7, %v127_v11  ;;  %5226 = vmatmul.mubr.msk.f32.vlgmr.msra.gmra.mrb[0].mxu0 %vm41_vm4, %v33_v10  ;;  %s6086_s11 = smov 104   ;;  %s6087_s12 = smov 16   ;;  %vm1313_vm2 = vcmask 195584   ;;  %vm2661_vm5 = vcmask 517120   ;;  %vm2773_vm7 = vcmask 254976  }
   0x9   :  { %5243 = vmatprep.mubr.msk.f32.mxu0 %vm6077_vm6, %v6078_v7  ;;  %5260 = vmatprep.mubr.msk.f32.mxu1 %vm6077_vm6, %v6078_v7  ;;  %v244_v43 = vsel %vm48_vm0, %v236_v35, %v239_v34  ;;  %v241_v45 = vsel %vm48_vm0, %v239_v34, %v240_v42  ;;  %s6088_s13 = smov 8   ;;  %s6089_s14 = smov 24  }
   0xa   :  { %5639 = vmatpush3.bf16.msra.mxu0 %v5638_v14  ;;  %s6090_s22 = smov 32  }
   0xb   :  { %5640 = vmatprep.subr.bf16.mxu0 %v6075_v0 }
   0xe   :  { %5642 = vmatpush3.bf16.msra.mxu0 %v5641_v17  ;;  %v555_v17 = vlaneseq }
  0xdb   :  { %v209_v21 = vpop.f32.mrb[0].mxu1  ;;  %v5227_v22 = vpop.f32.mrb[0].mxu0 }
  0xdc   :  { %v210_v23 = vadd.f32 %v4884_v18, %v209_v21  ;;  %v5234_v24 = vpop.f32.mrb[1].mxu1  ;;  %v118_v25 = vpop.f32.mrb[1].mxu0  ;;  %v124_v26 = vadd.f32 %v5227_v22, %v4880_v20  ;;  %v455_v18 = vld [vmem:[%s7104_s2] sm:$0x3]  ;;  %s6083_s2 = smov 112  }
  0xdd   :  { %v119_v27 = vadd.f32 %v4880_v20, %v118_v25  ;;  %vm456_vm13 = vcmp.gt.f32.partialorder %v455_v18, 0.5 }
  0xde   :  { %v215_v30 = vrot.slane %v210_v23, 7  ;;  %v223_v32 = vrot.slane %v210_v23, 6  ;;  %v6223_v36 = vrot.slane %v124_v26, 4  ;;  %v6312_v21 = vsel %vm456_vm13, -1e+09, %v6078_v7 }
  0xdf   :  { %v218_v31 = vrot.slane %v119_v27, 6 }
  0xe0   :  { %v228_v33 = vsel %vm139_vm1, %v213_v19, %v215_v30  ;;  %v252_v46 = vadd.f32 %v241_v45, %v6223_v36  ;;  %v6308_v19 = vshrl.u32 %v555_v17, 7 }
  0xe1   :  { %v6226_v37 = vsel %vm48_vm0, %v228_v33, %v218_v31  ;;  %v230_v38 = vsel %vm48_vm0, %v218_v31, %v221_v28 }
  0xe2   :  { %v232_v39 = vsel %vm231_vm8, %v230_v38, %v223_v32  ;;  %v250_v40 = vadd.f32 %v235_v29, %v6226_v37  ;;  %v557_v20 = vsub.s32 0, %v6308_v19 }
  0xe3   :  { %v6232_v41 = vsel %vm233_vm9, %v232_v39, %v6223_v36  ;;  %vm2769_vm9 = vcmask 1044480  }
  0xe4   :  { %5244 = vmatmul.mubr.msk.f32.vlgmr.msra.gmra.mrb[2].mxu0 %vm257_vm10, %v250_v40  ;;  %v251_v44 = vadd.f32 %v244_v43, %v6232_v41  ;;  %v6315_v22 = vrot.slane %v6312_v21, %v557_v20 }
  0xe5   :  { %5246 = vmatprep.mubr.msk.f32.mxu0 %vm6077_vm6, %v6078_v7 }
  0xe8   :  { %5247 = vmatmul.mubr.msk.f32.gmra.mrb[4].mxu0 %vm257_vm10, %v251_v44 }
  0xe9   :  { %5249 = vmatprep.mubr.msk.f32.mxu0 %vm6077_vm6, %v6078_v7 }
  0xec   :  { %5250 = vmatmul.mubr.msk.f32.gmra.mrb[6].mxu0 %vm257_vm10, %v252_v46 }
 0x1b7   :  { %v333_v48 = vpop.f32.mrb[2].mxu0 }
 0x1b8   :  { %v6251_v49 = vadd.f32 %v6248_v47, %v333_v48  ;;  %v5245_v50 = vpop.f32.mrb[3].mxu0 }
 0x1ba   :  { %668 = vrot.lane.b32.xlu1 %v6251_v49, %s6079_s25  ;;  %5273 = vmatprep.mubr.msk.f32.mxu0 %vm469_vm11, %v6251_v49 }
 0x1bb   :  { %v338_v51 = vpop.f32.mrb[4].mxu0 }
 0x1bc   :  { %v6258_v52 = vadd.f32 %v6248_v47, %v338_v51  ;;  %v5248_v53 = vpop.f32.mrb[5].mxu0 }
 0x1be   :  { %670 = vrot.lane.b32.xlu1 %v6258_v52, %s6079_s25  ;;  %v6264_v54 = vpack.i.bf16 %v6258_v52, %v6251_v49 }
 0x1bf   :  { %v6266_v56 = vpop.f32.mrb[6].mxu0 }
 0x1c0   :  { %5860 = vrot.lane.b32.xlu0 %v6264_v54, %s6080_s26  ;;  %v5251_v57 = vpop.f32.mrb[7].mxu0 }
 0x1c2   :  { %5875 = vrot.lane.b32.xlu1 %v5874_v55, %s6081_s27 }
 0x1c4   :  { %5865 = vrot.lane.b32.xlu0 %v6264_v54, %s6082_s1 }
 0x1c8   :  { %5870 = vrot.lane.b32.xlu0 %v5869_v58, %s6081_s27 }
 0x22c   :  { %v669_v59 = vpop.permute.xlu1 %668 }
 0x230   :  { %v671_v63 = vpop.permute.xlu1 %670 }
 0x232   :  { %v5861_v60 = vpop.permute.xlu0 %5860 }
 0x233   :  { %v5863_v61 = vunpack.i.h.bf16 %v5861_v60  ;;  %v5862_v62 = vunpack.i.l.bf16 %v5861_v60 }
 0x234   :  { %v5876_v8 = vpop.permute.xlu1 %5875 }
 0x235   :  { %v5649_v2 = vpack.c.bf16 %v5863_v61, %v5862_v62  ;;  %v5878_v13 = vunpack.i.h.bf16 %v5876_v8  ;;  %v5877_v14 = vunpack.i.l.bf16 %v5876_v8 }
 0x236   :  { %v5866_v4 = vpop.permute.xlu0 %5865 }
 0x237   :  { %v5868_v5 = vunpack.i.h.bf16 %v5866_v4  ;;  %v5867_v6 = vunpack.i.l.bf16 %v5866_v4  ;;  %5651 = vmatprep.subr.msk.bf16.mxu0 %vm6278_vm12, %v5649_v2  ;;  %v5647_v16 = vpack.c.bf16 %v5878_v13, %v5877_v14 }
 0x238   :  { %5654 = vmatpush3.bf16.xpose.msk.msra.mxu0 %vm6278_vm12, %v5649_v2 }
 0x239   :  { %v5661_v9 = vpack.c.bf16 %v5868_v5, %v5867_v6 }
 0x23a   :  { %v5871_v10 = vpop.permute.xlu0 %5870 }
 0x23b   :  { %v5873_v11 = vunpack.i.h.bf16 %v5871_v10  ;;  %v5872_v12 = vunpack.i.l.bf16 %v5871_v10  ;;  %5663 = vmatprep.subr.msk.bf16.mxu0 %vm6278_vm12, %v5661_v9 }
 0x23d   :  { %v5644_v15 = vpack.c.bf16 %v5873_v11, %v5872_v12 }
 0x23f   :  { %5645 = vmatpush3.bf16.msra.mxu1 %v5644_v15  ;;  %5274 = vmatmul.mubr.msk.f32.vlgmr.msra.gmra.mrb[8].mxu0 %vm469_vm11, %v6258_v52 }
 0x240   :  { %5666 = vmatpush3.bf16.xpose.msk.msra.mxu0 %vm6278_vm12, %v5661_v9  ;;  %5287 = vmatprep.mubr.msk.f32.mxu0 %vm469_vm11, %v669_v59 }
 0x241   :  { %5646 = vmatprep.subr.bf16.mxu1 %v6075_v0 }
 0x243   :  { %5648 = vmatpush3.bf16.msra.mxu1 %v5647_v16 }
 0x246   :  { %5261 = vmatmul.mubr.msk.f32.vlgmr.msra.gmra.mrb[2].mxu1 %vm257_vm10, %v6226_v37 }
 0x247   :  { %5288 = vmatmul.mubr.msk.f32.vlgmr.msra.gmra.mrb[10].mxu0 %vm469_vm11, %v671_v63  ;;  %5263 = vmatprep.mubr.msk.f32.mxu1 %vm6077_vm6, %v6078_v7 }
 0x24a   :  { %5264 = vmatmul.mubr.msk.f32.gmra.mrb[4].mxu1 %vm257_vm10, %v6232_v41 }
 0x24b   :  { %5266 = vmatprep.mubr.msk.f32.mxu1 %vm6077_vm6, %v6078_v7 }
 0x24e   :  { %5267 = vmatmul.mubr.msk.f32.gmra.mrb[6].mxu1 %vm257_vm10, %v6223_v36 }
 0x312   :  { %v5275_v23 = vpop.f32.mrb[8].mxu0 }
 0x313   :  { %v554_v24 = vmul.f32 0.35355338, %v5275_v23  ;;  %v544_v25 = vpop.f32.mrb[9].mxu0 }
 0x314   :  { %v553_v26 = vmul.f32 0.35355338, %v544_v25 }
 0x315   :  { %v560_v27 = vadd.f32 %v6315_v22, %v554_v24 }
 0x316   :  { %v559_v28 = vadd.f32 %v6315_v22, %v553_v26 }
 0x317   :  { %v565_v29 = vsel %vm564_vm14, %v560_v27, -inf }
 0x318   :  { %566 = vmax.xlane.f32.xlu1 %v565_v29  ;;  %v561_v30 = vsel %vm41_vm4, %v559_v28, -inf }
 0x319   :  { %562 = vmax.xlane.f32.xlu0 %v561_v30  ;;  %v441_v31 = vpop.f32.mrb[2].mxu1 }
 0x31a   :  { %v5262_v32 = vpop.f32.mrb[3].mxu1  ;;  %v5289_v33 = vpop.f32.mrb[10].mxu0 }
 0x31b   :  { %v750_v34 = vpop.f32.mrb[11].mxu0  ;;  %v760_v35 = vmul.f32 0.35355338, %v5289_v33 }
 0x31c   :  { %v759_v38 = vmul.f32 0.35355338, %v750_v34 }
 0x31d   :  { %v446_v39 = vpop.f32.mrb[4].mxu1  ;;  %v762_v44 = vadd.f32 %v760_v35, %v6315_v22 }
 0x31e   :  { %v5265_v40 = vpop.f32.mrb[5].mxu1  ;;  %v761_v42 = vadd.f32 %v759_v38, %v6315_v22 }
 0x31f   :  { %v766_v48 = vsel %vm564_vm14, %v762_v44, -inf }
 0x320   :  { %v763_v43 = vsel %vm41_vm4, %v761_v42, -inf }
 0x321   :  { %764 = vmax.xlane.f32.xlu0 %v763_v43  ;;  %v451_v45 = vpop.f32.mrb[6].mxu1 }
 0x322   :  { %v5268_v46 = vpop.f32.mrb[7].mxu1 }
 0x325   :  { %767 = vmax.xlane.f32.xlu0 %v766_v48 }
 0x329   :  { %364 = vrot.lane.b32.xlu1 %v6248_v47, %s6081_s27 }
 0x3a5   :  { %v567_v50 = vpop.xlane.xlu1 %566 }
 0x3a6   :  { %v569_v51 = vsub.f32 %v560_v27, %v567_v50  ;;  %v563_v53 = vpop.xlane.xlu0 %562 }
 0x3a7   :  { %v568_v55 = vsub.f32 %v559_v28, %v563_v53 }
 0x3a8   :  { %v572_v57 = vmul.f32 1.442695, %v569_v51 }
 0x3a9   :  { %v570_v58 = vmul.f32 1.442695, %v568_v55  ;;  %v365_v59 = vpop.permute.xlu1 %364 }
 0x3aa   :  { %5959 = vpow2.f32 %v572_v57  ;;  %v442_v60 = vadd.f32 %v441_v31, %v365_v59  ;;  %v447_v61 = vadd.f32 %v446_v39, %v365_v59  ;;  %v452_v62 = vadd.f32 %v451_v45, %v365_v59 }
 0x3ab   :  { %5961 = vpow2.f32 %v570_v58 }
 0x3ac   :  { %v1440_v63 = vrot.slane %v452_v62, 2  ;;  %v6327_v2 = vpack.i.bf16 %v447_v61, %v442_v60  ;;  %v5655_v4 = vpack.c.bf16 %v447_v61, %v442_v60  ;;  %v1439_v5 = vrot.slane %v447_v61, 2 }
 0x3ae   :  { %v765_v6 = vpop.xlane.xlu0 %764  ;;  %5880 = vrot.lane.b32.xlu1 %v6327_v2, %s6079_s25  ;;  %5657 = vmatprep.subr.msk.bf16.mxu1 %vm6154_vm3, %v5655_v4  ;;  %v1441_v8 = vsel %vm1317_vm15, %v1439_v5, %v1440_v63 }
 0x3af   :  { %5660 = vmatpush3.bf16.msk.msra.mxu1 %vm6154_vm3, %v5655_v4  ;;  %v6336_v9 = vpack.c.bf16 %v1440_v63, %v1441_v8  ;;  %v6338_v10 = vpack.i.bf16 %v1440_v63, %v1441_v8  ;;  %v769_v11 = vsub.f32 %v761_v42, %v765_v6 }
 0x3b1   :  { %v771_v16 = vmul.f32 1.442695, %v769_v11 }
 0x3b2   :  { %v768_v12 = vpop.xlane.xlu0 %767  ;;  %874 = vrot.lane.b32.xlu1 %v6251_v49, %s6083_s2 }
 0x3b3   :  { %v770_v13 = vsub.f32 %v762_v44, %v768_v12 }
 0x3b4   :  { %v5960_v14 = vpop.eup %5959 }
 0x3b5   :  { %v5962_v15 = vpop.eup %5961  ;;  %v773_v17 = vmul.f32 1.442695, %v770_v13  ;;  %v577_v18 = vsel %vm564_vm14, %v5960_v14, 0.0 }
 0x3b6   :  { %578 = vadd.xlane.f32.xlu0 %v577_v18  ;;  %876 = vrot.lane.b32.xlu1 %v6258_v52, %s6083_s2  ;;  %v574_v20 = vsel %vm41_vm4, %v5962_v15, 0.0 }
 0x3b7   :  { %5963 = vpow2.f32 %v773_v17 }
 0x3b8   :  { %5965 = vpow2.f32 %v771_v16 }
 0x3ba   :  { %575 = vadd.xlane.f32.xlu0 %v574_v20 }
 0x3c1   :  { %v5964_v23 = vpop.eup %5963 }
 0x3c2   :  { %v778_v24 = vsel %vm564_vm14, %v5964_v23, 0.0  ;;  %v5966_v25 = vpop.eup %5965 }
 0x3c3   :  { %779 = vadd.xlane.f32.xlu0 %v778_v24  ;;  %v775_v26 = vsel %vm41_vm4, %v5966_v25, 0.0 }
 0x3c7   :  { %776 = vadd.xlane.f32.xlu0 %v775_v26 }
 0x3dd   :  { %5885 = vrot.lane.b32.xlu0 %v6264_v54, %s6084_s29 }
 0x420   :  { %v5881_v27 = vpop.permute.xlu1 %5880 }
 0x421   :  { %v5883_v28 = vunpack.i.h.bf16 %v5881_v27  ;;  %v5882_v29 = vunpack.i.l.bf16 %v5881_v27 }
 0x423   :  { %v5667_v30 = vpack.c.bf16 %v5883_v28, %v5882_v29 }
 0x424   :  { %v875_v53 = vpop.permute.xlu1 %874 }
 0x425   :  { %5669 = vmatprep.subr.msk.bf16.mxu1 %vm6154_vm3, %v5667_v30 }
 0x428   :  { %v877_v55 = vpop.permute.xlu1 %876 }
 0x443   :  { %v579_v31 = vpop.xlane.xlu0 %578 }
 0x444   :  { %5967 = vrcp.f32 %v579_v31 }
 0x447   :  { %v576_v32 = vpop.xlane.xlu0 %575 }
 0x448   :  { %5969 = vrcp.f32 %v576_v32 }
 0x44e   :  { %v5968_v34 = vpop.eup %5967 }
 0x44f   :  { %v583_v39 = vmul.f32 %v5968_v34, %v5960_v14 }
 0x450   :  { %v780_v33 = vpop.xlane.xlu0 %779 }
 0x451   :  { %5971 = vrcp.f32 %v780_v33 }
 0x452   :  { %v5970_v35 = vpop.eup %5969 }
 0x453   :  { %v582_v38 = vmul.f32 %v5970_v35, %v5962_v15 }
 0x454   :  { %v777_v40 = vpop.xlane.xlu0 %776 }
 0x455   :  { %5973 = vrcp.f32 %v777_v40  ;;  %5280 = vmatprep.mubr.msk.f32.mxu1 %vm41_vm4, %v582_v38 }
 0x456   :  { %5281 = vmatmul.mubr.msk.f32.vlgmr.msra.gmra.mrb[8].mxu1 %vm41_vm4, %v583_v39 }
 0x457   :  { %5672 = vmatpush3.bf16.msk.msra.mxu1 %vm6154_vm3, %v5667_v30 }
 0x458   :  { %v5886_v42 = vpop.permute.xlu0 %5885 }
 0x459   :  { %v5888_v43 = vunpack.i.h.bf16 %v5886_v42  ;;  %v5887_v44 = vunpack.i.l.bf16 %v5886_v42 }
 0x45b   :  { %v5673_v45 = vpack.c.bf16 %v5888_v43, %v5887_v44  ;;  %v5972_v46 = vpop.eup %5971 }
 0x45c   :  { %v784_v51 = vmul.f32 %v5972_v46, %v5964_v23 }
 0x45d   :  { %5675 = vmatprep.subr.msk.bf16.mxu1 %vm6278_vm12, %v5673_v45 }
 0x45f   :  { %v5974_v48 = vpop.eup %5973 }
 0x460   :  { %v783_v50 = vmul.f32 %v5974_v48, %v5966_v25 }
 0x462   :  { %5294 = vmatprep.mubr.msk.f32.mxu1 %vm41_vm4, %v783_v50 }
 0x463   :  { %5295 = vmatmul.mubr.msk.f32.vlgmr.msra.gmra.mrb[10].mxu1 %vm41_vm4, %v784_v51 }
 0x464   :  { %5678 = vmatpush3.bf16.xpose.msk.msra.mxu1 %vm6278_vm12, %v5673_v45  ;;  %5301 = vmatprep.mubr.msk.f32.mxu1 %vm469_vm11, %v875_v53 }
 0x46b   :  { %5302 = vmatmul.mubr.msk.f32.vlgmr.msra.gmra.mrb[12].mxu1 %vm469_vm11, %v877_v55 }
 0x529   :  { %v6364_v57 = vpop.f32.mrb[8].mxu1 }
 0x52a   :  { %v6366_v58 = vpop.f32.mrb[9].mxu1 }
 0x536   :  { %v6368_v59 = vpop.f32.mrb[10].mxu1 }
 0x537   :  { %v6370_v60 = vpop.f32.mrb[11].mxu1 }
 0x53e   :  { %v5303_v61 = vpop.f32.mrb[12].mxu1 }
 0x53f   :  { %v966_v62 = vmul.f32 0.35355338, %v5303_v61  ;;  %v956_v63 = vpop.f32.mrb[13].mxu1 }
 0x540   :  { %v965_v4 = vmul.f32 0.35355338, %v956_v63 }
 0x541   :  { %v968_v5 = vadd.f32 %v966_v62, %v6315_v22 }
 0x542   :  { %v967_v6 = vadd.f32 %v965_v4, %v6315_v22 }
 0x543   :  { %v972_v8 = vsel %vm564_vm14, %v968_v5, -inf }
 0x544   :  { %973 = vmax.xlane.f32.xlu0 %v972_v8  ;;  %v969_v11 = vsel %vm41_vm4, %v967_v6, -inf }
 0x545   :  { %970 = vmax.xlane.f32.xlu1 %v969_v11 }
 0x556   :  { %5895 = vrot.lane.b32.xlu1 %v6264_v54, %s6085_s30 }
 0x55a   :  { %5890 = vrot.lane.b32.xlu0 %v6327_v2, %s6083_s2 }
 0x55e   :  { %1081 = vrot.lane.b32.xlu0 %v6258_v52, %s6086_s11 }
 0x5d1   :  { %v974_v12 = vpop.xlane.xlu0 %973 }
 0x5d2   :  { %v976_v13 = vsub.f32 %v968_v5, %v974_v12  ;;  %v971_v14 = vpop.xlane.xlu1 %970  ;;  %v344_v12 = vadd.f32 %v6248_v47, %v6266_v56 }
 0x5d3   :  { %v975_v15 = vsub.f32 %v967_v6, %v971_v14  ;;  %v1318_v14 = vrot.slane %v6258_v52, 2 }
 0x5d4   :  { %v979_v16 = vmul.f32 1.442695, %v976_v13  ;;  %v6416_v13 = vrot.slane %v344_v12, 2 }
 0x5d5   :  { %v977_v17 = vmul.f32 1.442695, %v975_v15  ;;  %v5891_v18 = vpop.permute.xlu0 %5890 }
 0x5d6   :  { %5975 = vpow2.f32 %v979_v16  ;;  %v5893_v20 = vunpack.i.h.bf16 %v5891_v18  ;;  %v5892_v23 = vunpack.i.l.bf16 %v5891_v18  ;;  %v5896_v24 = vpop.permute.xlu1 %5895  ;;  %v6421_v15 = vsel %vm1317_vm15, %v1318_v14, %v6416_v13 }
 0x5d7   :  { %v5898_v25 = vunpack.i.h.bf16 %v5896_v24  ;;  %v5897_v54 = vunpack.i.l.bf16 %v5896_v24  ;;  %5977 = vpow2.f32 %v977_v17  ;;  %v6425_v16 = vpack.i.bf16 %v6416_v13, %v6421_v15 }
 0x5d8   :  { %v5679_v26 = vpack.c.bf16 %v5893_v20, %v5892_v23 }
 0x5d9   :  { %v5685_v27 = vpack.c.bf16 %v5898_v25, %v5897_v54 }
 0x5da   :  { %5681 = vmatprep.subr.msk.bf16.mxu0 %vm6154_vm3, %v5679_v26 }
 0x5db   :  { %5684 = vmatpush3.bf16.msk.msra.mxu0 %vm6154_vm3, %v5679_v26 }
 0x5dc   :  { %5687 = vmatprep.subr.msk.bf16.mxu0 %vm6278_vm12, %v5685_v27 }
 0x5e0   :  { %v5976_v28 = vpop.eup %5975 }
 0x5e1   :  { %v984_v29 = vsel %vm564_vm14, %v5976_v28, 0.0  ;;  %v5978_v30 = vpop.eup %5977 }
 0x5e2   :  { %985 = vadd.xlane.f32.xlu1 %v984_v29  ;;  %v981_v31 = vsel %vm41_vm4, %v5978_v30, 0.0 }
 0x5e6   :  { %982 = vadd.xlane.f32.xlu1 %v981_v31  ;;  %v1412_v31 = vsub.s32 1, %v6308_v19 }
 0x5f7   :  { %1079 = vrot.lane.b32.xlu1 %v6251_v49, %s6086_s11  ;;  %v1082_v49 = vpop.permute.xlu0 %1081 }
 0x66f   :  { %v986_v32 = vpop.xlane.xlu1 %985 }
 0x670   :  { %5979 = vrcp.f32 %v986_v32  ;;  %v6451_v32 = vrot.slane %v6312_v21, %v1412_v31 }
 0x673   :  { %v983_v33 = vpop.xlane.xlu1 %982 }
 0x674   :  { %5981 = vrcp.f32 %v983_v33 }
 0x677   :  { %v1080_v40 = vpop.permute.xlu1 %1079 }
 0x67a   :  { %v5980_v34 = vpop.eup %5979 }
 0x67b   :  { %v990_v39 = vmul.f32 %v5980_v34, %v5976_v28 }
 0x67e   :  { %v5982_v35 = vpop.eup %5981 }
 0x67f   :  { %v989_v38 = vmul.f32 %v5982_v35, %v5978_v30 }
 0x681   :  { %5308 = vmatprep.mubr.msk.f32.mxu0 %vm41_vm4, %v989_v38 }
 0x682   :  { %5309 = vmatmul.mubr.msk.f32.vlgmr.msra.gmra.mrb[12].mxu0 %vm41_vm4, %v990_v39 }
 0x683   :  { %5690 = vmatpush3.bf16.xpose.msk.msra.mxu0 %vm6278_vm12, %v5685_v27  ;;  %5315 = vmatprep.mubr.msk.f32.mxu0 %vm469_vm11, %v1080_v40 }
 0x684   :  { %5705 = vmatprep.subr.msk.bf16.mxu0 %vm6154_vm3, %v6336_v9 }
 0x68a   :  { %5316 = vmatmul.mubr.msk.f32.vlgmr.msra.gmra.mrb[14].mxu0 %vm469_vm11, %v1082_v49 }
 0x68b   :  { %5708 = vmatpush3.bf16.msk.msra.mxu0 %vm6154_vm3, %v6336_v9 }
 0x755   :  { %v6404_v42 = vpop.f32.mrb[12].mxu0 }
 0x756   :  { %v6406_v43 = vpop.f32.mrb[13].mxu0 }
 0x75d   :  { %v5317_v44 = vpop.f32.mrb[14].mxu0 }
 0x75e   :  { %v1171_v45 = vmul.f32 0.35355338, %v5317_v44  ;;  %v1161_v46 = vpop.f32.mrb[15].mxu0 }
 0x75f   :  { %v1170_v48 = vmul.f32 0.35355338, %v1161_v46 }
 0x760   :  { %v1173_v50 = vadd.f32 %v1171_v45, %v6315_v22 }
 0x761   :  { %v1172_v51 = vadd.f32 %v1170_v48, %v6315_v22 }
 0x762   :  { %v1177_v53 = vsel %vm564_vm14, %v1173_v50, -inf }
 0x763   :  { %1178 = vmax.xlane.f32.xlu0 %v1177_v53  ;;  %v1174_v55 = vsel %vm41_vm4, %v1172_v51, -inf }
 0x764   :  { %1175 = vmax.xlane.f32.xlu1 %v1174_v55 }
 0x7f0   :  { %v1179_v61 = vpop.xlane.xlu0 %1178 }
 0x7f1   :  { %v1181_v9 = vsub.f32 %v1173_v50, %v1179_v61  ;;  %v1176_v62 = vpop.xlane.xlu1 %1175 }
 0x7f2   :  { %v1180_v63 = vsub.f32 %v1172_v51, %v1176_v62 }
 0x7f3   :  { %v1184_v4 = vmul.f32 1.442695, %v1181_v9 }
 0x7f4   :  { %v1182_v5 = vmul.f32 1.442695, %v1180_v63 }
 0x7f5   :  { %5983 = vpow2.f32 %v1184_v4 }
 0x7f6   :  { %5985 = vpow2.f32 %v1182_v5 }
 0x7ff   :  { %v5984_v6 = vpop.eup %5983 }
 0x800   :  { %v5986_v8 = vpop.eup %5985  ;;  %v1189_v11 = vsel %vm564_vm14, %v5984_v6, 0.0 }
 0x801   :  { %1190 = vadd.xlane.f32.xlu1 %v1189_v11  ;;  %v1186_v22 = vsel %vm41_vm4, %v5986_v8, 0.0 }
 0x802   :  { %1187 = vadd.xlane.f32.xlu0 %v1186_v22 }
 0x812   :  { %5905 = vrot.lane.b32.xlu1 %v6425_v16, %s6080_s26 }
 0x818   :  { %5900 = vrot.lane.b32.xlu0 %v6327_v2, %s6086_s11 }
 0x88e   :  { %v1191_v17 = vpop.xlane.xlu1 %1190 }
 0x88f   :  { %5987 = vrcp.f32 %v1191_v17  ;;  %v1188_v47 = vpop.xlane.xlu0 %1187 }
 0x890   :  { %5989 = vrcp.f32 %v1188_v47 }
 0x892   :  { %v5906_v56 = vpop.permute.xlu1 %5905 }
 0x893   :  { %v5901_v52 = vpop.permute.xlu0 %5900  ;;  %v5908_v18 = vunpack.i.h.bf16 %v5906_v56  ;;  %v5907_v20 = vunpack.i.l.bf16 %v5906_v56 }
 0x894   :  { %v5903_v23 = vunpack.i.h.bf16 %v5901_v52  ;;  %v5902_v24 = vunpack.i.l.bf16 %v5901_v52 }
 0x895   :  { %v5697_v54 = vpack.c.bf16 %v5908_v18, %v5907_v20 }
 0x896   :  { %v5691_v25 = vpack.c.bf16 %v5903_v23, %v5902_v24 }
 0x898   :  { %5693 = vmatprep.subr.msk.bf16.mxu1 %vm6154_vm3, %v5691_v25 }
 0x899   :  { %v5988_v26 = vpop.eup %5987  ;;  %5696 = vmatpush3.bf16.msk.msra.mxu1 %vm6154_vm3, %v5691_v25 }
 0x89a   :  { %v5990_v2 = vpop.eup %5989  ;;  %5699 = vmatprep.subr.msk.bf16.mxu1 %vm6278_vm12, %v5697_v54  ;;  %v1195_v28 = vmul.f32 %v5988_v26, %v5984_v6 }
 0x89b   :  { %v1194_v27 = vmul.f32 %v5990_v2, %v5986_v8 }
 0x89d   :  { %5322 = vmatprep.mubr.msk.f32.mxu1 %vm41_vm4, %v1194_v27 }
 0x89e   :  { %5323 = vmatmul.mubr.msk.f32.vlgmr.msra.gmra.mrb[14].mxu1 %vm41_vm4, %v1195_v28 }
 0x89f   :  { %5329 = vmatprep.mubr.msk.f32.mxu1 %vm469_vm11, %v6421_v15 }
 0x8a2   :  { %5702 = vmatpush3.bf16.xpose.msk.msra.mxu1 %vm6278_vm12, %v5697_v54 }
 0x8a9   :  { %5330 = vmatmul.mubr.msk.f32.vlgmr.msra.gmra.mrb[16].mxu1 %vm469_vm11, %v6416_v13 }
 0x971   :  { %v6445_v29 = vpop.f32.mrb[14].mxu1 }
 0x972   :  { %v6447_v30 = vpop.f32.mrb[15].mxu1 }
 0x97c   :  { %v5331_v33 = vpop.f32.mrb[16].mxu1 }
 0x97d   :  { %v1409_v34 = vmul.f32 0.35355338, %v5331_v33  ;;  %v1399_v35 = vpop.f32.mrb[17].mxu1 }
 0x97e   :  { %v1408_v38 = vmul.f32 0.35355338, %v1399_v35 }
 0x97f   :  { %v1415_v39 = vadd.f32 %v6451_v32, %v1409_v34 }
 0x980   :  { %v1414_v40 = vadd.f32 %v6451_v32, %v1408_v38 }
 0x981   :  { %v1419_v49 = vsel %vm564_vm14, %v1415_v39, -inf }
 0x982   :  { %1420 = vmax.xlane.f32.xlu0 %v1419_v49  ;;  %v1416_v44 = vsel %vm41_vm4, %v1414_v40, -inf }
 0x983   :  { %1417 = vmax.xlane.f32.xlu1 %v1416_v44 }
 0xa0f   :  { %v1421_v45 = vpop.xlane.xlu0 %1420 }
 0xa10   :  { %v1423_v46 = vsub.f32 %v1415_v39, %v1421_v45  ;;  %v1418_v19 = vpop.xlane.xlu1 %1417 }
 0xa11   :  { %v1422_v48 = vsub.f32 %v1414_v40, %v1418_v19 }
 0xa12   :  { %v1426_v21 = vmul.f32 1.442695, %v1423_v46 }
 0xa13   :  { %v1424_v50 = vmul.f32 1.442695, %v1422_v48 }
 0xa14   :  { %5991 = vpow2.f32 %v1426_v21 }
 0xa15   :  { %5993 = vpow2.f32 %v1424_v50 }
 0xa1e   :  { %v5992_v51 = vpop.eup %5991 }
 0xa1f   :  { %v5994_v53 = vpop.eup %5993  ;;  %v1431_v55 = vsel %vm564_vm14, %v5992_v51, 0.0 }
 0xa20   :  { %1432 = vadd.xlane.f32.xlu1 %v1431_v55  ;;  %v1428_v61 = vsel %vm41_vm4, %v5994_v53, 0.0 }
 0xa21   :  { %1429 = vadd.xlane.f32.xlu0 %v1428_v61 }
 0xa31   :  { %1526 = vrot.lane.b32.xlu1 %v6421_v15, %s6079_s25 }
 0xa35   :  { %1528 = vrot.lane.b32.xlu1 %v6416_v13, %s6079_s25 }
 0xa37   :  { %5910 = vrot.lane.b32.xlu0 %v6425_v16, %s6082_s1 }
 0xaad   :  { %v1433_v9 = vpop.xlane.xlu1 %1432 }
 0xaae   :  { %5995 = vrcp.f32 %v1433_v9  ;;  %v1430_v62 = vpop.xlane.xlu0 %1429 }
 0xaaf   :  { %5997 = vrcp.f32 %v1430_v62 }
 0xab1   :  { %v1527_v14 = vpop.permute.xlu1 %1526 }
 0xab2   :  { %v5911_v63 = vpop.permute.xlu0 %5910 }
 0xab3   :  { %v5913_v4 = vunpack.i.h.bf16 %v5911_v63  ;;  %v5912_v5 = vunpack.i.l.bf16 %v5911_v63 }
 0xab5   :  { %v5709_v6 = vpack.c.bf16 %v5913_v4, %v5912_v5  ;;  %v1529_v17 = vpop.permute.xlu1 %1528 }
 0xab7   :  { %5711 = vmatprep.subr.msk.bf16.mxu0 %vm6278_vm12, %v5709_v6 }
 0xab8   :  { %v5996_v8 = vpop.eup %5995 }
 0xab9   :  { %v5998_v11 = vpop.eup %5997  ;;  %v1437_v12 = vmul.f32 %v5996_v8, %v5992_v51 }
 0xaba   :  { %v1436_v22 = vmul.f32 %v5998_v11, %v5994_v53 }
 0xabc   :  { %5336 = vmatprep.mubr.msk.f32.mxu0 %vm41_vm4, %v1436_v22 }
 0xabd   :  { %5337 = vmatmul.mubr.msk.f32.vlgmr.msra.gmra.mrb[16].mxu0 %vm41_vm4, %v1437_v12 }
 0xabe   :  { %5714 = vmatpush3.bf16.xpose.msk.msra.mxu0 %vm6278_vm12, %v5709_v6  ;;  %5343 = vmatprep.mubr.msk.f32.mxu0 %vm469_vm11, %v1527_v14 }
 0xac5   :  { %5344 = vmatmul.mubr.msk.f32.vlgmr.msra.gmra.mrb[18].mxu0 %vm469_vm11, %v1529_v17 }
 0xb90   :  { %v6473_v47 = vpop.f32.mrb[16].mxu0 }
 0xb91   :  { %v6475_v56 = vpop.f32.mrb[17].mxu0 }
 0xb98   :  { %v5345_v52 = vpop.f32.mrb[18].mxu0 }
 0xb99   :  { %v1618_v18 = vmul.f32 0.35355338, %v5345_v52  ;;  %v1608_v20 = vpop.f32.mrb[19].mxu0 }
 0xb9a   :  { %v1617_v23 = vmul.f32 0.35355338, %v1608_v20 }
 0xb9b   :  { %v1620_v24 = vadd.f32 %v1618_v18, %v6451_v32 }
 0xb9c   :  { %v1619_v25 = vadd.f32 %v1617_v23, %v6451_v32 }
 0xb9d   :  { %v1624_v54 = vsel %vm564_vm14, %v1620_v24, -inf }
 0xb9e   :  { %1625 = vmax.xlane.f32.xlu1 %v1624_v54  ;;  %v1621_v26 = vsel %vm41_vm4, %v1619_v25, -inf }
 0xb9f   :  { %1622 = vmax.xlane.f32.xlu0 %v1621_v26 }
 0xbaf   :  { %5915 = vrot.lane.b32.xlu1 %v6338_v10, %s6079_s25 }
 0xbb3   :  { %1731 = vrot.lane.b32.xlu1 %v6421_v15, %s6083_s2 }
 0xbb7   :  { %1733 = vrot.lane.b32.xlu1 %v6416_v13, %s6083_s2 }
 0xc2b   :  { %v1626_v2 = vpop.xlane.xlu1 %1625 }
 0xc2c   :  { %v1628_v27 = vsub.f32 %v1620_v24, %v1626_v2  ;;  %v1623_v28 = vpop.xlane.xlu0 %1622 }
 0xc2d   :  { %v1627_v31 = vsub.f32 %v1619_v25, %v1623_v28 }
 0xc2e   :  { %v1631_v33 = vmul.f32 1.442695, %v1628_v27 }
 0xc2f   :  { %v1629_v34 = vmul.f32 1.442695, %v1627_v31  ;;  %v5916_v35 = vpop.permute.xlu1 %5915 }
 0xc30   :  { %5999 = vpow2.f32 %v1631_v33  ;;  %v5918_v38 = vunpack.i.h.bf16 %v5916_v35  ;;  %v5917_v39 = vunpack.i.l.bf16 %v5916_v35 }
 0xc31   :  { %6001 = vpow2.f32 %v1629_v34 }
 0xc32   :  { %v5715_v40 = vpack.c.bf16 %v5918_v38, %v5917_v39 }
 0xc33   :  { %v1732_v63 = vpop.permute.xlu1 %1731 }
 0xc34   :  { %5717 = vmatprep.subr.msk.bf16.mxu1 %vm6154_vm3, %v5715_v40 }
 0xc35   :  { %5720 = vmatpush3.bf16.msk.msra.mxu1 %vm6154_vm3, %v5715_v40 }
 0xc37   :  { %v1734_v4 = vpop.permute.xlu1 %1733 }
 0xc3a   :  { %v6000_v49 = vpop.eup %5999 }
 0xc3b   :  { %v1636_v44 = vsel %vm564_vm14, %v6000_v49, 0.0  ;;  %v6002_v45 = vpop.eup %6001 }
 0xc3c   :  { %1637 = vadd.xlane.f32.xlu0 %v1636_v44  ;;  %v1633_v46 = vsel %vm41_vm4, %v6002_v45, 0.0 }
 0xc40   :  { %1634 = vadd.xlane.f32.xlu0 %v1633_v46 }
 0xc56   :  { %5920 = vrot.lane.b32.xlu0 %v6425_v16, %s6084_s29 }
 0xcc9   :  { %v1638_v19 = vpop.xlane.xlu0 %1637 }
 0xcca   :  { %6003 = vrcp.f32 %v1638_v19 }
 0xccd   :  { %v1635_v48 = vpop.xlane.xlu0 %1634 }
 0xcce   :  { %6005 = vrcp.f32 %v1635_v48 }
 0xcd1   :  { %v5921_v21 = vpop.permute.xlu0 %5920 }
 0xcd2   :  { %v5923_v50 = vunpack.i.h.bf16 %v5921_v21  ;;  %v5922_v51 = vunpack.i.l.bf16 %v5921_v21 }
 0xcd4   :  { %v5721_v53 = vpack.c.bf16 %v5923_v50, %v5922_v51  ;;  %v6004_v55 = vpop.eup %6003 }
 0xcd5   :  { %v1642_v62 = vmul.f32 %v6004_v55, %v6000_v49 }
 0xcd6   :  { %5723 = vmatprep.subr.msk.bf16.mxu1 %vm6278_vm12, %v5721_v53 }
 0xcd8   :  { %v6006_v61 = vpop.eup %6005 }
 0xcd9   :  { %v1641_v9 = vmul.f32 %v6006_v61, %v6002_v45 }
 0xcdb   :  { %5350 = vmatprep.mubr.msk.f32.mxu1 %vm41_vm4, %v1641_v9 }
 0xcdc   :  { %5351 = vmatmul.mubr.msk.f32.vlgmr.msra.gmra.mrb[18].mxu1 %vm41_vm4, %v1642_v62 }
 0xcdd   :  { %5726 = vmatpush3.bf16.xpose.msk.msra.mxu1 %vm6278_vm12, %v5721_v53  ;;  %5357 = vmatprep.mubr.msk.f32.mxu1 %vm469_vm11, %v1732_v63 }
 0xce4   :  { %5358 = vmatmul.mubr.msk.f32.vlgmr.msra.gmra.mrb[20].mxu1 %vm469_vm11, %v1734_v4 }
 0xdaf   :  { %v6503_v5 = vpop.f32.mrb[18].mxu1 }
 0xdb0   :  { %v6505_v6 = vpop.f32.mrb[19].mxu1 }
 0xdb7   :  { %v5359_v8 = vpop.f32.mrb[20].mxu1 }
 0xdb8   :  { %v1823_v11 = vmul.f32 0.35355338, %v5359_v8  ;;  %v1813_v22 = vpop.f32.mrb[21].mxu1 }
 0xdb9   :  { %v1822_v12 = vmul.f32 0.35355338, %v1813_v22 }
 0xdba   :  { %v1825_v14 = vadd.f32 %v1823_v11, %v6451_v32 }
 0xdbb   :  { %v1824_v17 = vadd.f32 %v1822_v12, %v6451_v32 }
 0xdbc   :  { %v1829_v52 = vsel %vm564_vm14, %v1825_v14, -inf }
 0xdbd   :  { %1830 = vmax.xlane.f32.xlu1 %v1829_v52  ;;  %v1826_v18 = vsel %vm41_vm4, %v1824_v17, -inf }
 0xdbe   :  { %1827 = vmax.xlane.f32.xlu0 %v1826_v18 }
 0xdce   :  { %5925 = vrot.lane.b32.xlu1 %v6338_v10, %s6083_s2 }
 0xdd2   :  { %1936 = vrot.lane.b32.xlu1 %v6421_v15, %s6086_s11 }
 0xdd6   :  { %1938 = vrot.lane.b32.xlu1 %v6416_v13, %s6086_s11 }
 0xe4a   :  { %v1831_v20 = vpop.xlane.xlu1 %1830 }
 0xe4b   :  { %v1833_v23 = vsub.f32 %v1825_v14, %v1831_v20  ;;  %v1828_v24 = vpop.xlane.xlu0 %1827 }
 0xe4c   :  { %v1832_v25 = vsub.f32 %v1824_v17, %v1828_v24 }
 0xe4d   :  { %v1836_v54 = vmul.f32 1.442695, %v1833_v23 }
 0xe4e   :  { %v1834_v26 = vmul.f32 1.442695, %v1832_v25  ;;  %v5926_v2 = vpop.permute.xlu1 %5925 }
 0xe4f   :  { %6007 = vpow2.f32 %v1836_v54  ;;  %v5928_v27 = vunpack.i.h.bf16 %v5926_v2  ;;  %v5927_v28 = vunpack.i.l.bf16 %v5926_v2 }
 0xe50   :  { %6009 = vpow2.f32 %v1834_v26 }
 0xe51   :  { %v5727_v31 = vpack.c.bf16 %v5928_v27, %v5927_v28  ;;  %v460_v27 = vld [vmem:[%s7100_s5 + $0x58] sm:$0xff]  ;;  %v461_v28 = vld [vmem:[%s7100_s5 + $0x60] sm:$0xff] }
 0xe52   :  { %v1937_v21 = vpop.permute.xlu1 %1936 }
 0xe53   :  { %5729 = vmatprep.subr.msk.bf16.mxu0 %vm6154_vm3, %v5727_v31 }
 0xe54   :  { %5732 = vmatpush3.bf16.msk.msra.mxu0 %vm6154_vm3, %v5727_v31  ;;  %v5749_v31 = vpack.c.bf16 %v461_v28, %v460_v27 }
 0xe59   :  { %v6008_v15 = vpop.eup %6007 }
 0xe5a   :  { %v1841_v13 = vsel %vm564_vm14, %v6008_v15, 0.0  ;;  %v6010_v33 = vpop.eup %6009 }
 0xe5b   :  { %1842 = vadd.xlane.f32.xlu0 %v1841_v13  ;;  %v1838_v34 = vsel %vm41_vm4, %v6010_v33, 0.0 }
 0xe5f   :  { %1839 = vadd.xlane.f32.xlu0 %v1838_v34 }
 0xe75   :  { %5930 = vrot.lane.b32.xlu0 %v6425_v16, %s6085_s30  ;;  %v1939_v16 = vpop.permute.xlu1 %1938 }
 0xee8   :  { %v1843_v35 = vpop.xlane.xlu0 %1842 }
 0xee9   :  { %6011 = vrcp.f32 %v1843_v35 }
 0xeec   :  { %v1840_v38 = vpop.xlane.xlu0 %1839 }
 0xeed   :  { %6013 = vrcp.f32 %v1840_v38 }
 0xef0   :  { %v5931_v39 = vpop.permute.xlu0 %5930 }
 0xef1   :  { %v5933_v40 = vunpack.i.h.bf16 %v5931_v39  ;;  %v5932_v49 = vunpack.i.l.bf16 %v5931_v39 }
 0xef3   :  { %v5733_v44 = vpack.c.bf16 %v5933_v40, %v5932_v49  ;;  %v6012_v45 = vpop.eup %6011 }
 0xef4   :  { %v1847_v48 = vmul.f32 %v6012_v45, %v6008_v15 }
 0xef5   :  { %5735 = vmatprep.subr.msk.bf16.mxu0 %vm6278_vm12, %v5733_v44 }
 0xef7   :  { %v6014_v46 = vpop.eup %6013 }
 0xef8   :  { %v1846_v19 = vmul.f32 %v6014_v46, %v6010_v33 }
 0xefa   :  { %5364 = vmatprep.mubr.msk.f32.mxu0 %vm41_vm4, %v1846_v19 }
 0xefb   :  { %5365 = vmatmul.mubr.msk.f32.vlgmr.msra.gmra.mrb[20].mxu0 %vm41_vm4, %v1847_v48 }
 0xefc   :  { %5738 = vmatpush3.bf16.xpose.msk.msra.mxu0 %vm6278_vm12, %v5733_v44  ;;  %5371 = vmatprep.mubr.msk.f32.mxu0 %vm469_vm11, %v1937_v21 }
 0xefd   :  { %5751 = vmatprep.subr.bf16.mxu0 %v6075_v0 }
 0xf03   :  { %5372 = vmatmul.mubr.msk.f32.vlgmr.msra.gmra.mrb[22].mxu0 %vm469_vm11, %v1939_v16 }
 0xf04   :  { %5406 = vmatprep.mubr.msk.f32.mxu0 %vm6077_vm6, %v6078_v7 }
 0xfce   :  { %v6536_v50 = vpop.f32.mrb[20].mxu0 }
 0xfcf   :  { %v1927_v51 = vpop.f32.mrb[21].mxu0 }
 0xfd6   :  { %v5373_v53 = vpop.f32.mrb[22].mxu0 }
 0xfd7   :  { %v2028_v55 = vmul.f32 0.35355338, %v5373_v53  ;;  %v2018_v61 = vpop.f32.mrb[23].mxu0 }
 0xfd8   :  { %v2027_v9 = vmul.f32 0.35355338, %v2018_v61 }
 0xfd9   :  { %v2030_v1 = vadd.f32 %v2028_v55, %v6451_v32 }
 0xfda   :  { %v2029_v62 = vadd.f32 %v2027_v9, %v6451_v32 }
 0xfdb   :  { %v2034_v63 = vsel %vm564_vm14, %v2030_v1, -inf }
 0xfdc   :  { %2035 = vmax.xlane.f32.xlu1 %v2034_v63  ;;  %v2031_v4 = vsel %vm41_vm4, %v2029_v62, -inf }
 0xfdd   :  { %2032 = vmax.xlane.f32.xlu0 %v2031_v4 }
 0xfed   :  { %5935 = vrot.lane.b32.xlu1 %v6338_v10, %s6086_s11 }
 0xff1   :  { %1294 = vrot.lane.b32.xlu1 %v6406_v43, %s6087_s12 }
 0xff5   :  { %2143 = vrot.lane.b32.xlu1 %v6505_v6, %s6088_s13 }
 0xff9   :  { %2151 = vrot.lane.b32.xlu1 %v1927_v51, %s6087_s12 }
0x1069   :  { %v2036_v32 = vpop.xlane.xlu1 %2035 }
0x106a   :  { %v2038_v8 = vsub.f32 %v2030_v1, %v2036_v32  ;;  %v2033_v11 = vpop.xlane.xlu0 %2032 }
0x106b   :  { %v2037_v22 = vsub.f32 %v2029_v62, %v2033_v11  ;;  %v2330_v11 = vld [vmem:[%s7105_s6] sm:$0xff] }
0x106c   :  { %v2041_v12 = vmul.f32 1.442695, %v2038_v8 }
0x106d   :  { %v2039_v14 = vmul.f32 1.442695, %v2037_v22  ;;  %v5936_v17 = vpop.permute.xlu1 %5935  ;;  %v2331_v22 = vld [vmem:[%s7105_s6 + $0x8] sm:$0xff] }
0x106e   :  { %v5938_v52 = vunpack.i.h.bf16 %v5936_v17  ;;  %v5937_v18 = vunpack.i.l.bf16 %v5936_v17  ;;  %v2333_v17 = vld [vmem:[%s7105_s6 + $0x18] sm:$0xff] }
0x106f   :  { %6015 = vpow2.f32 %v2039_v14  ;;  %v2332_v14 = vld [vmem:[%s7105_s6 + $0x10] sm:$0xff] }
0x1070   :  { %v5739_v10 = vpack.c.bf16 %v5938_v52, %v5937_v18  ;;  %6017 = vpow2.f32 %v2041_v12  ;;  %v5752_v12 = vpack.c.bf16 %v2331_v22, %v2330_v11  ;;  %v5755_v52 = vpack.c.bf16 %v2333_v17, %v2332_v14 }
0x1071   :  { %v1295_v33 = vpop.permute.xlu1 %1294 }
0x1072   :  { %5741 = vmatprep.subr.msk.bf16.mxu1 %vm6154_vm3, %v5739_v10  ;;  %5753 = vmatpush3.bf16.msra.mxu0 %v5752_v12 }
0x1073   :  { %5744 = vmatpush3.bf16.msk.msra.mxu1 %vm6154_vm3, %v5739_v10  ;;  %vm1310_vm3 = vcmask 130048   ;;  %5754 = vmatprep.subr.bf16.mxu0 %v6075_v0 }
0x1074   :  { %5745 = vmatprep.subr.bf16.mxu1 %v6075_v0 }
0x1075   :  { %v2144_v19 = vpop.permute.xlu1 %2143 }
0x1076   :  { %5756 = vmatpush3.bf16.msra.mxu0 %v5755_v52 }
0x1077   :  { %5769 = vmatprep.subr.bf16.mxu0 %v6075_v0 }
0x1079   :  { %v6016_v43 = vpop.eup %6015  ;;  %v2152_v21 = vpop.permute.xlu1 %2151 }
0x107a   :  { %v2043_v6 = vsel %vm41_vm4, %v6016_v43, 0.0  ;;  %v6018_v20 = vpop.eup %6017 }
0x107b   :  { %2044 = vadd.xlane.f32.xlu0 %v2043_v6  ;;  %v2046_v23 = vsel %vm564_vm14, %v6018_v20, 0.0 }
0x107f   :  { %2047 = vadd.xlane.f32.xlu0 %v2046_v23 }
0x1095   :  { %1286 = vrot.lane.b32.xlu0 %v6370_v60, %s6088_s13  ;;  %v458_v60 = vld [vmem:[%s7100_s5 + $0x48] sm:$0xff] }
0x1099   :  { %1302 = vrot.lane.b32.xlu0 %v6447_v30, %s6089_s14  ;;  %v459_v30 = vld [vmem:[%s7100_s5 + $0x50] sm:$0xff] }
0x109a   :  { %v5746_v26 = vpack.c.bf16 %v459_v30, %v458_v60 }
0x109d   :  { %1288 = vrot.lane.b32.xlu0 %v6368_v59, %s6088_s13 }
0x10a1   :  { %1296 = vrot.lane.b32.xlu0 %v6404_v42, %s6087_s12 }
0x1108   :  { %v2045_v3 = vpop.xlane.xlu0 %2044 }
0x1109   :  { %6019 = vrcp.f32 %v2045_v3  ;;  %v6640_v3 = vld [vmem:[%s7100_s5 + $0x78] ss:$0 sm:$0xff] }
0x110c   :  { %v2048_v24 = vpop.xlane.xlu0 %2047 }
0x110d   :  { %6021 = vrcp.f32 %v2048_v24 }
0x1110   :  { %v1287_v42 = vpop.permute.xlu0 %1286 }
0x1111   :  { %v1308_v15 = vsel %vm469_vm11, %v6366_v58, %v1287_v42  ;;  %v6595_v58 = vld [vmem:[%s7100_s5 + $0x68] ss:$0 sm:$0xff] }
0x1112   :  { %v1311_v34 = vsel %vm1310_vm3, %v1308_v15, %v1295_v33  ;;  %v2432_v42 = vld [vmem:[%s7100_s5 + $0x88] sm:$0xff]  ;;  %v2434_v33 = vld [vmem:[%s7100_s5 + $0x98] sm:$0xff] }
0x1113   :  { %v6020_v25 = vpop.eup %6019 }
0x1114   :  { %v2051_v54 = vmul.f32 %v6020_v25, %v6016_v43  ;;  %v1303_v13 = vpop.permute.xlu0 %1302 }
0x1115   :  { %v1314_v35 = vsel %vm1313_vm2, %v1311_v34, %v1303_v13  ;;  %v2433_v13 = vld [vmem:[%s7100_s5 + $0x90] sm:$0xff] }
0x1116   :  { %5378 = vmatprep.mubr.msk.f32.mxu1 %vm41_vm4, %v2051_v54  ;;  %v5761_v34 = vpack.c.bf16 %v2434_v33, %v2433_v13 }
0x1117   :  { %v6022_v59 = vpop.eup %6021 }
0x1118   :  { %v2052_v2 = vmul.f32 %v6022_v59, %v6018_v20  ;;  %v1289_v48 = vpop.permute.xlu0 %1288  ;;  %v6635_v20 = vld [vmem:[%s7100_s5 + $0x70] ss:$0 sm:$0xff] }
0x1119   :  { %v1309_v61 = vsel %vm469_vm11, %v6364_v57, %v1289_v48 }
0x111a   :  { %5379 = vmatmul.mubr.msk.f32.vlgmr.msra.gmra.mrb[22].mxu1 %vm41_vm4, %v2052_v2  ;;  %v2431_v2 = vld [vmem:[%s7100_s5 + $0x80] sm:$0xff]  ;;  %vm2444_vm4 = vcmask 523264  }
0x111b   :  { %5747 = vmatpush3.bf16.msra.mxu1 %v5746_v26  ;;  %5389 = vmatprep.mubr.msk.f32.mxu1 %vm6077_vm6, %v6078_v7  ;;  %v5758_v27 = vpack.c.bf16 %v2432_v42, %v2431_v2 }
0x111c   :  { %5748 = vmatprep.subr.bf16.mxu1 %v6075_v0  ;;  %v1297_v53 = vpop.permute.xlu0 %1296 }
0x111f   :  { %5750 = vmatpush3.bf16.msra.mxu1 %v5749_v31 }
0x1120   :  { %5757 = vmatprep.subr.bf16.mxu1 %v6075_v0 }
0x1122   :  { %5390 = vmatmul.mubr.msk.f32.vlgmr.msra.gmra.mrb[24].mxu1 %vm257_vm10, %v1314_v35  ;;  %v2435_v35 = vld [vmem:[%s7100_s5 + $0xa0] sm:$0xff] }
0x1123   :  { %5392 = vmatprep.mubr.msk.f32.mxu1 %vm6077_vm6, %v6078_v7  ;;  %5759 = vmatpush3.bf16.msra.mxu1 %v5758_v27 }
0x1124   :  { %5760 = vmatprep.subr.bf16.mxu1 %v6075_v0 }
0x1127   :  { %5762 = vmatpush3.bf16.msra.mxu1 %v5761_v34 }
0x1128   :  { %5763 = vmatprep.subr.bf16.mxu1 %v6075_v0 }
0x11ed   :  { %v5380_v38 = vpop.f32.mrb[22].mxu1 }
0x11ee   :  { %v2132_v39 = vpop.f32.mrb[23].mxu1 }
0x11ef   :  { %2159 = vrot.lane.b32.xlu1 %v2132_v39, %s6089_s14 }
0x11f3   :  { %1304 = vrot.lane.b32.xlu1 %v6445_v29, %s6089_s14  ;;  %v2165_v29 = vsel %vm469_vm11, %v6475_v56, %v2144_v19 }
0x11f4   :  { %v2167_v16 = vsel %vm1310_vm3, %v2165_v29, %v2152_v21 }
0x11f5   :  { %v2256_v40 = vpop.f32.mrb[24].mxu1 }
0x11f6   :  { %v2257_v49 = vadd.f32 %v6595_v58, %v2256_v40  ;;  %v5391_v44 = vpop.f32.mrb[25].mxu1  ;;  %v2437_v40 = vld [vmem:[%s7100_s5 + $0xb0] sm:$0xff] }
0x11f8   :  { %v2270_v45 = vadd.f32 %v2257_v49, %v6226_v37  ;;  %v1312_v37 = vsel %vm1310_vm3, %v1309_v61, %v1297_v53  ;;  %v2438_v49 = vld [vmem:[%s7100_s5 + $0xb8] sm:$0xff]  ;;  %v6692_v53 = vld [vmem:[%s7105_s6 + $0x20] ss:$0 sm:$0xff] }
0x11f9   :  { %v5767_v44 = vpack.c.bf16 %v2438_v49, %v2437_v40 }
0x11fa   :  { %v2275_v46 = vsel %vm257_vm10, %v2270_v45, 0.0 }
0x11fb   :  { %2276 = vadd.xlane.f32.xlu0 %v2275_v46 }
0x1261   :  { %v2160_v51 = vpop.permute.xlu1 %2159 }
0x1262   :  { %v6604_v55 = vsel %vm1313_vm2, %v2167_v16, %v2160_v51 }
0x1263   :  { %v2173_v9 = vrot.slane %v6604_v55, 6 }
0x1265   :  { %v1305_v1 = vpop.permute.xlu1 %1304 }
0x1266   :  { %v1315_v62 = vsel %vm1313_vm2, %v1312_v37, %v1305_v1 }
0x1267   :  { %v2177_v56 = vsel %vm48_vm0, %v1315_v62, %v2173_v9 }
0x1268   :  { %5393 = vmatmul.mubr.msk.f32.gmra.mrb[26].mxu1 %vm257_vm10, %v2177_v56 }
0x1269   :  { %5395 = vmatprep.mubr.msk.f32.mxu1 %vm6077_vm6, %v6078_v7 }
0x1288   :  { %v2277_v63 = vpop.xlane.xlu0 %2276 }
0x1289   :  { %v2286_v4 = vmul.f32 0.03125, %v2277_v63 }
0x128b   :  { %v2289_v32 = vsub.f32 %v2270_v45, %v2286_v4 }
0x128d   :  { %v2292_v57 = vmul.f32 %v2289_v32, %v2289_v32 }
0x128f   :  { %v2295_v8 = vsel %vm257_vm10, %v2292_v57, 0.0 }
0x1290   :  { %2296 = vadd.xlane.f32.xlu0 %v2295_v8 }
0x131d   :  { %v2297_v18 = vpop.xlane.xlu0 %2296 }
0x131e   :  { %v2304_v10 = vmul.f32 0.03125, %v2297_v18 }
0x1320   :  { %v2307_v43 = vadd.f32 1e-05, %v2304_v10 }
0x1322   :  { %6023 = vrsqrt.f32 %v2307_v43 }
0x132c   :  { %v6024_v6 = vpop.eup %6023 }
0x132d   :  { %v2313_v23 = vmul.f32 %v6024_v6, %v2289_v32 }
0x132f   :  { %v2320_v24 = vmul.f32 %v6635_v20, %v2313_v23 }
0x1331   :  { %v6644_v25 = vadd.f32 %v6640_v3, %v2320_v24  ;;  %v4960_v24 = vld [vmem:[%s7100_s5 + $0xc0] ss:$0 sm:$0xff] }
0x1333   :  { %5407 = vmatmul.mubr.msk.f32.vlgmr.msra.gmra.mrb[24].mxu0 %vm257_vm10, %v6644_v25 }
0x1334   :  { %5409 = vmatprep.mubr.msk.f32.mxu0 %vm6077_vm6, %v6078_v7 }
0x133b   :  { %v2261_v54 = vpop.f32.mrb[26].mxu1 }
0x133c   :  { %v2262_v60 = vadd.f32 %v6595_v58, %v2261_v54  ;;  %v5394_v30 = vpop.f32.mrb[27].mxu1 }
0x133e   :  { %v2271_v59 = vadd.f32 %v2262_v60, %v6232_v41 }
0x1340   :  { %v2278_v26 = vsel %vm257_vm10, %v2271_v59, 0.0 }
0x1341   :  { %2279 = vadd.xlane.f32.xlu1 %v2278_v26 }
0x1352   :  { %2145 = vrot.lane.b32.xlu1 %v6503_v5, %s6088_s13 }
0x1356   :  { %2161 = vrot.lane.b32.xlu1 %v5380_v38, %s6089_s14  ;;  %v2436_v38 = vld [vmem:[%s7100_s5 + $0xa8] sm:$0xff] }
0x1357   :  { %v5764_v39 = vpack.c.bf16 %v2436_v38, %v2435_v35 }
0x1359   :  { %5765 = vmatpush3.bf16.msra.mxu1 %v5764_v39 }
0x135a   :  { %5766 = vmatprep.subr.bf16.mxu1 %v6075_v0 }
0x135d   :  { %5768 = vmatpush3.bf16.msra.mxu1 %v5767_v44 }
0x135e   :  { %5781 = vmatprep.subr.bf16.mxu1 %v6075_v0 }
0x13ce   :  { %v2280_v41 = vpop.xlane.xlu1 %2279 }
0x13cf   :  { %v2287_v28 = vmul.f32 0.03125, %v2280_v41 }
0x13d1   :  { %v2290_v31 = vsub.f32 %v2271_v59, %v2287_v28 }
0x13d2   :  { %v2146_v19 = vpop.permute.xlu1 %2145 }
0x13d3   :  { %v2293_v15 = vmul.f32 %v2290_v31, %v2290_v31  ;;  %v2166_v29 = vsel %vm469_vm11, %v6473_v47, %v2146_v19 }
0x13d5   :  { %v2298_v5 = vsel %vm257_vm10, %v2293_v15, 0.0 }
0x13d6   :  { %2299 = vadd.xlane.f32.xlu0 %v2298_v5  ;;  %v2162_v51 = vpop.permute.xlu1 %2161 }
0x13ec   :  { %2153 = vrot.lane.b32.xlu0 %v6536_v50, %s6087_s12 }
0x1406   :  { %v2414_v45 = vpop.f32.mrb[24].mxu0 }
0x1407   :  { %v5408_v46 = vpop.f32.mrb[25].mxu0  ;;  %v2415_v62 = vadd.f32 %v6692_v53, %v2414_v45 }
0x1408   :  { %v2580_v46 = vld [vmem:[%s7105_s6 + $0x30] sm:$0xff] }
0x1409   :  { %v2428_v47 = vmax.f32 %v2415_v62, 0.0 }
0x1463   :  { %v2300_v48 = vpop.xlane.xlu0 %2299 }
0x1464   :  { %v2305_v21 = vmul.f32 0.03125, %v2300_v48  ;;  %v2581_v48 = vld [vmem:[%s7105_s6 + $0x38] sm:$0xff] }
0x1466   :  { %v2308_v50 = vadd.f32 1e-05, %v2305_v21  ;;  %v2582_v21 = vld [vmem:[%s7105_s6 + $0x40] sm:$0xff] }
0x1467   :  { %v2154_v16 = vpop.permute.xlu0 %2153 }
0x1468   :  { %6025 = vrsqrt.f32 %v2308_v50  ;;  %v2168_v61 = vsel %vm1310_vm3, %v2166_v29, %v2154_v16  ;;  %v5773_v50 = vpack.c.bf16 %v2582_v21, %v2581_v48  ;;  %v2666_v29 = vld [vmem:[%s7106_s4] sm:$0x3]  ;;  %v6813_v21 = vld [vmem:[%s7103_s7 + $0x48] ss:$0 sm:$0xff] }
0x1469   :  { %v2170_v37 = vsel %vm1313_vm2, %v2168_v61, %v2162_v51 }
0x146a   :  { %v2174_v1 = vrot.slane %v2170_v37, 6 }
0x146c   :  { %v2175_v56 = vsel %vm48_vm0, %v2173_v9, %v2174_v1  ;;  %vm2281_vm0 = vcmask 257024  }
0x146d   :  { %5396 = vmatmul.mubr.msk.f32.gmra.mrb[28].mxu1 %vm257_vm10, %v2175_v56 }
0x146e   :  { %5431 = vmatprep.mubr.msk.f32.mxu1 %vm6077_vm6, %v6078_v7 }
0x1471   :  { %5432 = vmatmul.mubr.msk.f32.vlgmr.msra.gmra.mrb[30].mxu1 %vm2444_vm4, %v2428_v47 }
0x1472   :  { %v6026_v63 = vpop.eup %6025  ;;  %5434 = vmatprep.mubr.msk.f32.mxu1 %vm6077_vm6, %v6078_v7 }
0x1473   :  { %v2314_v4 = vmul.f32 %v6026_v63, %v2290_v31 }
0x1475   :  { %v2321_v32 = vmul.f32 %v6635_v20, %v2314_v4 }
0x1477   :  { %v2328_v55 = vadd.f32 %v6640_v3, %v2321_v32 }
0x1479   :  { %5410 = vmatmul.mubr.msk.f32.gmra.mrb[26].mxu0 %vm257_vm10, %v2328_v55 }
0x147a   :  { %5412 = vmatprep.mubr.msk.f32.mxu0 %vm6077_vm6, %v6078_v7 }
0x1540   :  { %v2266_v9 = vpop.f32.mrb[28].mxu1 }
0x1541   :  { %v2267_v57 = vadd.f32 %v6595_v58, %v2266_v9  ;;  %v5397_v8 = vpop.f32.mrb[29].mxu1 }
0x1543   :  { %v2272_v11 = vadd.f32 %v2267_v57, %v6223_v36  ;;  %v4965_v57 = vld [vmem:[%s7100_s5 + $0xd0] ss:$0 sm:$0xff] }
0x1544   :  { %v2520_v22 = vpop.f32.mrb[30].mxu1 }
0x1545   :  { %v5433_v12 = vpop.f32.mrb[31].mxu1  ;;  %v2282_v14 = vsel %vm2281_vm0, %v2272_v11, 0.0  ;;  %v2521_v60 = vadd.f32 %v4960_v24, %v2520_v22 }
0x1546   :  { %2283 = vadd.xlane.f32.xlu1 %v2282_v14 }
0x1547   :  { %v2533_v42 = vadd.f32 %v2521_v60, %v6644_v25 }
0x1549   :  { %v2537_v27 = vsel %vm257_vm10, %v2533_v42, 0.0 }
0x154c   :  { %v2419_v17 = vpop.f32.mrb[26].mxu0 }
0x154d   :  { %v2420_v52 = vadd.f32 %v6692_v53, %v2419_v17  ;;  %v5411_v18 = vpop.f32.mrb[27].mxu0 }
0x154e   :  { %v2677_v18 = vld [vmem:[%s7100_s5 + $0xd8] sm:$0xff] }
0x154f   :  { %v2429_v10 = vmax.f32 %v2420_v52, 0.0 }
0x1551   :  { %5435 = vmatmul.mubr.msk.f32.gmra.mrb[32].mxu1 %vm2444_vm4, %v2429_v10  ;;  %v2678_v10 = vld [vmem:[%s7100_s5 + $0xe0] sm:$0xff] }
0x1552   :  { %5437 = vmatprep.mubr.msk.f32.mxu1 %vm6077_vm6, %v6078_v7 }
0x15d3   :  { %v2284_v58 = vpop.xlane.xlu1 %2283 }
0x15d4   :  { %v2288_v43 = vmul.f32 0.03125, %v2284_v58  ;;  %v2679_v58 = vld [vmem:[%s7100_s5 + $0xe8] sm:$0xff] }
0x15d6   :  { %v2291_v6 = vsub.f32 %v2272_v11, %v2288_v43  ;;  %v5776_v43 = vpack.c.bf16 %v2678_v10, %v2677_v18 }
0x15d8   :  { %v2294_v23 = vmul.f32 %v2291_v6, %v2291_v6 }
0x15da   :  { %v2301_v36 = vsel %vm2281_vm0, %v2294_v23, 0.0 }
0x15db   :  { %2302 = vadd.xlane.f32.xlu1 %v2301_v36 }
0x1624   :  { %v2525_v54 = vpop.f32.mrb[32].mxu1 }
0x1625   :  { %v2526_v30 = vadd.f32 %v4960_v24, %v2525_v54  ;;  %v5436_v59 = vpop.f32.mrb[33].mxu1  ;;  %v4966_v54 = vld [vmem:[%s7105_s6 + $0x48] ss:$0 sm:$0xff] }
0x1627   :  { %v2534_v26 = vadd.f32 %v2526_v30, %v2328_v55  ;;  %v4964_v55 = vld [vmem:[%s7100_s5 + $0xc8] ss:$0 sm:$0xff] }
0x1629   :  { %v2540_v2 = vsel %vm257_vm10, %v2534_v26, 0.0 }
0x162a   :  { %2541 = vadd.xlane.f32.xlu0 %v2540_v2 }
0x162e   :  { %2538 = vadd.xlane.f32.xlu0 %v2537_v27  ;;  %v2786_v27 = vld [vmem:[%s7103_s7 + $0x30] sm:$0xff] }
0x1668   :  { %v2303_v41 = vpop.xlane.xlu1 %2302 }
0x1669   :  { %v2306_v28 = vmul.f32 0.03125, %v2303_v41  ;;  %v2787_v41 = vld [vmem:[%s7103_s7 + $0x38] sm:$0xff] }
0x166b   :  { %v2309_v31 = vadd.f32 1e-05, %v2306_v28  ;;  %v2788_v28 = vld [vmem:[%s7103_s7 + $0x40] sm:$0xff] }
0x166d   :  { %6027 = vrsqrt.f32 %v2309_v31 }
0x1677   :  { %v6028_v15 = vpop.eup %6027 }
0x1678   :  { %v2315_v5 = vmul.f32 %v6028_v15, %v2291_v6  ;;  %v2680_v6 = vld [vmem:[%s7100_s5 + $0xf0] sm:$0xff]  ;;  %v5944_v15 = vpack.i.bf16 %v2788_v28, %v2787_v41 }
0x1679   :  { %v5779_v23 = vpack.c.bf16 %v2680_v6, %v2679_v58 }
0x167a   :  { %v2322_v13 = vmul.f32 %v6635_v20, %v2315_v5 }
0x167c   :  { %v2329_v33 = vadd.f32 %v6640_v3, %v2322_v13  ;;  %v2579_v3 = vld [vmem:[%s7105_s6 + $0x28] sm:$0xff] }
0x167d   :  { %v5770_v19 = vpack.c.bf16 %v2580_v46, %v2579_v3  ;;  %v2790_v3 = vld [vmem:[%s7100_s5 + $0x100] sm:$0xff] }
0x167e   :  { %5413 = vmatmul.mubr.msk.f32.gmra.mrb[28].mxu0 %vm257_vm10, %v2329_v33 }
0x167f   :  { %5448 = vmatprep.mubr.msk.f32.mxu0 %vm6077_vm6, %v6078_v7  ;;  %5771 = vmatpush3.bf16.msra.mxu0 %v5770_v19  ;;  %v2759_v19 = vld [vmem:[%s7108_s3] sm:$0xff] }
0x1680   :  { %5772 = vmatprep.subr.bf16.mxu0 %v6075_v0  ;;  %v2766_v48 = vrot.slane %v2759_v19, 6 }
0x1682   :  { %2774 = vst.msk [vmem:[%s7109_s9 + $0x8] sm:$0x3] %vm2773_vm7, %v2766_v48 }
0x1683   :  { %5774 = vmatpush3.bf16.msra.mxu0 %v5773_v50  ;;  %v2776_v50 = vld [vmem:[%s7100_s5 + $0x110] sm:$0xf] }
0x1684   :  { %5775 = vmatprep.subr.bf16.mxu0 %v6075_v0 }
0x16b7   :  { %v2542_v25 = vpop.xlane.xlu0 %2541 }
0x16b8   :  { %v2544_v34 = vmul.f32 0.03125, %v2542_v25 }
0x16ba   :  { %v2546_v35 = vsub.f32 %v2534_v26, %v2544_v34 }
0x16bb   :  { %v2539_v38 = vpop.xlane.xlu0 %2538 }
0x16bc   :  { %v2543_v39 = vmul.f32 0.03125, %v2539_v38  ;;  %v2548_v40 = vmul.f32 %v2546_v35, %v2546_v35 }
0x16be   :  { %v2545_v49 = vsub.f32 %v2533_v42, %v2543_v39  ;;  %v2552_v44 = vsel %vm257_vm10, %v2548_v40, 0.0  ;;  %v2785_v42 = vld [vmem:[%s7103_s7 + $0x28] sm:$0xff] }
0x16bf   :  { %2553 = vadd.xlane.f32.xlu0 %v2552_v44  ;;  %v5782_v31 = vpack.c.bf16 %v2786_v27, %v2785_v42  ;;  %v5939_v25 = vpack.i.bf16 %v2786_v27, %v2785_v42  ;;  %v5785_v44 = vpack.c.bf16 %v2788_v28, %v2787_v41 }
0x16c0   :  { %v2547_v45 = vmul.f32 %v2545_v49, %v2545_v49 }
0x16c1   :  { %5783 = vmatpush3.bf16.msra.mxu1 %v5782_v31 }
0x16c2   :  { %v2549_v20 = vsel %vm257_vm10, %v2547_v45, 0.0  ;;  %5784 = vmatprep.subr.bf16.mxu1 %v6075_v0 }
0x16c3   :  { %2550 = vadd.xlane.f32.xlu1 %v2549_v20 }
0x16c5   :  { %5786 = vmatpush3.bf16.msra.mxu1 %v5785_v44 }
0x16d5   :  { %2668 = vrot.lane.b32.xlu0 %v2666_v29, %s6090_s22  ;;  %v2778_v29 = vrot.slane %v2776_v50, 7 }
0x16d9   :  { %5945 = vrot.lane.b32.xlu0 %v5944_v15, %s6080_s26 }
0x16dd   :  { %5950 = vrot.lane.b32.xlu0 %v5939_v25, %s6081_s27 }
0x174c   :  { %v2554_v16 = vpop.xlane.xlu0 %2553 }
0x174d   :  { %v2556_v51 = vmul.f32 0.03125, %v2554_v16  ;;  %v2775_v16 = vld [vmem:[%s7100_s5 + $0x108] sm:$0x3] }
0x174f   :  { %v2558_v61 = vadd.f32 1e-05, %v2556_v51  ;;  %v2780_v51 = vsel %vm139_vm1, %v2775_v16, %v2778_v29 }
0x1750   :  { %v2551_v37 = vpop.xlane.xlu1 %2550  ;;  %v2669_v5 = vpop.permute.xlu0 %2668 }
0x1751   :  { %6029 = vrsqrt.f32 %v2558_v61  ;;  %v2555_v1 = vmul.f32 0.03125, %v2551_v37  ;;  %v2424_v62 = vpop.f32.mrb[28].mxu0  ;;  %v4968_v61 = vld [vmem:[%s7100_s5 + $0xf8] ss:$0 sm:$0xff]  ;;  %v2761_v37 = vrot.slane %v2759_v19, 7 }
0x1752   :  { %v2425_v56 = vadd.f32 %v6692_v53, %v2424_v62  ;;  %v5414_v47 = vpop.f32.mrb[29].mxu0  ;;  %v2782_v62 = vrot.slane %v2780_v51, 3 }
0x1753   :  { %v2557_v63 = vadd.f32 1e-05, %v2555_v1 }
0x1754   :  { %v2430_v4 = vmax.f32 %v2425_v56, 0.0 }
0x1755   :  { %6031 = vrsqrt.f32 %v2557_v63 }
0x1756   :  { %5438 = vmatmul.mubr.msk.f32.gmra.mrb[34].mxu1 %vm2444_vm4, %v2430_v4 }
0x1757   :  { %5470 = vmatprep.mubr.msk.f32.mxu1 %vm6077_vm6, %v6078_v7 }
0x175a   :  { %5471 = vmatmul.mubr.msk.f32.vlgmr.msra.gmra.mrb[36].mxu1 %vm257_vm10, %v2790_v3 }
0x175b   :  { %v6030_v32 = vpop.eup %6029 }
0x175c   :  { %v2562_v9 = vmul.f32 %v6030_v32, %v2546_v35  ;;  %v2784_v32 = vsel %vm2769_vm9, %v2780_v51, %v2782_v62 }
0x175e   :  { %v2568_v53 = vmul.f32 %v4964_v55, %v2562_v9 }
0x175f   :  { %v6032_v8 = vpop.eup %6031 }
0x1760   :  { %v2561_v11 = vmul.f32 %v6032_v8, %v2545_v49  ;;  %v2574_v22 = vadd.f32 %v4965_v57, %v2568_v53 }
0x1762   :  { %v2567_v12 = vmul.f32 %v4964_v55, %v2561_v11  ;;  %v2576_v17 = vrot.slane %v2574_v22, 1 }
0x1764   :  { %v2573_v14 = vadd.f32 %v4965_v57, %v2567_v12  ;;  %v2869_v57 = vadd.f32 %v2782_v62, %v2766_v48 }
0x1766   :  { %v2578_v52 = vsel %vm139_vm1, %v2573_v14, %v2576_v17 }
0x1767   :  { %5449 = vmatmul.mubr.msk.f32.vlgmr.msra.gmra.mrb[30].mxu0 %vm257_vm10, %v2578_v52 }
0x1768   :  { %5459 = vmatprep.mubr.msk.f32.mxu0 %vm6077_vm6, %v6078_v7  ;;  %5777 = vmatpush3.bf16.msra.mxu0 %v5776_v43 }
0x1769   :  { %5778 = vmatprep.subr.bf16.mxu0 %v6075_v0  ;;  %v5946_v0 = vpop.permute.xlu0 %5945 }
0x176a   :  { %v5948_v45 = vunpack.i.h.bf16 %v5946_v0  ;;  %v5947_v20 = vunpack.i.l.bf16 %v5946_v0 }
0x176c   :  { %5780 = vmatpush3.bf16.msra.mxu0 %v5779_v23  ;;  %v5791_v46 = vpack.c.bf16 %v5948_v45, %v5947_v20 }
0x176d   :  { %v5951_v14 = vpop.permute.xlu0 %5950 }
0x176e   :  { %v5953_v52 = vunpack.i.h.bf16 %v5951_v14  ;;  %v5952_v18 = vunpack.i.l.bf16 %v5951_v14 }
0x1770   :  { %v5795_v43 = vpack.c.bf16 %v5953_v52, %v5952_v18 }
0x1772   :  { %5796 = vmatprep.subr.bf16.mxu1 %v5795_v43 }
0x1773   :  { %5798 = vmatpush3.bf16.msra.mxu1 %v5795_v43 }
0x1829   :  { %v2530_v36 = vpop.f32.mrb[34].mxu1 }
0x182a   :  { %v5439_v24 = vpop.f32.mrb[35].mxu1 }
0x182d   :  { %v2864_v8 = vpop.f32.mrb[36].mxu1 }
0x182e   :  { %v2865_v11 = vadd.f32 %v6813_v21, %v2864_v8  ;;  %v5472_v22 = vpop.f32.mrb[37].mxu1 }
0x183a   :  { %v2657_v60 = vpop.f32.mrb[30].mxu0 }
0x183b   :  { %v2658_v30 = vadd.f32 %v4966_v54, %v2657_v60  ;;  %v5450_v59 = vpop.f32.mrb[31].mxu0 }
0x183d   :  { %2662 = vst.msk [vmem:[%s7107_s8] sm:$0x3] %vm2661_vm5, %v2658_v30  ;;  %v2663_v26 = vmul.f32 0.5, %v2658_v30 }
0x183f   :  { %v2664_v2 = vmul.f32 1.442695, %v2663_v26 }
0x1841   :  { %6033 = vpow2.f32 %v2664_v2 }
0x184b   :  { %v6034_v13 = vpop.eup %6033 }
0x184c   :  { %v2671_v33 = vmul.f32 %v6034_v13, %v2669_v5 }
0x184e   :  { %2673 = vrot.lane.b32.xlu1 %v2671_v33, %s6080_s26 }
0x1852   :  { %5940 = vrot.lane.b32.xlu1 %v5939_v25, %s6080_s26 }
0x1856   :  { %2887 = vrot.lane.b32.xlu1 %v6813_v21, %s6080_s26 }
0x185a   :  { %5955 = vrot.lane.b32.xlu1 %v5944_v15, %s6081_s27 }
0x185e   :  { %3236 = vrot.lane.b32.xlu1 %v2865_v11, %s6079_s25 }
0x1862   :  { %3403 = vrot.lane.b32.xlu1 %v2865_v11, %s6083_s2 }
0x1866   :  { %3570 = vrot.lane.b32.xlu1 %v2865_v11, %s6086_s11 }
0x18c0   :  { %v2674_v34 = vpop.permute.xlu1 %2673 }
0x18c1   :  { %v2676_v35 = vadd.f32 %v2674_v34, %v2658_v30 }
0x18c3   :  { %5460 = vmatmul.mubr.msk.f32.vlgmr.msra.gmra.mrb[32].mxu0 %vm257_vm10, %v2676_v35 }
0x18c4   :  { %v5941_v38 = vpop.permute.xlu1 %5940 }
0x18c5   :  { %v5943_v39 = vunpack.i.h.bf16 %v5941_v38  ;;  %v5942_v40 = vunpack.i.l.bf16 %v5941_v38 }
0x18c7   :  { %v5787_v49 = vpack.c.bf16 %v5943_v39, %v5942_v40 }
0x18c8   :  { %v2888_v12 = vpop.permute.xlu1 %2887 }
0x18c9   :  { %5788 = vmatprep.subr.bf16.mxu0 %v5787_v49 }
0x18ca   :  { %5790 = vmatpush3.bf16.msra.mxu0 %v5787_v49 }
0x18cb   :  { %5792 = vmatprep.subr.bf16.mxu0 %v5791_v46 }
0x18cc   :  { %v5956_v17 = vpop.permute.xlu1 %5955 }
0x18cd   :  { %v5958_v10 = vunpack.i.h.bf16 %v5956_v17  ;;  %v5957_v58 = vunpack.i.l.bf16 %v5956_v17 }
0x18ce   :  { %5794 = vmatpush3.bf16.msra.mxu0 %v5791_v46 }
0x18cf   :  { %5495 = vmatprep.subr.mxu0 %v6078_v7  ;;  %v5799_v6 = vpack.c.bf16 %v5958_v10, %v5957_v58 }
0x18d0   :  { %v3237_v2 = vpop.permute.xlu1 %3236 }
0x18d1   :  { %5800 = vmatprep.subr.bf16.mxu1 %v5799_v6 }
0x18d2   :  { %5802 = vmatpush3.bf16.msra.mxu1 %v5799_v6 }
0x18d3   :  { %5505 = vmatprep.subr.mxu1 %v6078_v7 }
0x18d4   :  { %v3404_v28 = vpop.permute.xlu1 %3403 }
0x18d8   :  { %v3571_v15 = vpop.permute.xlu1 %3570 }
0x1996   :  { %v2755_v1 = vpop.f32.mrb[32].mxu0 }
0x1997   :  { %v2756_v56 = vadd.f32 %v4968_v61, %v2755_v1  ;;  %v5461_v47 = vpop.f32.mrb[33].mxu0 }
0x1999   :  { %v2764_v63 = vrot.slane %v2756_v56, 4  ;;  %v2768_v4 = vsel %vm139_vm1, %v2756_v56, %v2761_v37  ;;  %vm3148_vm1 = vcmask 39936  }
0x199b   :  { %v2770_v55 = vsel %vm2769_vm9, %v2768_v4, %v2764_v63 }
0x199c   :  { %v2771_v9 = vsel %vm1317_vm15, %v2770_v55, %v2766_v48 }
0x199d   :  { %2772 = vst.msk [vmem:[%s7109_s9] sm:$0xff] %vm257_vm10, %v2771_v9  ;;  %v2868_v53 = vadd.f32 %v2784_v32, %v2771_v9  ;;  %5492 = vmatprep.mubr.msk.f32.mxu1 %vm257_vm10, %v2771_v9 }
0x199e   :  { %5493 = vmatmul.mubr.msk.f32.vlgmr.msra.gmra.mrb[38].mxu1 %vm257_vm10, %v2766_v48 }
0x199f   :  { %5481 = vmatprep.mubr.msk.f32.mxu0 %vm257_vm10, %v2868_v53  ;;  %5507 = vmatprep.mubr.msk.f32.mxu1 %vm6077_vm6, %v6078_v7 }
0x19a0   :  { %5482 = vmatmul.mubr.msk.f32.vlgmr.msra.gmra.mrb[34].mxu0 %vm257_vm10, %v2869_v57 }
0x19a1   :  { %5497 = vmatprep.mubr.msk.f32.mxu0 %vm6077_vm6, %v6078_v7 }
0x1a71   :  { %v6862_v26 = vpop.f32.mrb[38].mxu1 }
0x1a72   :  { %v6864_v42 = vpop.f32.mrb[39].mxu1 }
0x1a73   :  { %v5483_v23 = vpop.f32.mrb[34].mxu0 }
0x1a74   :  { %v2968_v36 = vadd.f32 %v5483_v23, %v2888_v12  ;;  %v2962_v24 = vpop.f32.mrb[35].mxu0 }
0x1a75   :  { %v2963_v54 = vadd.f32 %v2962_v24, %v2888_v12 }
0x1a76   :  { %v3754_v60 = vrot.slane %v2968_v36, 5 }
0x1a77   :  { %3238 = vrot.lane.b32.xlu0 %v2963_v54, %s6079_s25  ;;  %5496 = vmatpush3.xpose.msk.msra.mxu0 %vm469_vm11, %v2963_v54  ;;  %v3753_v30 = vrot.slane %v2963_v54, 5 }
0x1a78   :  { %5500 = vmatprep.subr.mxu0 %v6078_v7 }
0x1a79   :  { %v3755_v59 = vsel %vm231_vm8, %v3753_v30, %v3754_v60 }
0x1a7a   :  { %5498 = vmatmul.mubr.msk.f32.vlgmr.msra.gmra.mrb[36].mxu0 %vm469_vm11, %v2865_v11  ;;  %4082 = vrot.lane.b32.xlu1 %v3755_v59, %s6083_s2 }
0x1a7b   :  { %3405 = vrot.lane.b32.xlu0 %v2963_v54, %s6083_s2  ;;  %5502 = vmatprep.mubr.msk.f32.mxu0 %vm6077_vm6, %v6078_v7 }
0x1a7f   :  { %3572 = vrot.lane.b32.xlu0 %v2963_v54, %s6086_s11 }
0x1a83   :  { %3919 = vrot.lane.b32.xlu0 %v3755_v59, %s6079_s25 }
0x1a87   :  { %4245 = vrot.lane.b32.xlu0 %v3755_v59, %s6086_s11 }
0x1ae9   :  { %v3239_v27 = vpop.permute.xlu0 %3238 }
0x1aea   :  { %5506 = vmatpush3.xpose.msk.msra.mxu1 %vm469_vm11, %v3239_v27 }
0x1aeb   :  { %5515 = vmatprep.subr.mxu1 %v6078_v7 }
0x1aec   :  { %v4083_v13 = vpop.permute.xlu1 %4082 }
0x1aed   :  { %v3406_v41 = vpop.permute.xlu0 %3405  ;;  %5508 = vmatmul.mubr.msk.f32.vlgmr.msra.gmra.mrb[40].mxu1 %vm469_vm11, %v3237_v2 }
0x1aee   :  { %5516 = vmatpush3.xpose.msk.msra.mxu1 %vm469_vm11, %v3406_v41  ;;  %5517 = vmatprep.mubr.msk.f32.mxu1 %vm6077_vm6, %v6078_v7 }
0x1aef   :  { %5525 = vmatprep.subr.mxu1 %v6078_v7 }
0x1af1   :  { %v3573_v31 = vpop.permute.xlu0 %3572  ;;  %5518 = vmatmul.mubr.msk.f32.vlgmr.msra.gmra.mrb[42].mxu1 %vm469_vm11, %v3404_v28 }
0x1af2   :  { %5526 = vmatpush3.xpose.msk.msra.mxu1 %vm469_vm11, %v3573_v31  ;;  %5527 = vmatprep.mubr.msk.f32.mxu1 %vm6077_vm6, %v6078_v7 }
0x1af3   :  { %5535 = vmatprep.subr.mxu1 %v6078_v7 }
0x1af5   :  { %5528 = vmatmul.mubr.msk.f32.vlgmr.msra.gmra.mrb[44].mxu1 %vm469_vm11, %v3571_v15  ;;  %v3920_v5 = vpop.permute.xlu0 %3919 }
0x1af6   :  { %5536 = vmatpush3.xpose.msk.msra.mxu1 %vm469_vm11, %v3755_v59  ;;  %5537 = vmatprep.mubr.msk.f32.mxu1 %vm6077_vm6, %v6078_v7 }
0x1af7   :  { %5545 = vmatprep.subr.mxu1 %v6078_v7 }
0x1af9   :  { %5538 = vmatmul.mubr.msk.f32.vlgmr.msra.gmra.mrb[46].mxu1 %vm469_vm11, %v2865_v11  ;;  %v4246_v33 = vpop.permute.xlu0 %4245 }
0x1afa   :  { %5546 = vmatpush3.xpose.msk.msra.mxu1 %vm469_vm11, %v3920_v5  ;;  %5547 = vmatprep.mubr.msk.f32.mxu1 %vm6077_vm6, %v6078_v7 }
0x1afb   :  { %5555 = vmatprep.subr.mxu1 %v6078_v7 }
0x1afd   :  { %5548 = vmatmul.mubr.msk.f32.vlgmr.msra.gmra.mrb[48].mxu1 %vm469_vm11, %v3237_v2 }
0x1afe   :  { %5556 = vmatpush3.xpose.msk.msra.mxu1 %vm469_vm11, %v4083_v13  ;;  %5557 = vmatprep.mubr.msk.f32.mxu1 %vm6077_vm6, %v6078_v7 }
0x1aff   :  { %5565 = vmatprep.subr.mxu1 %v6078_v7 }
0x1b01   :  { %5558 = vmatmul.mubr.msk.f32.vlgmr.msra.gmra.mrb[50].mxu1 %vm469_vm11, %v3404_v28 }
0x1b02   :  { %5566 = vmatpush3.xpose.msk.msra.mxu1 %vm469_vm11, %v4246_v33  ;;  %5567 = vmatprep.mubr.msk.f32.mxu1 %vm6077_vm6, %v6078_v7 }
0x1b05   :  { %5568 = vmatmul.mubr.msk.f32.vlgmr.msra.gmra.mrb[52].mxu1 %vm469_vm11, %v3571_v15 }
0x1b4d   :  { %v3143_v25 = vpop.f32.mrb[36].mxu0 }
0x1b4e   :  { %v6898_v34 = vmul.f32 0.35355338, %v3143_v25  ;;  %v5499_v35 = vpop.f32.mrb[37].mxu0 }
0x1b50   :  { %v3149_v38 = vsel %vm3148_vm1, %v6898_v34, -inf }
0x1b51   :  { %3150 = vmax.xlane.f32.xlu1 %v3149_v38 }
0x1bc0   :  { %v3310_v39 = vpop.f32.mrb[40].mxu1 }
0x1bc1   :  { %v3314_v40 = vmul.f32 0.35355338, %v3310_v39  ;;  %v5509_v49 = vpop.f32.mrb[41].mxu1 }
0x1bc3   :  { %v3315_v44 = vsel %vm3148_vm1, %v3314_v40, -inf }
0x1bc4   :  { %3316 = vmax.xlane.f32.xlu0 %v3315_v44  ;;  %v3477_v0 = vpop.f32.mrb[42].mxu1 }
0x1bc5   :  { %v3481_v45 = vmul.f32 0.35355338, %v3477_v0  ;;  %v5519_v20 = vpop.f32.mrb[43].mxu1 }
0x1bc7   :  { %v3482_v3 = vsel %vm3148_vm1, %v3481_v45, -inf }
0x1bc8   :  { %3483 = vmax.xlane.f32.xlu0 %v3482_v3  ;;  %v3644_v46 = vpop.f32.mrb[44].mxu1 }
0x1bc9   :  { %v3648_v19 = vmul.f32 0.35355338, %v3644_v46  ;;  %v5529_v48 = vpop.f32.mrb[45].mxu1 }
0x1bcb   :  { %v3649_v50 = vsel %vm3148_vm1, %v3648_v19, -inf }
0x1bcc   :  { %3650 = vmax.xlane.f32.xlu1 %v3649_v50  ;;  %v3824_v29 = vpop.f32.mrb[46].mxu1 }
0x1bcd   :  { %v3828_v16 = vmul.f32 0.35355338, %v3824_v29  ;;  %v5539_v51 = vpop.f32.mrb[47].mxu1 }
0x1bcf   :  { %v3829_v61 = vsel %vm3148_vm1, %v3828_v16, -inf }
0x1bd0   :  { %3830 = vmax.xlane.f32.xlu0 %v3829_v61  ;;  %v3989_v37 = vpop.f32.mrb[48].mxu1 }
0x1bd1   :  { %v3993_v1 = vmul.f32 0.35355338, %v3989_v37  ;;  %v5549_v62 = vpop.f32.mrb[49].mxu1 }
0x1bd3   :  { %v3994_v56 = vsel %vm3148_vm1, %v3993_v1, -inf }
0x1bd4   :  { %3995 = vmax.xlane.f32.xlu1 %v3994_v56  ;;  %v4152_v47 = vpop.f32.mrb[50].mxu1 }
0x1bd5   :  { %v4156_v63 = vmul.f32 0.35355338, %v4152_v47  ;;  %v5559_v4 = vpop.f32.mrb[51].mxu1 }
0x1bd7   :  { %v4157_v32 = vsel %vm3148_vm1, %v4156_v63, -inf }
0x1bd8   :  { %4158 = vmax.xlane.f32.xlu0 %v4157_v32  ;;  %v4315_v55 = vpop.f32.mrb[52].mxu1 }
0x1bd9   :  { %v5569_v9 = vpop.f32.mrb[53].mxu1  ;;  %v4319_v6 = vmul.f32 0.35355338, %v4315_v55 }
0x1bdb   :  { %v4320_v23 = vsel %vm3148_vm1, %v4319_v6, -inf }
0x1bde   :  { %v3151_v36 = vpop.xlane.xlu1 %3150 }
0x1bdf   :  { %v3152_v24 = vsub.f32 %v6898_v34, %v3151_v36 }
0x1be1   :  { %v3153_v54 = vmul.f32 1.442695, %v3152_v24 }
0x1bee   :  { %2983 = vrot.lane.b32.xlu0 %v6813_v21, %s6081_s27 }
0x1c51   :  { %v3317_v57 = vpop.xlane.xlu0 %3316 }
0x1c52   :  { %v3318_v60 = vsub.f32 %v3314_v40, %v3317_v57 }
0x1c54   :  { %v3319_v30 = vmul.f32 1.442695, %v3318_v60 }
0x1c55   :  { %v3484_v53 = vpop.xlane.xlu0 %3483 }
0x1c56   :  { %v3485_v59 = vsub.f32 %v3481_v45, %v3484_v53 }
0x1c58   :  { %v3486_v2 = vmul.f32 1.442695, %v3485_v59  ;;  %v3066_v59 = vld [vmem:[%s7100_s5 + $0x118] sm:$0xff] }
0x1c5d   :  { %v3831_v8 = vpop.xlane.xlu0 %3830 }
0x1c5e   :  { %v3832_v41 = vsub.f32 %v3828_v16, %v3831_v8 }
0x1c60   :  { %v3833_v15 = vmul.f32 1.442695, %v3832_v41  ;;  %v3069_v41 = vld [vmem:[%s7100_s5 + $0x130] sm:$0xff] }
0x1c65   :  { %v4159_v11 = vpop.xlane.xlu0 %4158 }
0x1c66   :  { %v4160_v22 = vsub.f32 %v4156_v63, %v4159_v11 }
0x1c68   :  { %v4161_v12 = vmul.f32 1.442695, %v4160_v22 }
0x1c69   :  { %v2984_v14 = vpop.permute.xlu0 %2983 }
0x1c6a   :  { %6035 = vpow2.f32 %v4161_v12  ;;  %v3058_v17 = vadd.f32 %v6864_v42, %v2984_v14  ;;  %v3063_v52 = vadd.f32 %v6862_v26, %v2984_v14  ;;  %v3651_v26 = vpop.xlane.xlu1 %3650 }
0x1c6b   :  { %6037 = vpow2.f32 %v3153_v54  ;;  %v3652_v42 = vsub.f32 %v3648_v19, %v3651_v26  ;;  %v3067_v26 = vld [vmem:[%s7100_s5 + $0x120] sm:$0xff] }
0x1c6c   :  { %v3842_v18 = vrot.slane %v3063_v52, 5  ;;  %3326 = vrot.lane.b32.xlu1 %v3058_v17, %s6079_s25  ;;  %5501 = vmatpush3.msk.msra.mxu0 %vm2769_vm9, %v3058_v17  ;;  %v3841_v10 = vrot.slane %v3058_v17, 5  ;;  %6039 = vpow2.f32 %v3319_v30 }
0x1c6d   :  { %5510 = vmatprep.subr.mxu0 %v6078_v7  ;;  %6041 = vpow2.f32 %v3486_v2  ;;  %v3653_v27 = vmul.f32 1.442695, %v3652_v42  ;;  %v3068_v2 = vld [vmem:[%s7100_s5 + $0x128] sm:$0xff] }
0x1c6e   :  { %v6916_v21 = vsel %vm231_vm8, %v3841_v10, %v3842_v18  ;;  %v3996_v28 = vpop.xlane.xlu1 %3995 }
0x1c6f   :  { %6043 = vpow2.f32 %v3653_v27  ;;  %v3997_v5 = vsub.f32 %v3993_v1, %v3996_v28  ;;  %v5803_v27 = vpack.c.bf16 %v3067_v26, %v3066_v59  ;;  %v5807_v28 = vpack.c.bf16 %v3069_v41, %v3068_v2  ;;  %v5011_v2 = vld [vmem:[%s7100_s5 + $0x140] ss:$0 sm:$0xff] }
0x1c70   :  { %3493 = vrot.lane.b32.xlu1 %v3058_v17, %s6083_s2  ;;  %6045 = vpow2.f32 %v3833_v15 }
0x1c71   :  { %v3998_v25 = vmul.f32 1.442695, %v3997_v5  ;;  %5804 = vmatprep.subr.bf16.mxu1 %v5803_v27 }
0x1c72   :  { %5806 = vmatpush3.bf16.msra.mxu1 %v5803_v27  ;;  %v5012_v27 = vld [vmem:[%s7100_s5 + $0x148] ss:$0 sm:$0xff] }
0x1c73   :  { %6047 = vpow2.f32 %v3998_v25  ;;  %5808 = vmatprep.subr.bf16.mxu1 %v5807_v28 }
0x1c74   :  { %v6919_v58 = vpop.eup %6035 }
0x1c75   :  { %v4163_v43 = vsel %vm3148_vm1, %v6919_v58, 0.0  ;;  %v6038_v31 = vpop.eup %6037 }
0x1c76   :  { %4164 = vadd.xlane.f32.xlu0 %v4163_v43  ;;  %v3155_v13 = vsel %vm3148_vm1, %v6038_v31, 0.0  ;;  %v6040_v33 = vpop.eup %6039  ;;  %5810 = vmatpush3.bf16.msra.mxu1 %v5807_v28 }
0x1c77   :  { %v3321_v34 = vsel %vm3148_vm1, %v6040_v33, 0.0  ;;  %v6042_v35 = vpop.eup %6041 }
0x1c78   :  { %v3488_v38 = vsel %vm3148_vm1, %v6042_v35, 0.0 }
0x1c79   :  { %v6044_v39 = vpop.eup %6043 }
0x1c7a   :  { %v3655_v40 = vsel %vm3148_vm1, %v6044_v39, 0.0  ;;  %v6046_v49 = vpop.eup %6045 }
0x1c7b   :  { %v3835_v44 = vsel %vm3148_vm1, %v6046_v49, 0.0 }
0x1c7d   :  { %v6048_v0 = vpop.eup %6047 }
0x1c7e   :  { %v4000_v45 = vsel %vm3148_vm1, %v6048_v0, 0.0 }
0x1c8c   :  { %4005 = vrot.lane.b32.xlu0 %v6916_v21, %s6079_s25 }
0x1c94   :  { %4321 = vmax.xlane.f32.xlu1 %v4320_v23 }
0x1ca5   :  { %3660 = vrot.lane.b32.xlu1 %v3058_v17, %s6086_s11 }
0x1cc9   :  { %3156 = vadd.xlane.f32.xlu1 %v3155_v13 }
0x1ccd   :  { %3322 = vadd.xlane.f32.xlu1 %v3321_v34 }
0x1cd1   :  { %3489 = vadd.xlane.f32.xlu1 %v3488_v38 }
0x1cd5   :  { %3656 = vadd.xlane.f32.xlu1 %v3655_v40 }
0x1cd9   :  { %3836 = vadd.xlane.f32.xlu1 %v3835_v44 }
0x1cdd   :  { %4001 = vadd.xlane.f32.xlu1 %v4000_v45 }
0x1cde   :  { %v3327_v20 = vpop.permute.xlu1 %3326 }
0x1ce2   :  { %v3494_v3 = vpop.permute.xlu1 %3493 }
0x1cee   :  { %4168 = vrot.lane.b32.xlu1 %v6916_v21, %s6083_s2 }
0x1d03   :  { %v4165_v55 = vpop.xlane.xlu0 %4164 }
0x1d07   :  { %v4006_v12 = vpop.permute.xlu0 %4005 }
0x1d21   :  { %v4322_v46 = vpop.xlane.xlu1 %4321 }
0x1d22   :  { %v4323_v19 = vsub.f32 %v4319_v6, %v4322_v46 }
0x1d24   :  { %v4324_v48 = vmul.f32 1.442695, %v4323_v19 }
0x1d25   :  { %v3661_v16 = vpop.permute.xlu1 %3660 }
0x1d26   :  { %6049 = vpow2.f32 %v4324_v48 }
0x1d30   :  { %v6936_v50 = vpop.eup %6049 }
0x1d31   :  { %v4326_v29 = vsel %vm3148_vm1, %v6936_v50, 0.0 }
0x1d32   :  { %4327 = vadd.xlane.f32.xlu1 %v4326_v29 }
0x1d43   :  { %4331 = vrot.lane.b32.xlu1 %v6916_v21, %s6086_s11 }
0x1d56   :  { %v3157_v51 = vpop.xlane.xlu1 %3156 }
0x1d57   :  { %6051 = vrcp.f32 %v3157_v51 }
0x1d5a   :  { %v3323_v61 = vpop.xlane.xlu1 %3322 }
0x1d5b   :  { %6053 = vrcp.f32 %v3323_v61 }
0x1d5e   :  { %v3490_v37 = vpop.xlane.xlu1 %3489 }
0x1d5f   :  { %6055 = vrcp.f32 %v3490_v37 }
0x1d61   :  { %v6052_v1 = vpop.eup %6051 }
0x1d62   :  { %v3159_v62 = vmul.f32 %v6052_v1, %v6038_v31  ;;  %v3657_v56 = vpop.xlane.xlu1 %3656 }
0x1d63   :  { %6057 = vrcp.f32 %v3657_v56 }
0x1d64   :  { %5503 = vmatmul.mubr.msk.f32.vlgmr.msra.gmra.mrb[38].mxu0 %vm3148_vm1, %v3159_v62 }
0x1d65   :  { %v6054_v47 = vpop.eup %6053  ;;  %5511 = vmatpush3.msk.msra.mxu0 %vm2769_vm9, %v3327_v20  ;;  %5512 = vmatprep.mubr.msk.f32.mxu0 %vm6077_vm6, %v6078_v7 }
0x1d66   :  { %v3325_v63 = vmul.f32 %v6054_v47, %v6040_v33  ;;  %v3837_v4 = vpop.xlane.xlu1 %3836  ;;  %5520 = vmatprep.subr.mxu0 %v6078_v7 }
0x1d67   :  { %6059 = vrcp.f32 %v3837_v4 }
0x1d68   :  { %5513 = vmatmul.mubr.msk.f32.vlgmr.msra.gmra.mrb[40].mxu0 %vm3148_vm1, %v3325_v63 }
0x1d69   :  { %v6056_v32 = vpop.eup %6055  ;;  %5521 = vmatpush3.msk.msra.mxu0 %vm2769_vm9, %v3494_v3  ;;  %5522 = vmatprep.mubr.msk.f32.mxu0 %vm6077_vm6, %v6078_v7 }
0x1d6a   :  { %v3492_v9 = vmul.f32 %v6056_v32, %v6042_v35  ;;  %v4002_v57 = vpop.xlane.xlu1 %4001  ;;  %5530 = vmatprep.subr.mxu0 %v6078_v7 }
0x1d6b   :  { %6061 = vrcp.f32 %v4002_v57 }
0x1d6c   :  { %5523 = vmatmul.mubr.msk.f32.vlgmr.msra.gmra.mrb[42].mxu0 %vm3148_vm1, %v3492_v9  ;;  %6063 = vrcp.f32 %v4165_v55 }
0x1d6d   :  { %v6058_v53 = vpop.eup %6057  ;;  %5531 = vmatpush3.msk.msra.mxu0 %vm2769_vm9, %v3661_v16  ;;  %5532 = vmatprep.mubr.msk.f32.mxu0 %vm6077_vm6, %v6078_v7 }
0x1d6e   :  { %v3659_v8 = vmul.f32 %v6058_v53, %v6044_v39  ;;  %5540 = vmatprep.subr.mxu0 %v6078_v7  ;;  %v4169_v18 = vpop.permute.xlu1 %4168 }
0x1d70   :  { %5533 = vmatmul.mubr.msk.f32.vlgmr.msra.gmra.mrb[44].mxu0 %vm3148_vm1, %v3659_v8  ;;  %v4548_v8 = vld [vmem:[%s7105_s6 + $0x50] sm:$0xff] }
0x1d71   :  { %v6060_v11 = vpop.eup %6059  ;;  %5541 = vmatpush3.msk.msra.mxu0 %vm2769_vm9, %v6916_v21  ;;  %5542 = vmatprep.mubr.msk.f32.mxu0 %vm6077_vm6, %v6078_v7 }
0x1d72   :  { %v3839_v22 = vmul.f32 %v6060_v11, %v6046_v49  ;;  %5550 = vmatprep.subr.mxu0 %v6078_v7  ;;  %v4549_v11 = vld [vmem:[%s7105_s6 + $0x58] sm:$0xff] }
0x1d74   :  { %5543 = vmatmul.mubr.msk.f32.vlgmr.msra.gmra.mrb[46].mxu0 %vm3148_vm1, %v3839_v22  ;;  %v5811_v22 = vpack.c.bf16 %v4549_v11, %v4548_v8  ;;  %v4779_v8 = vld [vmem:[%s7100_s5 + $0x1c0] sm:$0xff] }
0x1d75   :  { %v6062_v14 = vpop.eup %6061  ;;  %5551 = vmatpush3.msk.msra.mxu0 %vm2769_vm9, %v4006_v12  ;;  %5552 = vmatprep.mubr.msk.f32.mxu0 %vm6077_vm6, %v6078_v7  ;;  %v4550_v12 = vld [vmem:[%s7105_s6 + $0x60] sm:$0xff] }
0x1d76   :  { %v4004_v17 = vmul.f32 %v6062_v14, %v6048_v0  ;;  %5560 = vmatprep.subr.mxu0 %v6078_v7  ;;  %v6064_v52 = vpop.eup %6063  ;;  %v4551_v14 = vld [vmem:[%s7105_s6 + $0x68] sm:$0xff] }
0x1d77   :  { %v4167_v10 = vmul.f32 %v6064_v52, %v6919_v58  ;;  %v4640_v52 = vld [vmem:[%s7100_s5 + $0x150] sm:$0xff] }
0x1d78   :  { %5553 = vmatmul.mubr.msk.f32.vlgmr.msra.gmra.mrb[48].mxu0 %vm3148_vm1, %v4004_v17  ;;  %v5815_v17 = vpack.c.bf16 %v4551_v14, %v4550_v12 }
0x1d79   :  { %5561 = vmatpush3.msk.msra.mxu0 %vm2769_vm9, %v4169_v18  ;;  %5562 = vmatprep.mubr.msk.f32.mxu0 %vm6077_vm6, %v6078_v7  ;;  %v4641_v18 = vld [vmem:[%s7100_s5 + $0x158] sm:$0xff] }
0x1d7a   :  { %5570 = vmatprep.subr.mxu0 %v6078_v7 }
0x1d7c   :  { %5563 = vmatmul.mubr.msk.f32.vlgmr.msra.gmra.mrb[50].mxu0 %vm3148_vm1, %v4167_v10  ;;  %v4642_v10 = vld [vmem:[%s7100_s5 + $0x160] sm:$0xff] }
0x1d7d   :  { %5572 = vmatprep.mubr.msk.f32.mxu0 %vm6077_vm6, %v6078_v7 }
0x1dbf   :  { %v4328_v21 = vpop.xlane.xlu1 %4327 }
0x1dc0   :  { %6065 = vrcp.f32 %v4328_v21  ;;  %v5819_v21 = vpack.c.bf16 %v4641_v18, %v4640_v52 }
0x1dc2   :  { %5820 = vmatprep.subr.bf16.mxu1 %v5819_v21 }
0x1dc3   :  { %v4332_v43 = vpop.permute.xlu1 %4331 }
0x1dc4   :  { %5571 = vmatpush3.msk.msra.mxu0 %vm2769_vm9, %v4332_v43  ;;  %v4643_v43 = vld [vmem:[%s7100_s5 + $0x168] sm:$0xff] }
0x1dc5   :  { %5812 = vmatprep.subr.bf16.mxu0 %v5811_v22 }
0x1dca   :  { %v6066_v6 = vpop.eup %6065 }
0x1dcb   :  { %v4330_v23 = vmul.f32 %v6066_v6, %v6936_v50  ;;  %v5008_v50 = vld [vmem:[%s7100_s5 + $0x138] ss:$0 sm:$0xff]  ;;  %v5823_v6 = vpack.c.bf16 %v4643_v43, %v4642_v10 }
0x1dcd   :  { %5573 = vmatmul.mubr.msk.f32.vlgmr.msra.gmra.mrb[52].mxu0 %vm3148_vm1, %v4330_v23  ;;  %v4644_v23 = vld [vmem:[%s7100_s5 + $0x170] sm:$0xff] }
0x1dce   :  { %5814 = vmatpush3.bf16.msra.mxu0 %v5811_v22 }
0x1dcf   :  { %5816 = vmatprep.subr.bf16.mxu0 %v5815_v17 }
0x1dd2   :  { %5818 = vmatpush3.bf16.msra.mxu0 %v5815_v17 }
0x1e37   :  { %v3232_v36 = vpop.f32.mrb[38].mxu0 }
0x1e38   :  { %v5504_v24 = vpop.f32.mrb[39].mxu0 }
0x1e3b   :  { %v3399_v58 = vpop.f32.mrb[40].mxu0 }
0x1e3c   :  { %3738 = vrot.lane.b32.xlu1 %v3399_v58, %s6088_s13  ;;  %v5514_v54 = vpop.f32.mrb[41].mxu0 }
0x1e3f   :  { %v3566_v60 = vpop.f32.mrb[42].mxu0 }
0x1e40   :  { %3742 = vrot.lane.b32.xlu1 %v3566_v60, %s6087_s12  ;;  %v5524_v7 = vpop.f32.mrb[43].mxu0 }
0x1e43   :  { %v3733_v30 = vpop.f32.mrb[44].mxu0 }
0x1e44   :  { %3746 = vrot.lane.b32.xlu1 %v3733_v30, %s6089_s14  ;;  %v5534_v42 = vpop.f32.mrb[45].mxu0 }
0x1e47   :  { %v3915_v31 = vpop.f32.mrb[46].mxu0 }
0x1e48   :  { %v5544_v15 = vpop.f32.mrb[47].mxu0 }
0x1e4b   :  { %v4078_v5 = vpop.f32.mrb[48].mxu0 }
0x1e4c   :  { %4409 = vrot.lane.b32.xlu1 %v4078_v5, %s6088_s13  ;;  %v5554_v13 = vpop.f32.mrb[49].mxu0 }
0x1e4f   :  { %v4241_v33 = vpop.f32.mrb[50].mxu0 }
0x1e50   :  { %4413 = vrot.lane.b32.xlu0 %v4241_v33, %s6087_s12  ;;  %v5564_v25 = vpop.f32.mrb[51].mxu0  ;;  %v4646_v33 = vld [vmem:[%s7100_s5 + $0x180] sm:$0xff] }
0x1e51   :  { %v4647_v25 = vld [vmem:[%s7100_s5 + $0x188] sm:$0xff] }
0x1ea0   :  { %v4404_v34 = vpop.f32.mrb[52].mxu0 }
0x1ea1   :  { %4417 = vrot.lane.b32.xlu1 %v4404_v34, %s6089_s14  ;;  %v5574_v35 = vpop.f32.mrb[53].mxu0  ;;  %v5831_v34 = vpack.c.bf16 %v4647_v25, %v4646_v33 }
0x1ea2   :  { %v5013_v35 = vld [vmem:[%s7105_s6 + $0x70] ss:$0 sm:$0xff] }
0x1eae   :  { %v3739_v38 = vpop.permute.xlu1 %3738 }
0x1eaf   :  { %v3749_v40 = vsel %vm469_vm11, %v3232_v36, %v3739_v38  ;;  %v4645_v36 = vld [vmem:[%s7100_s5 + $0x178] sm:$0xff] }
0x1eb0   :  { %v5827_v24 = vpack.c.bf16 %v4645_v36, %v4644_v23  ;;  %v5020_v36 = vld [vmem:[%s7100_s5 + $0x1a0] ss:$0 sm:$0xff] }
0x1eb2   :  { %v3743_v39 = vpop.permute.xlu1 %3742 }
0x1eb3   :  { %v3750_v49 = vsel %vm1310_vm3, %v3749_v40, %v3743_v39 }
0x1eb6   :  { %v3747_v44 = vpop.permute.xlu1 %3746 }
0x1eb7   :  { %v3751_v0 = vsel %vm1313_vm2, %v3750_v49, %v3747_v44 }
0x1eb8   :  { %5583 = vmatprep.mubr.msk.f32.mxu1 %vm257_vm10, %v3751_v0 }
0x1ebe   :  { %v4410_v45 = vpop.permute.xlu1 %4409 }
0x1ebf   :  { %v4420_v3 = vsel %vm469_vm11, %v3915_v31, %v4410_v45  ;;  %v5016_v45 = vld [vmem:[%s7100_s5 + $0x190] ss:$0 sm:$0xff] }
0x1ec2   :  { %v4414_v20 = vpop.permute.xlu0 %4413 }
0x1ec3   :  { %v4421_v46 = vsel %vm1310_vm3, %v4420_v3, %v4414_v20 }
0x1f13   :  { %v4418_v19 = vpop.permute.xlu1 %4417 }
0x1f14   :  { %v4422_v48 = vsel %vm1313_vm2, %v4421_v46, %v4418_v19 }
0x1f15   :  { %5584 = vmatmul.mubr.msk.f32.vlgmr.msra.gmra.mrb[54].mxu1 %vm257_vm10, %v4422_v48 }
0x1f16   :  { %5822 = vmatpush3.bf16.msra.mxu1 %v5819_v21  ;;  %v5019_v21 = vld [vmem:[%s7100_s5 + $0x198] ss:$0 sm:$0xff] }
0x1f17   :  { %5824 = vmatprep.subr.bf16.mxu1 %v5823_v6 }
0x1f1a   :  { %5826 = vmatpush3.bf16.msra.mxu1 %v5823_v6 }
0x1f1b   :  { %5828 = vmatprep.subr.bf16.mxu1 %v5827_v24 }
0x1f1e   :  { %5830 = vmatpush3.bf16.msra.mxu1 %v5827_v24 }
0x1f1f   :  { %5832 = vmatprep.subr.bf16.mxu1 %v5831_v34 }
0x1f22   :  { %5834 = vmatpush3.bf16.msra.mxu1 %v5831_v34 }
0x1fe8   :  { %v5585_v29 = vpop.f32.mrb[54].mxu1 }
0x1fe9   :  { %v4505_v16 = vadd.f32 %v5585_v29, %v5008_v50  ;;  %v4499_v51 = vpop.f32.mrb[55].mxu1 }
0x1fea   :  { %v4500_v61 = vadd.f32 %v5008_v50, %v4499_v51 }
0x1feb   :  { %v4513_v37 = vsel %vm257_vm10, %v4505_v16, 0.0 }
0x1fec   :  { %4514 = vadd.xlane.f32.xlu1 %v4513_v37  ;;  %v4510_v1 = vsel %vm257_vm10, %v4500_v61, 0.0 }
0x1fed   :  { %4511 = vadd.xlane.f32.xlu0 %v4510_v1 }
0x2079   :  { %v4515_v62 = vpop.xlane.xlu1 %4514 }
0x207a   :  { %v4517_v56 = vmul.f32 0.03125, %v4515_v62  ;;  %v4512_v47 = vpop.xlane.xlu0 %4511 }
0x207b   :  { %v4516_v63 = vmul.f32 0.03125, %v4512_v47 }
0x207c   :  { %v4519_v4 = vsub.f32 %v4505_v16, %v4517_v56 }
0x207d   :  { %v4518_v32 = vsub.f32 %v4500_v61, %v4516_v63 }
0x207e   :  { %v4521_v57 = vmul.f32 %v4519_v4, %v4519_v4 }
0x207f   :  { %v4520_v55 = vmul.f32 %v4518_v32, %v4518_v32 }
0x2080   :  { %v4525_v53 = vsel %vm257_vm10, %v4521_v57, 0.0 }
0x2081   :  { %v4522_v9 = vsel %vm257_vm10, %v4520_v55, 0.0  ;;  %v4776_v55 = vld [vmem:[%s7100_s5 + $0x1a8] sm:$0xff] }
0x2082   :  { %4523 = vadd.xlane.f32.xlu0 %v4522_v9  ;;  %v4777_v9 = vld [vmem:[%s7100_s5 + $0x1b0] sm:$0xff] }
0x2083   :  { %v5835_v57 = vpack.c.bf16 %v4777_v9, %v4776_v55 }
0x2085   :  { %5836 = vmatprep.subr.bf16.mxu0 %v5835_v57 }
0x2086   :  { %4526 = vadd.xlane.f32.xlu0 %v4525_v53  ;;  %v4778_v53 = vld [vmem:[%s7100_s5 + $0x1b8] sm:$0xff] }
0x2087   :  { %v5839_v11 = vpack.c.bf16 %v4779_v8, %v4778_v53 }
0x210f   :  { %v4524_v58 = vpop.xlane.xlu0 %4523 }
0x2110   :  { %v4528_v54 = vmul.f32 0.03125, %v4524_v58 }
0x2112   :  { %v4530_v60 = vadd.f32 1e-05, %v4528_v54 }
0x2113   :  { %v4527_v7 = vpop.xlane.xlu0 %4526 }
0x2114   :  { %6067 = vrsqrt.f32 %v4530_v60  ;;  %v4529_v30 = vmul.f32 0.03125, %v4527_v7  ;;  %v5021_v7 = vld [vmem:[%s7100_s5 + $0x1c8] ss:$0 sm:$0xff] }
0x2116   :  { %v4531_v59 = vadd.f32 1e-05, %v4529_v30 }
0x2118   :  { %6069 = vrsqrt.f32 %v4531_v59 }
0x211e   :  { %v6068_v26 = vpop.eup %6067 }
0x211f   :  { %v4534_v42 = vmul.f32 %v6068_v26, %v4518_v32 }
0x2121   :  { %v4540_v41 = vmul.f32 %v5011_v2, %v4534_v42 }
0x2122   :  { %v6070_v28 = vpop.eup %6069 }
0x2123   :  { %v4535_v31 = vmul.f32 %v6070_v28, %v4519_v4  ;;  %v4546_v15 = vadd.f32 %v5012_v27, %v4540_v41 }
0x2125   :  { %v4541_v5 = vmul.f32 %v5011_v2, %v4535_v31  ;;  %5594 = vmatprep.mubr.msk.f32.mxu0 %vm257_vm10, %v4546_v15 }
0x2127   :  { %v4547_v13 = vadd.f32 %v5012_v27, %v4541_v5 }
0x2129   :  { %5595 = vmatmul.mubr.msk.f32.vlgmr.msra.gmra.mrb[54].mxu0 %vm257_vm10, %v4547_v13 }
0x212a   :  { %5838 = vmatpush3.bf16.msra.mxu0 %v5835_v57 }
0x212b   :  { %5840 = vmatprep.subr.bf16.mxu0 %v5839_v11 }
0x212e   :  { %5842 = vmatpush3.bf16.msra.mxu0 %v5839_v11 }
0x21fc   :  { %v5596_v38 = vpop.f32.mrb[54].mxu0 }
0x21fd   :  { %v4635_v39 = vadd.f32 %v5596_v38, %v5013_v35  ;;  %v4629_v40 = vpop.f32.mrb[55].mxu0 }
0x21fe   :  { %v4630_v49 = vadd.f32 %v5013_v35, %v4629_v40 }
0x21ff   :  { %v4639_v0 = vmax.f32 %v4635_v39, 0.0 }
0x2200   :  { %v4638_v44 = vmax.f32 %v4630_v49, 0.0 }
0x2202   :  { %5613 = vmatprep.mubr.msk.f32.mxu1 %vm2444_vm4, %v4638_v44 }
0x2203   :  { %5614 = vmatmul.mubr.msk.f32.vlgmr.msra.gmra.mrb[56].mxu1 %vm2444_vm4, %v4639_v0 }
0x22d6   :  { %v5615_v20 = vpop.f32.mrb[56].mxu1 }
0x22d7   :  { %v4731_v3 = vadd.f32 %v5615_v20, %v5016_v45  ;;  %v4725_v46 = vpop.f32.mrb[57].mxu1 }
0x22d8   :  { %v4726_v19 = vadd.f32 %v5016_v45, %v4725_v46 }
0x22d9   :  { %v4735_v48 = vadd.f32 %v4731_v3, %v4547_v13 }
0x22da   :  { %v4734_v50 = vadd.f32 %v4726_v19, %v4546_v15 }
0x22db   :  { %v4741_v29 = vsel %vm257_vm10, %v4735_v48, 0.0 }
0x22dc   :  { %4742 = vadd.xlane.f32.xlu1 %v4741_v29  ;;  %v4738_v16 = vsel %vm257_vm10, %v4734_v50, 0.0 }
0x22dd   :  { %4739 = vadd.xlane.f32.xlu0 %v4738_v16 }
0x2369   :  { %v4743_v51 = vpop.xlane.xlu1 %4742 }
0x236a   :  { %v4745_v61 = vmul.f32 0.03125, %v4743_v51  ;;  %v4740_v37 = vpop.xlane.xlu0 %4739 }
0x236b   :  { %v4744_v1 = vmul.f32 0.03125, %v4740_v37 }
0x236c   :  { %v4747_v62 = vsub.f32 %v4735_v48, %v4745_v61 }
0x236d   :  { %v4746_v56 = vsub.f32 %v4734_v50, %v4744_v1 }
0x236e   :  { %v4749_v47 = vmul.f32 %v4747_v62, %v4747_v62 }
0x236f   :  { %v4748_v63 = vmul.f32 %v4746_v56, %v4746_v56 }
0x2370   :  { %v4753_v4 = vsel %vm257_vm10, %v4749_v47, 0.0 }
0x2371   :  { %4754 = vadd.xlane.f32.xlu1 %v4753_v4  ;;  %v4750_v32 = vsel %vm257_vm10, %v4748_v63, 0.0 }
0x2372   :  { %4751 = vadd.xlane.f32.xlu0 %v4750_v32 }
0x23fe   :  { %v4755_v22 = vpop.xlane.xlu1 %4754 }
0x23ff   :  { %v4757_v12 = vmul.f32 0.03125, %v4755_v22  ;;  %v4752_v14 = vpop.xlane.xlu0 %4751 }
0x2400   :  { %v4756_v17 = vmul.f32 0.03125, %v4752_v14 }
0x2401   :  { %v4759_v52 = vadd.f32 1e-05, %v4757_v12 }
0x2402   :  { %v4758_v18 = vadd.f32 1e-05, %v4756_v17 }
0x2403   :  { %6071 = vrsqrt.f32 %v4759_v52 }
0x2404   :  { %6073 = vrsqrt.f32 %v4758_v18 }
0x240d   :  { %v6072_v10 = vpop.eup %6071 }
0x240e   :  { %v6074_v43 = vpop.eup %6073  ;;  %v4763_v6 = vmul.f32 %v6072_v10, %v4747_v62 }
0x240f   :  { %v4762_v23 = vmul.f32 %v6074_v43, %v4746_v56 }
0x2410   :  { %v4769_v24 = vmul.f32 %v5019_v21, %v4763_v6 }
0x2411   :  { %v4768_v58 = vmul.f32 %v5019_v21, %v4762_v23 }
0x2412   :  { %v4775_v60 = vadd.f32 %v5020_v36, %v4769_v24 }
0x2413   :  { %v4774_v54 = vadd.f32 %v5020_v36, %v4768_v58 }
0x2415   :  { %5624 = vmatprep.mubr.msk.f32.mxu0 %vm257_vm10, %v4774_v54 }
0x2416   :  { %5625 = vmatmul.mubr.msk.f32.vlgmr.msra.gmra.mrb[56].mxu0 %vm257_vm10, %v4775_v60 }
0x24e9   :  { %v5626_v30 = vpop.f32.mrb[56].mxu0 }
0x24ea   :  { %v4863_v59 = vadd.f32 %v5626_v30, %v5021_v7  ;;  %v4857_v26 = vpop.f32.mrb[57].mxu0 }
0x24eb   :  { %v4858_v2 = vadd.f32 %v5021_v7, %v4857_v26 }
0x24ec   :  { %4867 = vst.msk [vmem:[%s7110_s10 + $0x8] sm:$0xff] %vm257_vm10, %v4863_v59 }
0x24ed   :  { %4866 = vst.msk [vmem:[%s7110_s10] sm:$0xff] %vm257_vm10, %v4858_v2 }

</bundles_post_ra>
